<compile_context>
chip_gen: v5e
topology: v5e:2x2
jax: 0.10.0
libtpu: 0.0.40
codegen_flags: <defaults>
</compile_context>

<pallas_src>
import functools

import jax
import jax.numpy as jnp
from jax.experimental import pallas as pl
from jax.experimental.pallas import tpu as pltpu


def _round_up(x, m):
    return ((x + m - 1) // m) * m


# ----------------------------------------------------------------------------
# Bidirectional LSTM + projection head kernel (one batch group per grid step)
# ----------------------------------------------------------------------------
def _bilstm_head_kernel(x_ref, wih_f_ref, wih_b_ref, b_f_ref, b_b_ref,
                        whh_f_ref, whh_b_ref, wp_ref, logits_ref,
                        xgf_ref, xgb_ref, hf_ref, hb_ref,
                        *, seq_len, group_batch, hidden_dim, time_chunk, unroll):
    S, Bg, Hd, Tc = seq_len, group_batch, hidden_dim, time_chunk
    NC = S // Tc
    RPC = Tc * Bg          # rows per time-chunk in the (S*Bg, .) flattening

    # Weights kept resident for the whole kernel (bf16 MXU operands).
    wih_f = wih_f_ref[...]
    wih_b = wih_b_ref[...]
    b_f = b_f_ref[...]
    b_b = b_b_ref[...]
    whh_f = whh_f_ref[...]
    whh_b = whh_b_ref[...]
    wp_f = wp_ref[:Hd, :]          # (Hd, Lpad) lane-padded projection
    wp_b = wp_ref[Hd:, :]

    def _sig(x):                   # sigmoid via tanh: 1 EUP op per activation
        return 0.5 * jnp.tanh(0.5 * x) + 0.5

    def cell(g, c):                # PyTorch gate order i, f, g, o — f32 math
        i = _sig(g[:, 0 * Hd:1 * Hd])
        f = _sig(g[:, 1 * Hd:2 * Hd])
        gg = jnp.tanh(g[:, 2 * Hd:3 * Hd])
        o = _sig(g[:, 3 * Hd:4 * Hd])
        c_new = f * c + i * gg
        return (o * jnp.tanh(c_new)).astype(jnp.bfloat16), c_new

    def xg_rows(rows, wih, b):     # input projection for a row slab
        return jnp.dot(x_ref[rows, :], wih,
                       preferred_element_type=jnp.float32) + b

    # Prologue: gate pre-activations for the first fwd chunk (0) and the first
    # bwd chunk (NC-1) into double-buffer slot 0.
    xgf_ref[pl.ds(0, RPC), :] = xg_rows(pl.ds(0, RPC), wih_f, b_f)
    xgb_ref[pl.ds(0, RPC), :] = xg_rows(pl.ds((NC - 1) * RPC, RPC), wih_b, b_b)

    def make_chunk(fwd_first, bwd_first, prefetch_next):
        def chunk_body(ci, carry):
            slot = ci & 1
            nslot = 1 - slot
            mc = NC - 1 - ci                     # mirror chunk (backward dir)

            def step(j, carry):
                h_f, h_b, c_f, c_b = carry
                # Two independent recurrent chains — MXU of one overlaps gate
                # math of the other within this basic block.
                rec_f = jnp.dot(h_f, whh_f, preferred_element_type=jnp.float32)
                rec_b = jnp.dot(h_b, whh_b, preferred_element_type=jnp.float32)
                if prefetch_next:
                    # Off-critical-path input GEMM slices for chunk ci+1 /
                    # mirror chunk mc-1, co-scheduled with the recurrence.
                    xgf_ref[pl.ds(nslot * RPC + j * Bg, Bg), :] = xg_rows(
                        pl.ds((ci + 1) * RPC + j * Bg, Bg), wih_f, b_f)
                    xgb_ref[pl.ds(nslot * RPC + (Tc - 1 - j) * Bg, Bg), :] = xg_rows(
                        pl.ds((mc - 1) * RPC + (Tc - 1 - j) * Bg, Bg), wih_b, b_b)
                g_f = xgf_ref[pl.ds(slot * RPC + j * Bg, Bg), :] + rec_f
                g_b = xgb_ref[pl.ds(slot * RPC + (Tc - 1 - j) * Bg, Bg), :] + rec_b
                h_f, c_f = cell(g_f, c_f)
                h_b, c_b = cell(g_b, c_b)
                hf_ref[pl.ds(j * Bg, Bg), :] = h_f               # bf16 scratch
                hb_ref[pl.ds((Tc - 1 - j) * Bg, Bg), :] = h_b
                return h_f, h_b, c_f, c_b

            carry = jax.lax.fori_loop(0, Tc, step, carry, unroll=unroll)

            # Per-chunk projection epilogue (lane-dense Lpad output).
            rows_f = pl.ds(ci * RPC, RPC)
            rows_b = pl.ds(mc * RPC, RPC)
            proj_f = jnp.dot(hf_ref[...], wp_f,
                             preferred_element_type=jnp.float32)
            if fwd_first:
                logits_ref[rows_f, :] = proj_f
            else:
                logits_ref[rows_f, :] = logits_ref[rows_f, :] + proj_f
            proj_b = jnp.dot(hb_ref[...], wp_b,
                             preferred_element_type=jnp.float32)
            if bwd_first:
                logits_ref[rows_b, :] = proj_b
            else:
                logits_ref[rows_b, :] = logits_ref[rows_b, :] + proj_b
            return carry
        return chunk_body

    hz = jnp.zeros((Bg, Hd), jnp.bfloat16)
    cz = jnp.zeros((Bg, Hd), jnp.float32)
    carry = (hz, hz, cz, cz)
    half = NC // 2
    if NC == 1:
        make_chunk(True, False, False)(0, carry)
    else:
        # First half: both fwd and bwd writes are first touches.
        carry = jax.lax.fori_loop(0, half, make_chunk(True, True, True), carry)
        # Middle chunk (NC odd): fwd writes first, bwd accumulates the same rows.
        if NC % 2 == 1:
            carry = make_chunk(True, False, True)(half, carry)
        # Second half (excluding last): both accumulate, still prefetching.
        carry = jax.lax.fori_loop(NC - half, NC - 1,
                                  make_chunk(False, False, True), carry)
        # Last chunk: both accumulate, nothing left to prefetch.
        make_chunk(False, False, False)(NC - 1, carry)


def _default_num_groups(B):
    # Only split the batch across grid steps on chips with 2 TensorCores (v7x);
    # on v5e/v6e the "parallel" axis is a serial loop and just shrinks MXU rows.
    try:
        kind = jax.devices()[0].device_kind.lower()
    except Exception:
        kind = ""
    if "v7" in kind and B % 2 == 0 and (B // 2) >= 64:
        return 2
    return 1


def _pick_time_chunk(S, Bg, Hd):
    # Largest divisor of S whose per-chunk scratch stays within a modest budget
    # and whose row count feeds the MXU reasonably.
    budget = 24 * 2 ** 20
    best = 1
    for c in range(1, S + 1):
        if S % c:
            continue
        rows = c * Bg
        scratch = rows * (2 * 2 * 4 * Hd * 4 + 2 * Hd * 2)   # xg dbl-buf + bf16 h
        if rows <= 1024 and scratch <= budget:
            best = c
    return best


def _pick_vmem_limit(S, Bg, H, Hd, Lpad, Tc):
    est = (2 * S * Bg * H * 2                          # x block (bf16, dbl-buffered)
           + 2 * S * Bg * Lpad * 4                     # logits block (f32, dbl-buffered)
           + 2 * (2 * H * 4 * Hd * 2 + 2 * 4 * Hd * 4
                  + 2 * Hd * 4 * Hd * 2 + 2 * Hd * Lpad * 2)   # weights / biases
           + 2 * (2 * Tc * Bg) * 4 * Hd * 4            # xg double buffers (f32)
           + 2 * Tc * Bg * Hd * 2)                     # h scratch (bf16)
    try:
        cap = int(pltpu.get_tpu_info().vmem_capacity_bytes)
    except Exception:
        cap = 64 * 2 ** 20                             # conservative (v7x per-TC)
    ceiling = int(cap * 0.85)                          # ~56 MiB v7x, ~108 MiB v5e/v6e
    return int(min(max(2 * est, 32 * 2 ** 20), ceiling))


def lstm_head_pallas(hidden, params, *, num_groups=None, time_chunk=None):
    """hidden (B,S,H) f32 -> (logits (B,S,L) f32, flat padded logits (B*S,Lpad), (G,Bg))."""
    B, S, H = hidden.shape
    Hd = params["whh_f"].shape[0]
    L = params["wp_f"].shape[1]
    Lpad = _round_up(L, 128)

    if num_groups is None:
        num_groups = _default_num_groups(B)
    G = num_groups
    assert B % G == 0
    Bg = B // G

    if time_chunk is None:
        time_chunk = _pick_time_chunk(S, Bg, Hd)
    Tc = time_chunk
    assert S % Tc == 0, "time_chunk must divide the sequence length"
    unroll = True if Tc <= 8 else 4

    # (B,S,H) -> (G, S*Bg, H): time-major inside each group; bf16 MXU operand.
    x = (hidden.astype(jnp.float32)
         .reshape(G, Bg, S, H).transpose(0, 2, 1, 3).reshape(G, S * Bg, H)
         .astype(jnp.bfloat16))

    # bf16 MXU operands, f32 biases; projection weight lane-padded to Lpad.
    wih_f = params["wih_f"].astype(jnp.bfloat16)
    wih_b = params["wih_b"].astype(jnp.bfloat16)
    b_f = params["b_f"].astype(jnp.float32)
    b_b = params["b_b"].astype(jnp.float32)
    whh_f = params["whh_f"].astype(jnp.bfloat16)
    whh_b = params["whh_b"].astype(jnp.bfloat16)
    wp_pad = jnp.zeros((2 * Hd, Lpad), jnp.float32)
    wp_pad = wp_pad.at[:Hd, :L].set(params["wp_f"])
    wp_pad = wp_pad.at[Hd:, :L].set(params["wp_b"])
    wp_pad = wp_pad.astype(jnp.bfloat16)

    vmem_limit = _pick_vmem_limit(S, Bg, H, Hd, Lpad, Tc)

    kernel = functools.partial(
        _bilstm_head_kernel, seq_len=S, group_batch=Bg, hidden_dim=Hd,
        time_chunk=Tc, unroll=unroll)

    logits_g = pl.pallas_call(
        kernel,
        out_shape=jax.ShapeDtypeStruct((G, S * Bg, Lpad), jnp.float32),
        grid=(G,),
        in_specs=[
            pl.BlockSpec((None, S * Bg, H), lambda g: (g, 0, 0)),   # x (group)
            pl.BlockSpec((H, 4 * Hd), lambda g: (0, 0)),            # W_ih fwd
            pl.BlockSpec((H, 4 * Hd), lambda g: (0, 0)),            # W_ih bwd
            pl.BlockSpec((1, 4 * Hd), lambda g: (0, 0)),            # bias fwd
            pl.BlockSpec((1, 4 * Hd), lambda g: (0, 0)),            # bias bwd
            pl.BlockSpec((Hd, 4 * Hd), lambda g: (0, 0)),           # W_hh fwd
            pl.BlockSpec((Hd, 4 * Hd), lambda g: (0, 0)),           # W_hh bwd
            pl.BlockSpec((2 * Hd, Lpad), lambda g: (0, 0)),         # W_proj padded
        ],
        out_specs=pl.BlockSpec((None, S * Bg, Lpad), lambda g: (g, 0, 0)),
        scratch_shapes=[
            pltpu.VMEM((2 * Tc * Bg, 4 * Hd), jnp.float32),   # fwd gate pre-acts (dbl)
            pltpu.VMEM((2 * Tc * Bg, 4 * Hd), jnp.float32),   # bwd gate pre-acts (dbl)
            pltpu.VMEM((Tc * Bg, Hd), jnp.bfloat16),          # fwd hidden (chunk, bf16)
            pltpu.VMEM((Tc * Bg, Hd), jnp.bfloat16),          # bwd hidden (chunk, bf16)
        ],
        compiler_params=pltpu.CompilerParams(
            dimension_semantics=("parallel",),
            vmem_limit_bytes=vmem_limit),
    )(x, wih_f, wih_b, b_f, b_b, whh_f, whh_b, wp_pad)

    logits = (logits_g.reshape(G, S, Bg, Lpad).transpose(0, 2, 1, 3)
              .reshape(B, S, Lpad)[..., :L])
    return logits, logits_g.reshape(G * S * Bg, Lpad), (G, Bg)


# ----------------------------------------------------------------------------
# Cross-entropy kernel (chunked rows, running sum/count accumulators)
# ----------------------------------------------------------------------------
def _cross_entropy_kernel(logits_ref, labels_ref, loss_ref, sum_ref, cnt_ref,
                          *, num_labels, ignore_index):
    i = pl.program_id(0)

    @pl.when(i == 0)
    def _init():
        sum_ref[...] = jnp.zeros_like(sum_ref)
        cnt_ref[...] = jnp.zeros_like(cnt_ref)

    logits = logits_ref[...]                               # (TR, Lpad) f32
    labels = labels_ref[...]                               # (TR, 1)   i32
    tr, lpad = logits.shape
    cols = jax.lax.broadcasted_iota(jnp.int32, (tr, lpad), 1)
    col_ok = cols < num_labels                             # mask lane padding
    z = jnp.where(col_ok, logits, jnp.float32(-1e30))
    m = jnp.max(z, axis=-1, keepdims=True)
    lse = m + jnp.log(jnp.sum(jnp.exp(z - m), axis=-1, keepdims=True))
    true_logit = jnp.sum(jnp.where(cols == labels, logits, 0.0),
                         axis=-1, keepdims=True)
    valid = (labels != ignore_index).astype(jnp.float32)   # ignore_index rows
    sum_ref[...] = sum_ref[...] + jnp.sum((lse - true_logit) * valid,
                                          keepdims=True)
    cnt_ref[...] = cnt_ref[...] + jnp.sum(valid, keepdims=True)

    @pl.when(i == pl.num_programs(0) - 1)
    def _finalize():
        loss_ref[...] = sum_ref[...] / jnp.maximum(cnt_ref[...], 1.0)


def _pick_row_chunk(n):
    for c in (4096, 2048, 1024, 512, 256, 128, 64, 32, 16, 8):
        if n % c == 0:
            return c
    return n


def cross_entropy_pallas(logits_pad, labels_flat, *, num_labels, ignore_index=-100):
    """logits_pad (N, Lpad) f32 (padded cols masked); labels_flat (N,) int."""
    N, Lpad = logits_pad.shape
    TR = _pick_row_chunk(N)
    labels2d = labels_flat.reshape(N, 1).astype(jnp.int32)

    loss = pl.pallas_call(
        functools.partial(_cross_entropy_kernel, num_labels=num_labels,
                          ignore_index=ignore_index),
        out_shape=jax.ShapeDtypeStruct((1, 1), jnp.float32),
        grid=(N // TR,),
        in_specs=[pl.BlockSpec((TR, Lpad), lambda i: (i, 0)),
                  pl.BlockSpec((TR, 1), lambda i: (i, 0))],
        out_specs=pl.BlockSpec((1, 1), lambda i: (0, 0)),
        scratch_shapes=[pltpu.VMEM((1, 1), jnp.float32),      # loss sum
                        pltpu.VMEM((1, 1), jnp.float32)],     # valid-token count
        compiler_params=pltpu.CompilerParams(
            dimension_semantics=("arbitrary",)),
    )(logits_pad.astype(jnp.float32), labels2d)
    return loss[0, 0]


# ----------------------------------------------------------------------------
# Module forward
# ----------------------------------------------------------------------------
def mistral_for_pii_forward(params, input_ids, attention_mask, labels=None,
                            *, num_groups=None, time_chunk=None):
    # TODO(synk): deterministic embedding encoder stands in for the Mistral backbone.
    hidden = params["embedding"][input_ids] * attention_mask[..., None].astype(jnp.float32)

    logits, logits_flat_pad, (G, Bg) = lstm_head_pallas(
        hidden.astype(jnp.float32), params,
        num_groups=num_groups, time_chunk=time_chunk)

    loss = None
    if labels is not None:
        B, S, L = logits.shape
        # Reorder labels to the kernel's (group, time, batch-in-group) row order;
        # the mean CE is permutation invariant so this matches PyTorch's view(-1).
        labels_k = labels.reshape(G, Bg, S).transpose(0, 2, 1).reshape(-1)
        loss = cross_entropy_pallas(logits_flat_pad, labels_k, num_labels=L)
    return loss, logits


# ----------------------------------------------------------------------------
# Pure-JAX reference (correctness check only)
# ----------------------------------------------------------------------------
def _lstm_dir_ref(x_tm, wih, whh, b, hd):
    def step(carry, x_t):
        h, c = carry
        g = x_t @ wih + h @ whh + b
        i = jax.nn.sigmoid(g[:, :hd])
        f = jax.nn.sigmoid(g[:, hd:2 * hd])
        gg = jnp.tanh(g[:, 2 * hd:3 * hd])
        o = jax.nn.sigmoid(g[:, 3 * hd:])
        c = f * c + i * gg
        h = o * jnp.tanh(c)
        return (h, c), h
    b_sz = x_tm.shape[1]
    h0 = jnp.zeros((b_sz, hd), jnp.float32)
    (_, _), hs = jax.lax.scan(step, (h0, h0), x_tm)
    return hs


def forward_ref(params, input_ids, attention_mask, labels, ignore_index=-100):
    hidden = params["embedding"][input_ids] * attention_mask[..., None].astype(jnp.float32)
    hd = params["whh_f"].shape[0]
    x_tm = jnp.transpose(hidden, (1, 0, 2)).astype(jnp.float32)
    hf = _lstm_dir_ref(x_tm, params["wih_f"], params["whh_f"], params["b_f"], hd)
    hb = _lstm_dir_ref(x_tm[::-1], params["wih_b"], params["whh_b"], params["b_b"], hd)[::-1]
    logits_tm = hf @ params["wp_f"] + hb @ params["wp_b"]
    logits = jnp.transpose(logits_tm, (1, 0, 2))
    L = logits.shape[-1]
    logp = jax.nn.log_softmax(logits.reshape(-1, L), axis=-1)
    lab = labels.reshape(-1)
    valid = lab != ignore_index
    safe = jnp.where(valid, lab, 0)
    tl = jnp.take_along_axis(logp, safe[:, None], axis=1)[:, 0]
    loss = -jnp.sum(jnp.where(valid, tl, 0.0)) / jnp.maximum(jnp.sum(valid), 1)
    return loss, logits


# ----------------------------------------------------------------------------
if __name__ == "__main__":
    B, S, H, L = 2, 8, 32, 9         # batch, seq, hidden_size, num_labels
    Hd = H // 2                      # LSTM hidden_dim = hidden_size // 2
    VOCAB = 64

    key = jax.random.PRNGKey(0)
    ks = jax.random.split(key, 12)
    std = 1.0 / (Hd ** 0.5)
    u = lambda k, shape: jax.random.uniform(k, shape, jnp.float32, -std, std)

    params = {
        "embedding": jax.random.normal(ks[0], (VOCAB, H), jnp.float32) * 0.02,
        # W_ih stored transposed as (H, 4*Hd); W_hh as (Hd, 4*Hd); bias = b_ih + b_hh
        "wih_f": u(ks[1], (H, 4 * Hd)),
        "whh_f": u(ks[2], (Hd, 4 * Hd)),
        "b_f": u(ks[3], (1, 4 * Hd)) + u(ks[4], (1, 4 * Hd)),
        "wih_b": u(ks[5], (H, 4 * Hd)),
        "whh_b": u(ks[6], (Hd, 4 * Hd)),
        "b_b": u(ks[7], (1, 4 * Hd)) + u(ks[8], (1, 4 * Hd)),
    }
    # post_projection weight (num_labels, 2*Hd) stored transposed, split per direction.
    wp = u(ks[9], (2 * Hd, L))
    params["wp_f"] = wp[:Hd]
    params["wp_b"] = wp[Hd:]

    input_ids = jax.random.randint(ks[10], (B, S), 0, VOCAB)
    attention_mask = jnp.ones((B, S), jnp.int32)
    labels = jax.random.randint(ks[11], (B, S), 0, L)
    labels = labels.at[0, 0].set(-100)     # exercise CrossEntropyLoss ignore_index

    loss, logits = mistral_for_pii_forward(params, input_ids, attention_mask,
                                           labels, time_chunk=4)
    jax.block_until_ready((loss, logits))

    ref_loss, ref_logits = forward_ref(params, input_ids, attention_mask, labels)
    assert bool(jnp.all(jnp.isfinite(logits))) and bool(jnp.isfinite(loss))
    assert jnp.allclose(logits, ref_logits, atol=3e-2, rtol=3e-2), \
        float(jnp.max(jnp.abs(logits - ref_logits)))
    assert jnp.allclose(loss, ref_loss, atol=3e-2, rtol=3e-2), \
        (float(loss), float(ref_loss))

    # Default heuristics: single group (non-v7x chips), time_chunk = S (NC == 1 path).
    _, logits1 = mistral_for_pii_forward(params, input_ids, attention_mask, None)
    jax.block_until_ready(logits1)
    assert jnp.allclose(logits1, ref_logits, atol=3e-2, rtol=3e-2)

    # Explicit 2-group path: exercises the "parallel" grid axis and NC = 4 chunking.
    _, logits2 = mistral_for_pii_forward(params, input_ids, attention_mask, None,
                                         num_groups=2, time_chunk=2)
    jax.block_until_ready(logits2)
    assert jnp.allclose(logits2, ref_logits, atol=3e-2, rtol=3e-2)

    print("KERNEL_OK")
</pallas_src>

<mosaic_0001>
module attributes {stable_mosaic.version = 11 : i64} {
  func.func @_bilstm_head_kernel(%arg0: i32, %arg1: memref<1x16x32xbf16, #tpu.memory_space<vmem>>, %arg2: memref<32x64xbf16, #tpu.memory_space<vmem>>, %arg3: memref<32x64xbf16, #tpu.memory_space<vmem>>, %arg4: memref<1x64xf32, #tpu.memory_space<vmem>>, %arg5: memref<1x64xf32, #tpu.memory_space<vmem>>, %arg6: memref<16x64xbf16, #tpu.memory_space<vmem>>, %arg7: memref<16x64xbf16, #tpu.memory_space<vmem>>, %arg8: memref<32x128xbf16, #tpu.memory_space<vmem>>, %arg9: memref<1x16x128xf32, #tpu.memory_space<vmem>>, %arg10: memref<16x64xf32, #tpu.memory_space<vmem>>, %arg11: memref<16x64xf32, #tpu.memory_space<vmem>>, %arg12: memref<8x16xbf16, #tpu.memory_space<vmem>>, %arg13: memref<8x16xbf16, #tpu.memory_space<vmem>>) attributes {dimension_semantics = [#tpu.dimension_semantics<parallel>], iteration_bounds = array<i64: 1>, scalar_prefetch = 0 : i64, scratch_operands = 4 : i64, tpu.core_type = #tpu.core_type<tc>, window_params = [{transform_indices = @transform_0, window_bounds = array<i64: 1, 16, 32>}, {pipeline_mode = #tpu.pipeline_mode<synchronous>, transform_indices = @transform_1, window_bounds = array<i64: 32, 64>}, {pipeline_mode = #tpu.pipeline_mode<synchronous>, transform_indices = @transform_2, window_bounds = array<i64: 32, 64>}, {pipeline_mode = #tpu.pipeline_mode<synchronous>, transform_indices = @transform_3, window_bounds = array<i64: 1, 64>}, {pipeline_mode = #tpu.pipeline_mode<synchronous>, transform_indices = @transform_4, window_bounds = array<i64: 1, 64>}, {pipeline_mode = #tpu.pipeline_mode<synchronous>, transform_indices = @transform_5, window_bounds = array<i64: 16, 64>}, {pipeline_mode = #tpu.pipeline_mode<synchronous>, transform_indices = @transform_6, window_bounds = array<i64: 16, 64>}, {pipeline_mode = #tpu.pipeline_mode<synchronous>, transform_indices = @transform_7, window_bounds = array<i64: 32, 128>}, {transform_indices = @transform_8, window_bounds = array<i64: 1, 16, 128>}]} {
    %c0 = arith.constant 0 : index
    %c0_0 = arith.constant 0 : index
    %0 = vector.load %arg2[%c0, %c0_0] : memref<32x64xbf16, #tpu.memory_space<vmem>>, vector<32x64xbf16>
    %c0_1 = arith.constant 0 : index
    %c0_2 = arith.constant 0 : index
    %1 = vector.load %arg3[%c0_1, %c0_2] : memref<32x64xbf16, #tpu.memory_space<vmem>>, vector<32x64xbf16>
    %c0_3 = arith.constant 0 : index
    %c0_4 = arith.constant 0 : index
    %2 = vector.load %arg4[%c0_3, %c0_4] : memref<1x64xf32, #tpu.memory_space<vmem>>, vector<1x64xf32>
    %c0_5 = arith.constant 0 : index
    %c0_6 = arith.constant 0 : index
    %3 = vector.load %arg5[%c0_5, %c0_6] : memref<1x64xf32, #tpu.memory_space<vmem>>, vector<1x64xf32>
    %c0_7 = arith.constant 0 : index
    %c0_8 = arith.constant 0 : index
    %4 = vector.load %arg6[%c0_7, %c0_8] : memref<16x64xbf16, #tpu.memory_space<vmem>>, vector<16x64xbf16>
    %c0_9 = arith.constant 0 : index
    %c0_10 = arith.constant 0 : index
    %5 = vector.load %arg7[%c0_9, %c0_10] : memref<16x64xbf16, #tpu.memory_space<vmem>>, vector<16x64xbf16>
    %c0_11 = arith.constant 0 : index
    %c0_12 = arith.constant 0 : index
    %6 = vector.load %arg8[%c0_11, %c0_12] : memref<32x128xbf16, #tpu.memory_space<vmem>>, vector<16x128xbf16>
    %c16 = arith.constant 16 : index
    %c0_13 = arith.constant 0 : index
    %7 = vector.load %arg8[%c16, %c0_13] : memref<32x128xbf16, #tpu.memory_space<vmem>>, vector<16x128xbf16>
    %c0_14 = arith.constant 0 : index
    %c0_15 = arith.constant 0 : index
    %c0_16 = arith.constant 0 : index
    %8 = vector.load %arg1[%c0_14, %c0_15, %c0_16] : memref<1x16x32xbf16, #tpu.memory_space<vmem>>, vector<1x8x32xbf16>
    %9 = vector.shape_cast %8 : vector<1x8x32xbf16> to vector<8x32xbf16>
    %cst = arith.constant dense<0.000000e+00> : vector<8x64xf32>
    %10 = tpu.matmul %9, %0, %cst {dimension_numbers = #tpu.dot_dimension_numbers<[1], [0], [0], [1], [0, 0, 1, 1], [], []>} : vector<8x32xbf16>, vector<32x64xbf16>, vector<8x64xf32> -> vector<8x64xf32>
    %11 = vector.broadcast %2 : vector<1x64xf32> to vector<8x64xf32>
    %12 = arith.addf %10, %11 : vector<8x64xf32>
    %c0_17 = arith.constant 0 : index
    %c0_18 = arith.constant 0 : index
    %13 = vector.load %arg10[%c0_17, %c0_18] : memref<16x64xf32, #tpu.memory_space<vmem>>, vector<8x64xf32>
    tpu.vector_store %arg10[%c0_17, %c0_18], %12 {strides = array<i32>} : memref<16x64xf32, #tpu.memory_space<vmem>>, vector<8x64xf32>,
    %c0_19 = arith.constant 0 : index
    %c8 = arith.constant 8 : index
    %c0_20 = arith.constant 0 : index
    %14 = vector.load %arg1[%c0_19, %c8, %c0_20] : memref<1x16x32xbf16, #tpu.memory_space<vmem>>, vector<1x8x32xbf16>
    %15 = vector.shape_cast %14 : vector<1x8x32xbf16> to vector<8x32xbf16>
    %cst_21 = arith.constant dense<0.000000e+00> : vector<8x64xf32>
    %16 = tpu.matmul %15, %1, %cst_21 {dimension_numbers = #tpu.dot_dimension_numbers<[1], [0], [0], [1], [0, 0, 1, 1], [], []>} : vector<8x32xbf16>, vector<32x64xbf16>, vector<8x64xf32> -> vector<8x64xf32>
    %17 = vector.broadcast %3 : vector<1x64xf32> to vector<8x64xf32>
    %18 = arith.addf %16, %17 : vector<8x64xf32>
    %c0_22 = arith.constant 0 : index
    %c0_23 = arith.constant 0 : index
    %19 = vector.load %arg11[%c0_22, %c0_23] : memref<16x64xf32, #tpu.memory_space<vmem>>, vector<8x64xf32>
    tpu.vector_store %arg11[%c0_22, %c0_23], %18 {strides = array<i32>} : memref<16x64xf32, #tpu.memory_space<vmem>>, vector<8x64xf32>,
    %cst_24 = arith.constant 0.000000e+00 : bf16
    %20 = vector.broadcast %cst_24 : bf16 to vector<2x16xbf16>
    %cst_25 = arith.constant 0.000000e+00 : f32
    %21 = vector.broadcast %cst_25 : f32 to vector<2x16xf32>
    %c0_i32 = arith.constant 0 : i32
    %c1_i32 = arith.constant 1 : i32
    %22 = arith.andi %c0_i32, %c1_i32 : i32
    %c1_i32_26 = arith.constant 1 : i32
    %23 = arith.subi %c1_i32_26, %22 : i32
    %c1_i32_27 = arith.constant 1 : i32
    %24 = arith.subi %c1_i32_27, %c0_i32 : i32
    %c0_i32_28 = arith.constant 0 : i32
    %cst_29 = arith.constant dense<0.000000e+00> : vector<2x64xf32>
    %25 = tpu.matmul %20, %4, %cst_29 {dimension_numbers = #tpu.dot_dimension_numbers<[1], [0], [0], [1], [0, 0, 1, 1], [], []>} : vector<2x16xbf16>, vector<16x64xbf16>, vector<2x64xf32> -> vector<2x64xf32>
    %cst_30 = arith.constant dense<0.000000e+00> : vector<2x64xf32>
    %26 = tpu.matmul %20, %5, %cst_30 {dimension_numbers = #tpu.dot_dimension_numbers<[1], [0], [0], [1], [0, 0, 1, 1], [], []>} : vector<2x16xbf16>, vector<16x64xbf16>, vector<2x64xf32> -> vector<2x64xf32>
    %c1_i32_31 = arith.constant 1 : i32
    %27 = arith.addi %c0_i32, %c1_i32_31 : i32
    %c8_i32 = arith.constant 8 : i32
    %28 = arith.muli %27, %c8_i32 : i32
    %c2_i32 = arith.constant 2 : i32
    %29 = arith.muli %c0_i32_28, %c2_i32 : i32
    %30 = arith.addi %28, %29 : i32
    %c0_32 = arith.constant 0 : index
    %31 = arith.index_cast %30 : i32 to index
    %c0_33 = arith.constant 0 : index
    %32 = vector.load %arg1[%c0_32, %31, %c0_33] : memref<1x16x32xbf16, #tpu.memory_space<vmem>>, vector<1x2x32xbf16>
    %33 = vector.shape_cast %32 : vector<1x2x32xbf16> to vector<2x32xbf16>
    %cst_34 = arith.constant dense<0.000000e+00> : vector<2x64xf32>
    %34 = tpu.matmul %33, %0, %cst_34 {dimension_numbers = #tpu.dot_dimension_numbers<[1], [0], [0], [1], [0, 0, 1, 1], [], []>} : vector<2x32xbf16>, vector<32x64xbf16>, vector<2x64xf32> -> vector<2x64xf32>
    %35 = vector.broadcast %2 : vector<1x64xf32> to vector<2x64xf32>
    %36 = arith.addf %34, %35 : vector<2x64xf32>
    %c8_i32_35 = arith.constant 8 : i32
    %37 = arith.muli %23, %c8_i32_35 : i32
    %c2_i32_36 = arith.constant 2 : i32
    %38 = arith.muli %c0_i32_28, %c2_i32_36 : i32
    %39 = arith.addi %37, %38 : i32
    %40 = arith.index_cast %39 : i32 to index
    %c0_37 = arith.constant 0 : index
    %41 = vector.load %arg10[%40, %c0_37] : memref<16x64xf32, #tpu.memory_space<vmem>>, vector<2x64xf32>
    tpu.vector_store %arg10[%40, %c0_37], %36 {strides = array<i32>} : memref<16x64xf32, #tpu.memory_space<vmem>>, vector<2x64xf32>,
    %c1_i32_38 = arith.constant 1 : i32
    %42 = arith.subi %24, %c1_i32_38 : i32
    %c8_i32_39 = arith.constant 8 : i32
    %43 = arith.muli %42, %c8_i32_39 : i32
    %c3_i32 = arith.constant 3 : i32
    %44 = arith.subi %c3_i32, %c0_i32_28 : i32
    %c2_i32_40 = arith.constant 2 : i32
    %45 = arith.muli %44, %c2_i32_40 : i32
    %46 = arith.addi %43, %45 : i32
    %c0_41 = arith.constant 0 : index
    %47 = arith.index_cast %46 : i32 to index
    %c0_42 = arith.constant 0 : index
    %48 = vector.load %arg1[%c0_41, %47, %c0_42] : memref<1x16x32xbf16, #tpu.memory_space<vmem>>, vector<1x2x32xbf16>
    %49 = vector.shape_cast %48 : vector<1x2x32xbf16> to vector<2x32xbf16>
    %cst_43 = arith.constant dense<0.000000e+00> : vector<2x64xf32>
    %50 = tpu.matmul %49, %1, %cst_43 {dimension_numbers = #tpu.dot_dimension_numbers<[1], [0], [0], [1], [0, 0, 1, 1], [], []>} : vector<2x32xbf16>, vector<32x64xbf16>, vector<2x64xf32> -> vector<2x64xf32>
    %51 = vector.broadcast %3 : vector<1x64xf32> to vector<2x64xf32>
    %52 = arith.addf %50, %51 : vector<2x64xf32>
    %c8_i32_44 = arith.constant 8 : i32
    %53 = arith.muli %23, %c8_i32_44 : i32
    %c3_i32_45 = arith.constant 3 : i32
    %54 = arith.subi %c3_i32_45, %c0_i32_28 : i32
    %c2_i32_46 = arith.constant 2 : i32
    %55 = arith.muli %54, %c2_i32_46 : i32
    %56 = arith.addi %53, %55 : i32
    %57 = arith.index_cast %56 : i32 to index
    %c0_47 = arith.constant 0 : index
    %58 = vector.load %arg11[%57, %c0_47] : memref<16x64xf32, #tpu.memory_space<vmem>>, vector<2x64xf32>
    tpu.vector_store %arg11[%57, %c0_47], %52 {strides = array<i32>} : memref<16x64xf32, #tpu.memory_space<vmem>>, vector<2x64xf32>,
    %c8_i32_48 = arith.constant 8 : i32
    %59 = arith.muli %22, %c8_i32_48 : i32
    %c2_i32_49 = arith.constant 2 : i32
    %60 = arith.muli %c0_i32_28, %c2_i32_49 : i32
    %61 = arith.addi %59, %60 : i32
    %62 = arith.index_cast %61 : i32 to index
    %c0_50 = arith.constant 0 : index
    %63 = vector.load %arg10[%62, %c0_50] : memref<16x64xf32, #tpu.memory_space<vmem>>, vector<2x64xf32>
    %64 = arith.addf %63, %25 : vector<2x64xf32>
    %c8_i32_51 = arith.constant 8 : i32
    %65 = arith.muli %22, %c8_i32_51 : i32
    %c3_i32_52 = arith.constant 3 : i32
    %66 = arith.subi %c3_i32_52, %c0_i32_28 : i32
    %c2_i32_53 = arith.constant 2 : i32
    %67 = arith.muli %66, %c2_i32_53 : i32
    %68 = arith.addi %65, %67 : i32
    %69 = arith.index_cast %68 : i32 to index
    %c0_54 = arith.constant 0 : index
    %70 = vector.load %arg11[%69, %c0_54] : memref<16x64xf32, #tpu.memory_space<vmem>>, vector<2x64xf32>
    %71 = arith.addf %70, %26 : vector<2x64xf32>
    %72 = vector.extract_strided_slice %64 {offsets = [0, 0], sizes = [2, 16], strides = [1, 1]} : vector<2x64xf32> to vector<2x16xf32>
    %cst_55 = arith.constant 5.000000e-01 : f32
    %73 = vector.broadcast %cst_55 : f32 to vector<2x16xf32>
    %74 = arith.mulf %73, %72 : vector<2x16xf32>
    %75 = math.tanh %74 : vector<2x16xf32>
    %cst_56 = arith.constant 5.000000e-01 : f32
    %76 = vector.broadcast %cst_56 : f32 to vector<2x16xf32>
    %77 = arith.mulf %76, %75 : vector<2x16xf32>
    %cst_57 = arith.constant 5.000000e-01 : f32
    %78 = vector.broadcast %cst_57 : f32 to vector<2x16xf32>
    %79 = arith.addf %77, %78 : vector<2x16xf32>
    %80 = vector.extract_strided_slice %64 {offsets = [0, 16], sizes = [2, 16], strides = [1, 1]} : vector<2x64xf32> to vector<2x16xf32>
    %cst_58 = arith.constant 5.000000e-01 : f32
    %81 = vector.broadcast %cst_58 : f32 to vector<2x16xf32>
    %82 = arith.mulf %81, %80 : vector<2x16xf32>
    %83 = math.tanh %82 : vector<2x16xf32>
    %cst_59 = arith.constant 5.000000e-01 : f32
    %84 = vector.broadcast %cst_59 : f32 to vector<2x16xf32>
    %85 = arith.mulf %84, %83 : vector<2x16xf32>
    %cst_60 = arith.constant 5.000000e-01 : f32
    %86 = vector.broadcast %cst_60 : f32 to vector<2x16xf32>
    %87 = arith.addf %85, %86 : vector<2x16xf32>
    %88 = vector.extract_strided_slice %64 {offsets = [0, 32], sizes = [2, 16], strides = [1, 1]} : vector<2x64xf32> to vector<2x16xf32>
    %89 = math.tanh %88 : vector<2x16xf32>
    %90 = vector.extract_strided_slice %64 {offsets = [0, 48], sizes = [2, 16], strides = [1, 1]} : vector<2x64xf32> to vector<2x16xf32>
    %cst_61 = arith.constant 5.000000e-01 : f32
    %91 = vector.broadcast %cst_61 : f32 to vector<2x16xf32>
    %92 = arith.mulf %91, %90 : vector<2x16xf32>
    %93 = math.tanh %92 : vector<2x16xf32>
    %cst_62 = arith.constant 5.000000e-01 : f32
    %94 = vector.broadcast %cst_62 : f32 to vector<2x16xf32>
    %95 = arith.mulf %94, %93 : vector<2x16xf32>
    %cst_63 = arith.constant 5.000000e-01 : f32
    %96 = vector.broadcast %cst_63 : f32 to vector<2x16xf32>
    %97 = arith.addf %95, %96 : vector<2x16xf32>
    %98 = arith.mulf %87, %21 : vector<2x16xf32>
    %99 = arith.mulf %79, %89 : vector<2x16xf32>
    %100 = arith.addf %98, %99 : vector<2x16xf32>
    %101 = math.tanh %100 : vector<2x16xf32>
    %102 = arith.mulf %97, %101 : vector<2x16xf32>
    %103 = arith.truncf %102 : vector<2x16xf32> to vector<2x16xbf16>
    %104 = vector.extract_strided_slice %71 {offsets = [0, 0], sizes = [2, 16], strides = [1, 1]} : vector<2x64xf32> to vector<2x16xf32>
    %cst_64 = arith.constant 5.000000e-01 : f32
    %105 = vector.broadcast %cst_64 : f32 to vector<2x16xf32>
    %106 = arith.mulf %105, %104 : vector<2x16xf32>
    %107 = math.tanh %106 : vector<2x16xf32>
    %cst_65 = arith.constant 5.000000e-01 : f32
    %108 = vector.broadcast %cst_65 : f32 to vector<2x16xf32>
    %109 = arith.mulf %108, %107 : vector<2x16xf32>
    %cst_66 = arith.constant 5.000000e-01 : f32
    %110 = vector.broadcast %cst_66 : f32 to vector<2x16xf32>
    %111 = arith.addf %109, %110 : vector<2x16xf32>
    %112 = vector.extract_strided_slice %71 {offsets = [0, 16], sizes = [2, 16], strides = [1, 1]} : vector<2x64xf32> to vector<2x16xf32>
    %cst_67 = arith.constant 5.000000e-01 : f32
    %113 = vector.broadcast %cst_67 : f32 to vector<2x16xf32>
    %114 = arith.mulf %113, %112 : vector<2x16xf32>
    %115 = math.tanh %114 : vector<2x16xf32>
    %cst_68 = arith.constant 5.000000e-01 : f32
    %116 = vector.broadcast %cst_68 : f32 to vector<2x16xf32>
    %117 = arith.mulf %116, %115 : vector<2x16xf32>
    %cst_69 = arith.constant 5.000000e-01 : f32
    %118 = vector.broadcast %cst_69 : f32 to vector<2x16xf32>
    %119 = arith.addf %117, %118 : vector<2x16xf32>
    %120 = vector.extract_strided_slice %71 {offsets = [0, 32], sizes = [2, 16], strides = [1, 1]} : vector<2x64xf32> to vector<2x16xf32>
    %121 = math.tanh %120 : vector<2x16xf32>
    %122 = vector.extract_strided_slice %71 {offsets = [0, 48], sizes = [2, 16], strides = [1, 1]} : vector<2x64xf32> to vector<2x16xf32>
    %cst_70 = arith.constant 5.000000e-01 : f32
    %123 = vector.broadcast %cst_70 : f32 to vector<2x16xf32>
    %124 = arith.mulf %123, %122 : vector<2x16xf32>
    %125 = math.tanh %124 : vector<2x16xf32>
    %cst_71 = arith.constant 5.000000e-01 : f32
    %126 = vector.broadcast %cst_71 : f32 to vector<2x16xf32>
    %127 = arith.mulf %126, %125 : vector<2x16xf32>
    %cst_72 = arith.constant 5.000000e-01 : f32
    %128 = vector.broadcast %cst_72 : f32 to vector<2x16xf32>
    %129 = arith.addf %127, %128 : vector<2x16xf32>
    %130 = arith.mulf %119, %21 : vector<2x16xf32>
    %131 = arith.mulf %111, %121 : vector<2x16xf32>
    %132 = arith.addf %130, %131 : vector<2x16xf32>
    %133 = math.tanh %132 : vector<2x16xf32>
    %134 = arith.mulf %129, %133 : vector<2x16xf32>
    %135 = arith.truncf %134 : vector<2x16xf32> to vector<2x16xbf16>
    %c2_i32_73 = arith.constant 2 : i32
    %136 = arith.muli %c0_i32_28, %c2_i32_73 : i32
    %137 = arith.index_cast %136 : i32 to index
    %c0_74 = arith.constant 0 : index
    %138 = vector.load %arg12[%137, %c0_74] : memref<8x16xbf16, #tpu.memory_space<vmem>>, vector<2x16xbf16>
    tpu.vector_store %arg12[%137, %c0_74], %103 {strides = array<i32>} : memref<8x16xbf16, #tpu.memory_space<vmem>>, vector<2x16xbf16>,
    %c3_i32_75 = arith.constant 3 : i32
    %139 = arith.subi %c3_i32_75, %c0_i32_28 : i32
    %c2_i32_76 = arith.constant 2 : i32
    %140 = arith.muli %139, %c2_i32_76 : i32
    %141 = arith.index_cast %140 : i32 to index
    %c0_77 = arith.constant 0 : index
    %142 = vector.load %arg13[%141, %c0_77] : memref<8x16xbf16, #tpu.memory_space<vmem>>, vector<2x16xbf16>
    tpu.vector_store %arg13[%141, %c0_77], %135 {strides = array<i32>} : memref<8x16xbf16, #tpu.memory_space<vmem>>, vector<2x16xbf16>,
    %c1_i32_78 = arith.constant 1 : i32
    %cst_79 = arith.constant dense<0.000000e+00> : vector<2x64xf32>
    %143 = tpu.matmul %103, %4, %cst_79 {dimension_numbers = #tpu.dot_dimension_numbers<[1], [0], [0], [1], [0, 0, 1, 1], [], []>} : vector<2x16xbf16>, vector<16x64xbf16>, vector<2x64xf32> -> vector<2x64xf32>
    %cst_80 = arith.constant dense<0.000000e+00> : vector<2x64xf32>
    %144 = tpu.matmul %135, %5, %cst_80 {dimension_numbers = #tpu.dot_dimension_numbers<[1], [0], [0], [1], [0, 0, 1, 1], [], []>} : vector<2x16xbf16>, vector<16x64xbf16>, vector<2x64xf32> -> vector<2x64xf32>
    %c1_i32_81 = arith.constant 1 : i32
    %145 = arith.addi %c0_i32, %c1_i32_81 : i32
    %c8_i32_82 = arith.constant 8 : i32
    %146 = arith.muli %145, %c8_i32_82 : i32
    %c2_i32_83 = arith.constant 2 : i32
    %147 = arith.muli %c1_i32_78, %c2_i32_83 : i32
    %148 = arith.addi %146, %147 : i32
    %c0_84 = arith.constant 0 : index
    %149 = arith.index_cast %148 : i32 to index
    %c0_85 = arith.constant 0 : index
    %150 = vector.load %arg1[%c0_84, %149, %c0_85] : memref<1x16x32xbf16, #tpu.memory_space<vmem>>, vector<1x2x32xbf16>
    %151 = vector.shape_cast %150 : vector<1x2x32xbf16> to vector<2x32xbf16>
    %cst_86 = arith.constant dense<0.000000e+00> : vector<2x64xf32>
    %152 = tpu.matmul %151, %0, %cst_86 {dimension_numbers = #tpu.dot_dimension_numbers<[1], [0], [0], [1], [0, 0, 1, 1], [], []>} : vector<2x32xbf16>, vector<32x64xbf16>, vector<2x64xf32> -> vector<2x64xf32>
    %153 = vector.broadcast %2 : vector<1x64xf32> to vector<2x64xf32>
    %154 = arith.addf %152, %153 : vector<2x64xf32>
    %c8_i32_87 = arith.constant 8 : i32
    %155 = arith.muli %23, %c8_i32_87 : i32
    %c2_i32_88 = arith.constant 2 : i32
    %156 = arith.muli %c1_i32_78, %c2_i32_88 : i32
    %157 = arith.addi %155, %156 : i32
    %158 = arith.index_cast %157 : i32 to index
    %c0_89 = arith.constant 0 : index
    %159 = vector.load %arg10[%158, %c0_89] : memref<16x64xf32, #tpu.memory_space<vmem>>, vector<2x64xf32>
    tpu.vector_store %arg10[%158, %c0_89], %154 {strides = array<i32>} : memref<16x64xf32, #tpu.memory_space<vmem>>, vector<2x64xf32>,
    %c1_i32_90 = arith.constant 1 : i32
    %160 = arith.subi %24, %c1_i32_90 : i32
    %c8_i32_91 = arith.constant 8 : i32
    %161 = arith.muli %160, %c8_i32_91 : i32
    %c3_i32_92 = arith.constant 3 : i32
    %162 = arith.subi %c3_i32_92, %c1_i32_78 : i32
    %c2_i32_93 = arith.constant 2 : i32
    %163 = arith.muli %162, %c2_i32_93 : i32
    %164 = arith.addi %161, %163 : i32
    %c0_94 = arith.constant 0 : index
    %165 = arith.index_cast %164 : i32 to index
    %c0_95 = arith.constant 0 : index
    %166 = vector.load %arg1[%c0_94, %165, %c0_95] : memref<1x16x32xbf16, #tpu.memory_space<vmem>>, vector<1x2x32xbf16>
    %167 = vector.shape_cast %166 : vector<1x2x32xbf16> to vector<2x32xbf16>
    %cst_96 = arith.constant dense<0.000000e+00> : vector<2x64xf32>
    %168 = tpu.matmul %167, %1, %cst_96 {dimension_numbers = #tpu.dot_dimension_numbers<[1], [0], [0], [1], [0, 0, 1, 1], [], []>} : vector<2x32xbf16>, vector<32x64xbf16>, vector<2x64xf32> -> vector<2x64xf32>
    %169 = vector.broadcast %3 : vector<1x64xf32> to vector<2x64xf32>
    %170 = arith.addf %168, %169 : vector<2x64xf32>
    %c8_i32_97 = arith.constant 8 : i32
    %171 = arith.muli %23, %c8_i32_97 : i32
    %c3_i32_98 = arith.constant 3 : i32
    %172 = arith.subi %c3_i32_98, %c1_i32_78 : i32
    %c2_i32_99 = arith.constant 2 : i32
    %173 = arith.muli %172, %c2_i32_99 : i32
    %174 = arith.addi %171, %173 : i32
    %175 = arith.index_cast %174 : i32 to index
    %c0_100 = arith.constant 0 : index
    %176 = vector.load %arg11[%175, %c0_100] : memref<16x64xf32, #tpu.memory_space<vmem>>, vector<2x64xf32>
    tpu.vector_store %arg11[%175, %c0_100], %170 {strides = array<i32>} : memref<16x64xf32, #tpu.memory_space<vmem>>, vector<2x64xf32>,
    %c8_i32_101 = arith.constant 8 : i32
    %177 = arith.muli %22, %c8_i32_101 : i32
    %c2_i32_102 = arith.constant 2 : i32
    %178 = arith.muli %c1_i32_78, %c2_i32_102 : i32
    %179 = arith.addi %177, %178 : i32
    %180 = arith.index_cast %179 : i32 to index
    %c0_103 = arith.constant 0 : index
    %181 = vector.load %arg10[%180, %c0_103] : memref<16x64xf32, #tpu.memory_space<vmem>>, vector<2x64xf32>
    %182 = arith.addf %181, %143 : vector<2x64xf32>
    %c8_i32_104 = arith.constant 8 : i32
    %183 = arith.muli %22, %c8_i32_104 : i32
    %c3_i32_105 = arith.constant 3 : i32
    %184 = arith.subi %c3_i32_105, %c1_i32_78 : i32
    %c2_i32_106 = arith.constant 2 : i32
    %185 = arith.muli %184, %c2_i32_106 : i32
    %186 = arith.addi %183, %185 : i32
    %187 = arith.index_cast %186 : i32 to index
    %c0_107 = arith.constant 0 : index
    %188 = vector.load %arg11[%187, %c0_107] : memref<16x64xf32, #tpu.memory_space<vmem>>, vector<2x64xf32>
    %189 = arith.addf %188, %144 : vector<2x64xf32>
    %190 = vector.extract_strided_slice %182 {offsets = [0, 0], sizes = [2, 16], strides = [1, 1]} : vector<2x64xf32> to vector<2x16xf32>
    %cst_108 = arith.constant 5.000000e-01 : f32
    %191 = vector.broadcast %cst_108 : f32 to vector<2x16xf32>
    %192 = arith.mulf %191, %190 : vector<2x16xf32>
    %193 = math.tanh %192 : vector<2x16xf32>
    %cst_109 = arith.constant 5.000000e-01 : f32
    %194 = vector.broadcast %cst_109 : f32 to vector<2x16xf32>
    %195 = arith.mulf %194, %193 : vector<2x16xf32>
    %cst_110 = arith.constant 5.000000e-01 : f32
    %196 = vector.broadcast %cst_110 : f32 to vector<2x16xf32>
    %197 = arith.addf %195, %196 : vector<2x16xf32>
    %198 = vector.extract_strided_slice %182 {offsets = [0, 16], sizes = [2, 16], strides = [1, 1]} : vector<2x64xf32> to vector<2x16xf32>
    %cst_111 = arith.constant 5.000000e-01 : f32
    %199 = vector.broadcast %cst_111 : f32 to vector<2x16xf32>
    %200 = arith.mulf %199, %198 : vector<2x16xf32>
    %201 = math.tanh %200 : vector<2x16xf32>
    %cst_112 = arith.constant 5.000000e-01 : f32
    %202 = vector.broadcast %cst_112 : f32 to vector<2x16xf32>
    %203 = arith.mulf %202, %201 : vector<2x16xf32>
    %cst_113 = arith.constant 5.000000e-01 : f32
    %204 = vector.broadcast %cst_113 : f32 to vector<2x16xf32>
    %205 = arith.addf %203, %204 : vector<2x16xf32>
    %206 = vector.extract_strided_slice %182 {offsets = [0, 32], sizes = [2, 16], strides = [1, 1]} : vector<2x64xf32> to vector<2x16xf32>
    %207 = math.tanh %206 : vector<2x16xf32>
    %208 = vector.extract_strided_slice %182 {offsets = [0, 48], sizes = [2, 16], strides = [1, 1]} : vector<2x64xf32> to vector<2x16xf32>
    %cst_114 = arith.constant 5.000000e-01 : f32
    %209 = vector.broadcast %cst_114 : f32 to vector<2x16xf32>
    %210 = arith.mulf %209, %208 : vector<2x16xf32>
    %211 = math.tanh %210 : vector<2x16xf32>
    %cst_115 = arith.constant 5.000000e-01 : f32
    %212 = vector.broadcast %cst_115 : f32 to vector<2x16xf32>
    %213 = arith.mulf %212, %211 : vector<2x16xf32>
    %cst_116 = arith.constant 5.000000e-01 : f32
    %214 = vector.broadcast %cst_116 : f32 to vector<2x16xf32>
    %215 = arith.addf %213, %214 : vector<2x16xf32>
    %216 = arith.mulf %205, %100 : vector<2x16xf32>
    %217 = arith.mulf %197, %207 : vector<2x16xf32>
    %218 = arith.addf %216, %217 : vector<2x16xf32>
    %219 = math.tanh %218 : vector<2x16xf32>
    %220 = arith.mulf %215, %219 : vector<2x16xf32>
    %221 = arith.truncf %220 : vector<2x16xf32> to vector<2x16xbf16>
    %222 = vector.extract_strided_slice %189 {offsets = [0, 0], sizes = [2, 16], strides = [1, 1]} : vector<2x64xf32> to vector<2x16xf32>
    %cst_117 = arith.constant 5.000000e-01 : f32
    %223 = vector.broadcast %cst_117 : f32 to vector<2x16xf32>
    %224 = arith.mulf %223, %222 : vector<2x16xf32>
    %225 = math.tanh %224 : vector<2x16xf32>
    %cst_118 = arith.constant 5.000000e-01 : f32
    %226 = vector.broadcast %cst_118 : f32 to vector<2x16xf32>
    %227 = arith.mulf %226, %225 : vector<2x16xf32>
    %cst_119 = arith.constant 5.000000e-01 : f32
    %228 = vector.broadcast %cst_119 : f32 to vector<2x16xf32>
    %229 = arith.addf %227, %228 : vector<2x16xf32>
    %230 = vector.extract_strided_slice %189 {offsets = [0, 16], sizes = [2, 16], strides = [1, 1]} : vector<2x64xf32> to vector<2x16xf32>
    %cst_120 = arith.constant 5.000000e-01 : f32
    %231 = vector.broadcast %cst_120 : f32 to vector<2x16xf32>
    %232 = arith.mulf %231, %230 : vector<2x16xf32>
    %233 = math.tanh %232 : vector<2x16xf32>
    %cst_121 = arith.constant 5.000000e-01 : f32
    %234 = vector.broadcast %cst_121 : f32 to vector<2x16xf32>
    %235 = arith.mulf %234, %233 : vector<2x16xf32>
    %cst_122 = arith.constant 5.000000e-01 : f32
    %236 = vector.broadcast %cst_122 : f32 to vector<2x16xf32>
    %237 = arith.addf %235, %236 : vector<2x16xf32>
    %238 = vector.extract_strided_slice %189 {offsets = [0, 32], sizes = [2, 16], strides = [1, 1]} : vector<2x64xf32> to vector<2x16xf32>
    %239 = math.tanh %238 : vector<2x16xf32>
    %240 = vector.extract_strided_slice %189 {offsets = [0, 48], sizes = [2, 16], strides = [1, 1]} : vector<2x64xf32> to vector<2x16xf32>
    %cst_123 = arith.constant 5.000000e-01 : f32
    %241 = vector.broadcast %cst_123 : f32 to vector<2x16xf32>
    %242 = arith.mulf %241, %240 : vector<2x16xf32>
    %243 = math.tanh %242 : vector<2x16xf32>
    %cst_124 = arith.constant 5.000000e-01 : f32
    %244 = vector.broadcast %cst_124 : f32 to vector<2x16xf32>
    %245 = arith.mulf %244, %243 : vector<2x16xf32>
    %cst_125 = arith.constant 5.000000e-01 : f32
    %246 = vector.broadcast %cst_125 : f32 to vector<2x16xf32>
    %247 = arith.addf %245, %246 : vector<2x16xf32>
    %248 = arith.mulf %237, %132 : vector<2x16xf32>
    %249 = arith.mulf %229, %239 : vector<2x16xf32>
    %250 = arith.addf %248, %249 : vector<2x16xf32>
    %251 = math.tanh %250 : vector<2x16xf32>
    %252 = arith.mulf %247, %251 : vector<2x16xf32>
    %253 = arith.truncf %252 : vector<2x16xf32> to vector<2x16xbf16>
    %c2_i32_126 = arith.constant 2 : i32
    %254 = arith.muli %c1_i32_78, %c2_i32_126 : i32
    %255 = arith.index_cast %254 : i32 to index
    %c0_127 = arith.constant 0 : index
    %256 = vector.load %arg12[%255, %c0_127] : memref<8x16xbf16, #tpu.memory_space<vmem>>, vector<2x16xbf16>
    tpu.vector_store %arg12[%255, %c0_127], %221 {strides = array<i32>} : memref<8x16xbf16, #tpu.memory_space<vmem>>, vector<2x16xbf16>,
    %c3_i32_128 = arith.constant 3 : i32
    %257 = arith.subi %c3_i32_128, %c1_i32_78 : i32
    %c2_i32_129 = arith.constant 2 : i32
    %258 = arith.muli %257, %c2_i32_129 : i32
    %259 = arith.index_cast %258 : i32 to index
    %c0_130 = arith.constant 0 : index
    %260 = vector.load %arg13[%259, %c0_130] : memref<8x16xbf16, #tpu.memory_space<vmem>>, vector<2x16xbf16>
    tpu.vector_store %arg13[%259, %c0_130], %253 {strides = array<i32>} : memref<8x16xbf16, #tpu.memory_space<vmem>>, vector<2x16xbf16>,
    %c2_i32_131 = arith.constant 2 : i32
    %cst_132 = arith.constant dense<0.000000e+00> : vector<2x64xf32>
    %261 = tpu.matmul %221, %4, %cst_132 {dimension_numbers = #tpu.dot_dimension_numbers<[1], [0], [0], [1], [0, 0, 1, 1], [], []>} : vector<2x16xbf16>, vector<16x64xbf16>, vector<2x64xf32> -> vector<2x64xf32>
    %cst_133 = arith.constant dense<0.000000e+00> : vector<2x64xf32>
    %262 = tpu.matmul %253, %5, %cst_133 {dimension_numbers = #tpu.dot_dimension_numbers<[1], [0], [0], [1], [0, 0, 1, 1], [], []>} : vector<2x16xbf16>, vector<16x64xbf16>, vector<2x64xf32> -> vector<2x64xf32>
    %c1_i32_134 = arith.constant 1 : i32
    %263 = arith.addi %c0_i32, %c1_i32_134 : i32
    %c8_i32_135 = arith.constant 8 : i32
    %264 = arith.muli %263, %c8_i32_135 : i32
    %c2_i32_136 = arith.constant 2 : i32
    %265 = arith.muli %c2_i32_131, %c2_i32_136 : i32
    %266 = arith.addi %264, %265 : i32
    %c0_137 = arith.constant 0 : index
    %267 = arith.index_cast %266 : i32 to index
    %c0_138 = arith.constant 0 : index
    %268 = vector.load %arg1[%c0_137, %267, %c0_138] : memref<1x16x32xbf16, #tpu.memory_space<vmem>>, vector<1x2x32xbf16>
    %269 = vector.shape_cast %268 : vector<1x2x32xbf16> to vector<2x32xbf16>
    %cst_139 = arith.constant dense<0.000000e+00> : vector<2x64xf32>
    %270 = tpu.matmul %269, %0, %cst_139 {dimension_numbers = #tpu.dot_dimension_numbers<[1], [0], [0], [1], [0, 0, 1, 1], [], []>} : vector<2x32xbf16>, vector<32x64xbf16>, vector<2x64xf32> -> vector<2x64xf32>
    %271 = vector.broadcast %2 : vector<1x64xf32> to vector<2x64xf32>
    %272 = arith.addf %270, %271 : vector<2x64xf32>
    %c8_i32_140 = arith.constant 8 : i32
    %273 = arith.muli %23, %c8_i32_140 : i32
    %c2_i32_141 = arith.constant 2 : i32
    %274 = arith.muli %c2_i32_131, %c2_i32_141 : i32
    %275 = arith.addi %273, %274 : i32
    %276 = arith.index_cast %275 : i32 to index
    %c0_142 = arith.constant 0 : index
    %277 = vector.load %arg10[%276, %c0_142] : memref<16x64xf32, #tpu.memory_space<vmem>>, vector<2x64xf32>
    tpu.vector_store %arg10[%276, %c0_142], %272 {strides = array<i32>} : memref<16x64xf32, #tpu.memory_space<vmem>>, vector<2x64xf32>,
    %c1_i32_143 = arith.constant 1 : i32
    %278 = arith.subi %24, %c1_i32_143 : i32
    %c8_i32_144 = arith.constant 8 : i32
    %279 = arith.muli %278, %c8_i32_144 : i32
    %c3_i32_145 = arith.constant 3 : i32
    %280 = arith.subi %c3_i32_145, %c2_i32_131 : i32
    %c2_i32_146 = arith.constant 2 : i32
    %281 = arith.muli %280, %c2_i32_146 : i32
    %282 = arith.addi %279, %281 : i32
    %c0_147 = arith.constant 0 : index
    %283 = arith.index_cast %282 : i32 to index
    %c0_148 = arith.constant 0 : index
    %284 = vector.load %arg1[%c0_147, %283, %c0_148] : memref<1x16x32xbf16, #tpu.memory_space<vmem>>, vector<1x2x32xbf16>
    %285 = vector.shape_cast %284 : vector<1x2x32xbf16> to vector<2x32xbf16>
    %cst_149 = arith.constant dense<0.000000e+00> : vector<2x64xf32>
    %286 = tpu.matmul %285, %1, %cst_149 {dimension_numbers = #tpu.dot_dimension_numbers<[1], [0], [0], [1], [0, 0, 1, 1], [], []>} : vector<2x32xbf16>, vector<32x64xbf16>, vector<2x64xf32> -> vector<2x64xf32>
    %287 = vector.broadcast %3 : vector<1x64xf32> to vector<2x64xf32>
    %288 = arith.addf %286, %287 : vector<2x64xf32>
    %c8_i32_150 = arith.constant 8 : i32
    %289 = arith.muli %23, %c8_i32_150 : i32
    %c3_i32_151 = arith.constant 3 : i32
    %290 = arith.subi %c3_i32_151, %c2_i32_131 : i32
    %c2_i32_152 = arith.constant 2 : i32
    %291 = arith.muli %290, %c2_i32_152 : i32
    %292 = arith.addi %289, %291 : i32
    %293 = arith.index_cast %292 : i32 to index
    %c0_153 = arith.constant 0 : index
    %294 = vector.load %arg11[%293, %c0_153] : memref<16x64xf32, #tpu.memory_space<vmem>>, vector<2x64xf32>
    tpu.vector_store %arg11[%293, %c0_153], %288 {strides = array<i32>} : memref<16x64xf32, #tpu.memory_space<vmem>>, vector<2x64xf32>,
    %c8_i32_154 = arith.constant 8 : i32
    %295 = arith.muli %22, %c8_i32_154 : i32
    %c2_i32_155 = arith.constant 2 : i32
    %296 = arith.muli %c2_i32_131, %c2_i32_155 : i32
    %297 = arith.addi %295, %296 : i32
    %298 = arith.index_cast %297 : i32 to index
    %c0_156 = arith.constant 0 : index
    %299 = vector.load %arg10[%298, %c0_156] : memref<16x64xf32, #tpu.memory_space<vmem>>, vector<2x64xf32>
    %300 = arith.addf %299, %261 : vector<2x64xf32>
    %c8_i32_157 = arith.constant 8 : i32
    %301 = arith.muli %22, %c8_i32_157 : i32
    %c3_i32_158 = arith.constant 3 : i32
    %302 = arith.subi %c3_i32_158, %c2_i32_131 : i32
    %c2_i32_159 = arith.constant 2 : i32
    %303 = arith.muli %302, %c2_i32_159 : i32
    %304 = arith.addi %301, %303 : i32
    %305 = arith.index_cast %304 : i32 to index
    %c0_160 = arith.constant 0 : index
    %306 = vector.load %arg11[%305, %c0_160] : memref<16x64xf32, #tpu.memory_space<vmem>>, vector<2x64xf32>
    %307 = arith.addf %306, %262 : vector<2x64xf32>
    %308 = vector.extract_strided_slice %300 {offsets = [0, 0], sizes = [2, 16], strides = [1, 1]} : vector<2x64xf32> to vector<2x16xf32>
    %cst_161 = arith.constant 5.000000e-01 : f32
    %309 = vector.broadcast %cst_161 : f32 to vector<2x16xf32>
    %310 = arith.mulf %309, %308 : vector<2x16xf32>
    %311 = math.tanh %310 : vector<2x16xf32>
    %cst_162 = arith.constant 5.000000e-01 : f32
    %312 = vector.broadcast %cst_162 : f32 to vector<2x16xf32>
    %313 = arith.mulf %312, %311 : vector<2x16xf32>
    %cst_163 = arith.constant 5.000000e-01 : f32
    %314 = vector.broadcast %cst_163 : f32 to vector<2x16xf32>
    %315 = arith.addf %313, %314 : vector<2x16xf32>
    %316 = vector.extract_strided_slice %300 {offsets = [0, 16], sizes = [2, 16], strides = [1, 1]} : vector<2x64xf32> to vector<2x16xf32>
    %cst_164 = arith.constant 5.000000e-01 : f32
    %317 = vector.broadcast %cst_164 : f32 to vector<2x16xf32>
    %318 = arith.mulf %317, %316 : vector<2x16xf32>
    %319 = math.tanh %318 : vector<2x16xf32>
    %cst_165 = arith.constant 5.000000e-01 : f32
    %320 = vector.broadcast %cst_165 : f32 to vector<2x16xf32>
    %321 = arith.mulf %320, %319 : vector<2x16xf32>
    %cst_166 = arith.constant 5.000000e-01 : f32
    %322 = vector.broadcast %cst_166 : f32 to vector<2x16xf32>
    %323 = arith.addf %321, %322 : vector<2x16xf32>
    %324 = vector.extract_strided_slice %300 {offsets = [0, 32], sizes = [2, 16], strides = [1, 1]} : vector<2x64xf32> to vector<2x16xf32>
    %325 = math.tanh %324 : vector<2x16xf32>
    %326 = vector.extract_strided_slice %300 {offsets = [0, 48], sizes = [2, 16], strides = [1, 1]} : vector<2x64xf32> to vector<2x16xf32>
    %cst_167 = arith.constant 5.000000e-01 : f32
    %327 = vector.broadcast %cst_167 : f32 to vector<2x16xf32>
    %328 = arith.mulf %327, %326 : vector<2x16xf32>
    %329 = math.tanh %328 : vector<2x16xf32>
    %cst_168 = arith.constant 5.000000e-01 : f32
    %330 = vector.broadcast %cst_168 : f32 to vector<2x16xf32>
    %331 = arith.mulf %330, %329 : vector<2x16xf32>
    %cst_169 = arith.constant 5.000000e-01 : f32
    %332 = vector.broadcast %cst_169 : f32 to vector<2x16xf32>
    %333 = arith.addf %331, %332 : vector<2x16xf32>
    %334 = arith.mulf %323, %218 : vector<2x16xf32>
    %335 = arith.mulf %315, %325 : vector<2x16xf32>
    %336 = arith.addf %334, %335 : vector<2x16xf32>
    %337 = math.tanh %336 : vector<2x16xf32>
    %338 = arith.mulf %333, %337 : vector<2x16xf32>
    %339 = arith.truncf %338 : vector<2x16xf32> to vector<2x16xbf16>
    %340 = vector.extract_strided_slice %307 {offsets = [0, 0], sizes = [2, 16], strides = [1, 1]} : vector<2x64xf32> to vector<2x16xf32>
    %cst_170 = arith.constant 5.000000e-01 : f32
    %341 = vector.broadcast %cst_170 : f32 to vector<2x16xf32>
    %342 = arith.mulf %341, %340 : vector<2x16xf32>
    %343 = math.tanh %342 : vector<2x16xf32>
    %cst_171 = arith.constant 5.000000e-01 : f32
    %344 = vector.broadcast %cst_171 : f32 to vector<2x16xf32>
    %345 = arith.mulf %344, %343 : vector<2x16xf32>
    %cst_172 = arith.constant 5.000000e-01 : f32
    %346 = vector.broadcast %cst_172 : f32 to vector<2x16xf32>
    %347 = arith.addf %345, %346 : vector<2x16xf32>
    %348 = vector.extract_strided_slice %307 {offsets = [0, 16], sizes = [2, 16], strides = [1, 1]} : vector<2x64xf32> to vector<2x16xf32>
    %cst_173 = arith.constant 5.000000e-01 : f32
    %349 = vector.broadcast %cst_173 : f32 to vector<2x16xf32>
    %350 = arith.mulf %349, %348 : vector<2x16xf32>
    %351 = math.tanh %350 : vector<2x16xf32>
    %cst_174 = arith.constant 5.000000e-01 : f32
    %352 = vector.broadcast %cst_174 : f32 to vector<2x16xf32>
    %353 = arith.mulf %352, %351 : vector<2x16xf32>
    %cst_175 = arith.constant 5.000000e-01 : f32
    %354 = vector.broadcast %cst_175 : f32 to vector<2x16xf32>
    %355 = arith.addf %353, %354 : vector<2x16xf32>
    %356 = vector.extract_strided_slice %307 {offsets = [0, 32], sizes = [2, 16], strides = [1, 1]} : vector<2x64xf32> to vector<2x16xf32>
    %357 = math.tanh %356 : vector<2x16xf32>
    %358 = vector.extract_strided_slice %307 {offsets = [0, 48], sizes = [2, 16], strides = [1, 1]} : vector<2x64xf32> to vector<2x16xf32>
    %cst_176 = arith.constant 5.000000e-01 : f32
    %359 = vector.broadcast %cst_176 : f32 to vector<2x16xf32>
    %360 = arith.mulf %359, %358 : vector<2x16xf32>
    %361 = math.tanh %360 : vector<2x16xf32>
    %cst_177 = arith.constant 5.000000e-01 : f32
    %362 = vector.broadcast %cst_177 : f32 to vector<2x16xf32>
    %363 = arith.mulf %362, %361 : vector<2x16xf32>
    %cst_178 = arith.constant 5.000000e-01 : f32
    %364 = vector.broadcast %cst_178 : f32 to vector<2x16xf32>
    %365 = arith.addf %363, %364 : vector<2x16xf32>
    %366 = arith.mulf %355, %250 : vector<2x16xf32>
    %367 = arith.mulf %347, %357 : vector<2x16xf32>
    %368 = arith.addf %366, %367 : vector<2x16xf32>
    %369 = math.tanh %368 : vector<2x16xf32>
    %370 = arith.mulf %365, %369 : vector<2x16xf32>
    %371 = arith.truncf %370 : vector<2x16xf32> to vector<2x16xbf16>
    %c2_i32_179 = arith.constant 2 : i32
    %372 = arith.muli %c2_i32_131, %c2_i32_179 : i32
    %373 = arith.index_cast %372 : i32 to index
    %c0_180 = arith.constant 0 : index
    %374 = vector.load %arg12[%373, %c0_180] : memref<8x16xbf16, #tpu.memory_space<vmem>>, vector<2x16xbf16>
    tpu.vector_store %arg12[%373, %c0_180], %339 {strides = array<i32>} : memref<8x16xbf16, #tpu.memory_space<vmem>>, vector<2x16xbf16>,
    %c3_i32_181 = arith.constant 3 : i32
    %375 = arith.subi %c3_i32_181, %c2_i32_131 : i32
    %c2_i32_182 = arith.constant 2 : i32
    %376 = arith.muli %375, %c2_i32_182 : i32
    %377 = arith.index_cast %376 : i32 to index
    %c0_183 = arith.constant 0 : index
    %378 = vector.load %arg13[%377, %c0_183] : memref<8x16xbf16, #tpu.memory_space<vmem>>, vector<2x16xbf16>
    tpu.vector_store %arg13[%377, %c0_183], %371 {strides = array<i32>} : memref<8x16xbf16, #tpu.memory_space<vmem>>, vector<2x16xbf16>,
    %c3_i32_184 = arith.constant 3 : i32
    %cst_185 = arith.constant dense<0.000000e+00> : vector<2x64xf32>
    %379 = tpu.matmul %339, %4, %cst_185 {dimension_numbers = #tpu.dot_dimension_numbers<[1], [0], [0], [1], [0, 0, 1, 1], [], []>} : vector<2x16xbf16>, vector<16x64xbf16>, vector<2x64xf32> -> vector<2x64xf32>
    %cst_186 = arith.constant dense<0.000000e+00> : vector<2x64xf32>
    %380 = tpu.matmul %371, %5, %cst_186 {dimension_numbers = #tpu.dot_dimension_numbers<[1], [0], [0], [1], [0, 0, 1, 1], [], []>} : vector<2x16xbf16>, vector<16x64xbf16>, vector<2x64xf32> -> vector<2x64xf32>
    %c1_i32_187 = arith.constant 1 : i32
    %381 = arith.addi %c0_i32, %c1_i32_187 : i32
    %c8_i32_188 = arith.constant 8 : i32
    %382 = arith.muli %381, %c8_i32_188 : i32
    %c2_i32_189 = arith.constant 2 : i32
    %383 = arith.muli %c3_i32_184, %c2_i32_189 : i32
    %384 = arith.addi %382, %383 : i32
    %c0_190 = arith.constant 0 : index
    %385 = arith.index_cast %384 : i32 to index
    %c0_191 = arith.constant 0 : index
    %386 = vector.load %arg1[%c0_190, %385, %c0_191] : memref<1x16x32xbf16, #tpu.memory_space<vmem>>, vector<1x2x32xbf16>
    %387 = vector.shape_cast %386 : vector<1x2x32xbf16> to vector<2x32xbf16>
    %cst_192 = arith.constant dense<0.000000e+00> : vector<2x64xf32>
    %388 = tpu.matmul %387, %0, %cst_192 {dimension_numbers = #tpu.dot_dimension_numbers<[1], [0], [0], [1], [0, 0, 1, 1], [], []>} : vector<2x32xbf16>, vector<32x64xbf16>, vector<2x64xf32> -> vector<2x64xf32>
    %389 = vector.broadcast %2 : vector<1x64xf32> to vector<2x64xf32>
    %390 = arith.addf %388, %389 : vector<2x64xf32>
    %c8_i32_193 = arith.constant 8 : i32
    %391 = arith.muli %23, %c8_i32_193 : i32
    %c2_i32_194 = arith.constant 2 : i32
    %392 = arith.muli %c3_i32_184, %c2_i32_194 : i32
    %393 = arith.addi %391, %392 : i32
    %394 = arith.index_cast %393 : i32 to index
    %c0_195 = arith.constant 0 : index
    %395 = vector.load %arg10[%394, %c0_195] : memref<16x64xf32, #tpu.memory_space<vmem>>, vector<2x64xf32>
    tpu.vector_store %arg10[%394, %c0_195], %390 {strides = array<i32>} : memref<16x64xf32, #tpu.memory_space<vmem>>, vector<2x64xf32>,
    %c1_i32_196 = arith.constant 1 : i32
    %396 = arith.subi %24, %c1_i32_196 : i32
    %c8_i32_197 = arith.constant 8 : i32
    %397 = arith.muli %396, %c8_i32_197 : i32
    %c3_i32_198 = arith.constant 3 : i32
    %398 = arith.subi %c3_i32_198, %c3_i32_184 : i32
    %c2_i32_199 = arith.constant 2 : i32
    %399 = arith.muli %398, %c2_i32_199 : i32
    %400 = arith.addi %397, %399 : i32
    %c0_200 = arith.constant 0 : index
    %401 = arith.index_cast %400 : i32 to index
    %c0_201 = arith.constant 0 : index
    %402 = vector.load %arg1[%c0_200, %401, %c0_201] : memref<1x16x32xbf16, #tpu.memory_space<vmem>>, vector<1x2x32xbf16>
    %403 = vector.shape_cast %402 : vector<1x2x32xbf16> to vector<2x32xbf16>
    %cst_202 = arith.constant dense<0.000000e+00> : vector<2x64xf32>
    %404 = tpu.matmul %403, %1, %cst_202 {dimension_numbers = #tpu.dot_dimension_numbers<[1], [0], [0], [1], [0, 0, 1, 1], [], []>} : vector<2x32xbf16>, vector<32x64xbf16>, vector<2x64xf32> -> vector<2x64xf32>
    %405 = vector.broadcast %3 : vector<1x64xf32> to vector<2x64xf32>
    %406 = arith.addf %404, %405 : vector<2x64xf32>
    %c8_i32_203 = arith.constant 8 : i32
    %407 = arith.muli %23, %c8_i32_203 : i32
    %c3_i32_204 = arith.constant 3 : i32
    %408 = arith.subi %c3_i32_204, %c3_i32_184 : i32
    %c2_i32_205 = arith.constant 2 : i32
    %409 = arith.muli %408, %c2_i32_205 : i32
    %410 = arith.addi %407, %409 : i32
    %411 = arith.index_cast %410 : i32 to index
    %c0_206 = arith.constant 0 : index
    %412 = vector.load %arg11[%411, %c0_206] : memref<16x64xf32, #tpu.memory_space<vmem>>, vector<2x64xf32>
    tpu.vector_store %arg11[%411, %c0_206], %406 {strides = array<i32>} : memref<16x64xf32, #tpu.memory_space<vmem>>, vector<2x64xf32>,
    %c8_i32_207 = arith.constant 8 : i32
    %413 = arith.muli %22, %c8_i32_207 : i32
    %c2_i32_208 = arith.constant 2 : i32
    %414 = arith.muli %c3_i32_184, %c2_i32_208 : i32
    %415 = arith.addi %413, %414 : i32
    %416 = arith.index_cast %415 : i32 to index
    %c0_209 = arith.constant 0 : index
    %417 = vector.load %arg10[%416, %c0_209] : memref<16x64xf32, #tpu.memory_space<vmem>>, vector<2x64xf32>
    %418 = arith.addf %417, %379 : vector<2x64xf32>
    %c8_i32_210 = arith.constant 8 : i32
    %419 = arith.muli %22, %c8_i32_210 : i32
    %c3_i32_211 = arith.constant 3 : i32
    %420 = arith.subi %c3_i32_211, %c3_i32_184 : i32
    %c2_i32_212 = arith.constant 2 : i32
    %421 = arith.muli %420, %c2_i32_212 : i32
    %422 = arith.addi %419, %421 : i32
    %423 = arith.index_cast %422 : i32 to index
    %c0_213 = arith.constant 0 : index
    %424 = vector.load %arg11[%423, %c0_213] : memref<16x64xf32, #tpu.memory_space<vmem>>, vector<2x64xf32>
    %425 = arith.addf %424, %380 : vector<2x64xf32>
    %426 = vector.extract_strided_slice %418 {offsets = [0, 0], sizes = [2, 16], strides = [1, 1]} : vector<2x64xf32> to vector<2x16xf32>
    %cst_214 = arith.constant 5.000000e-01 : f32
    %427 = vector.broadcast %cst_214 : f32 to vector<2x16xf32>
    %428 = arith.mulf %427, %426 : vector<2x16xf32>
    %429 = math.tanh %428 : vector<2x16xf32>
    %cst_215 = arith.constant 5.000000e-01 : f32
    %430 = vector.broadcast %cst_215 : f32 to vector<2x16xf32>
    %431 = arith.mulf %430, %429 : vector<2x16xf32>
    %cst_216 = arith.constant 5.000000e-01 : f32
    %432 = vector.broadcast %cst_216 : f32 to vector<2x16xf32>
    %433 = arith.addf %431, %432 : vector<2x16xf32>
    %434 = vector.extract_strided_slice %418 {offsets = [0, 16], sizes = [2, 16], strides = [1, 1]} : vector<2x64xf32> to vector<2x16xf32>
    %cst_217 = arith.constant 5.000000e-01 : f32
    %435 = vector.broadcast %cst_217 : f32 to vector<2x16xf32>
    %436 = arith.mulf %435, %434 : vector<2x16xf32>
    %437 = math.tanh %436 : vector<2x16xf32>
    %cst_218 = arith.constant 5.000000e-01 : f32
    %438 = vector.broadcast %cst_218 : f32 to vector<2x16xf32>
    %439 = arith.mulf %438, %437 : vector<2x16xf32>
    %cst_219 = arith.constant 5.000000e-01 : f32
    %440 = vector.broadcast %cst_219 : f32 to vector<2x16xf32>
    %441 = arith.addf %439, %440 : vector<2x16xf32>
    %442 = vector.extract_strided_slice %418 {offsets = [0, 32], sizes = [2, 16], strides = [1, 1]} : vector<2x64xf32> to vector<2x16xf32>
    %443 = math.tanh %442 : vector<2x16xf32>
    %444 = vector.extract_strided_slice %418 {offsets = [0, 48], sizes = [2, 16], strides = [1, 1]} : vector<2x64xf32> to vector<2x16xf32>
    %cst_220 = arith.constant 5.000000e-01 : f32
    %445 = vector.broadcast %cst_220 : f32 to vector<2x16xf32>
    %446 = arith.mulf %445, %444 : vector<2x16xf32>
    %447 = math.tanh %446 : vector<2x16xf32>
    %cst_221 = arith.constant 5.000000e-01 : f32
    %448 = vector.broadcast %cst_221 : f32 to vector<2x16xf32>
    %449 = arith.mulf %448, %447 : vector<2x16xf32>
    %cst_222 = arith.constant 5.000000e-01 : f32
    %450 = vector.broadcast %cst_222 : f32 to vector<2x16xf32>
    %451 = arith.addf %449, %450 : vector<2x16xf32>
    %452 = arith.mulf %441, %336 : vector<2x16xf32>
    %453 = arith.mulf %433, %443 : vector<2x16xf32>
    %454 = arith.addf %452, %453 : vector<2x16xf32>
    %455 = math.tanh %454 : vector<2x16xf32>
    %456 = arith.mulf %451, %455 : vector<2x16xf32>
    %457 = arith.truncf %456 : vector<2x16xf32> to vector<2x16xbf16>
    %458 = vector.extract_strided_slice %425 {offsets = [0, 0], sizes = [2, 16], strides = [1, 1]} : vector<2x64xf32> to vector<2x16xf32>
    %cst_223 = arith.constant 5.000000e-01 : f32
    %459 = vector.broadcast %cst_223 : f32 to vector<2x16xf32>
    %460 = arith.mulf %459, %458 : vector<2x16xf32>
    %461 = math.tanh %460 : vector<2x16xf32>
    %cst_224 = arith.constant 5.000000e-01 : f32
    %462 = vector.broadcast %cst_224 : f32 to vector<2x16xf32>
    %463 = arith.mulf %462, %461 : vector<2x16xf32>
    %cst_225 = arith.constant 5.000000e-01 : f32
    %464 = vector.broadcast %cst_225 : f32 to vector<2x16xf32>
    %465 = arith.addf %463, %464 : vector<2x16xf32>
    %466 = vector.extract_strided_slice %425 {offsets = [0, 16], sizes = [2, 16], strides = [1, 1]} : vector<2x64xf32> to vector<2x16xf32>
    %cst_226 = arith.constant 5.000000e-01 : f32
    %467 = vector.broadcast %cst_226 : f32 to vector<2x16xf32>
    %468 = arith.mulf %467, %466 : vector<2x16xf32>
    %469 = math.tanh %468 : vector<2x16xf32>
    %cst_227 = arith.constant 5.000000e-01 : f32
    %470 = vector.broadcast %cst_227 : f32 to vector<2x16xf32>
    %471 = arith.mulf %470, %469 : vector<2x16xf32>
    %cst_228 = arith.constant 5.000000e-01 : f32
    %472 = vector.broadcast %cst_228 : f32 to vector<2x16xf32>
    %473 = arith.addf %471, %472 : vector<2x16xf32>
    %474 = vector.extract_strided_slice %425 {offsets = [0, 32], sizes = [2, 16], strides = [1, 1]} : vector<2x64xf32> to vector<2x16xf32>
    %475 = math.tanh %474 : vector<2x16xf32>
    %476 = vector.extract_strided_slice %425 {offsets = [0, 48], sizes = [2, 16], strides = [1, 1]} : vector<2x64xf32> to vector<2x16xf32>
    %cst_229 = arith.constant 5.000000e-01 : f32
    %477 = vector.broadcast %cst_229 : f32 to vector<2x16xf32>
    %478 = arith.mulf %477, %476 : vector<2x16xf32>
    %479 = math.tanh %478 : vector<2x16xf32>
    %cst_230 = arith.constant 5.000000e-01 : f32
    %480 = vector.broadcast %cst_230 : f32 to vector<2x16xf32>
    %481 = arith.mulf %480, %479 : vector<2x16xf32>
    %cst_231 = arith.constant 5.000000e-01 : f32
    %482 = vector.broadcast %cst_231 : f32 to vector<2x16xf32>
    %483 = arith.addf %481, %482 : vector<2x16xf32>
    %484 = arith.mulf %473, %368 : vector<2x16xf32>
    %485 = arith.mulf %465, %475 : vector<2x16xf32>
    %486 = arith.addf %484, %485 : vector<2x16xf32>
    %487 = math.tanh %486 : vector<2x16xf32>
    %488 = arith.mulf %483, %487 : vector<2x16xf32>
    %489 = arith.truncf %488 : vector<2x16xf32> to vector<2x16xbf16>
    %c2_i32_232 = arith.constant 2 : i32
    %490 = arith.muli %c3_i32_184, %c2_i32_232 : i32
    %491 = arith.index_cast %490 : i32 to index
    %c0_233 = arith.constant 0 : index
    %492 = vector.load %arg12[%491, %c0_233] : memref<8x16xbf16, #tpu.memory_space<vmem>>, vector<2x16xbf16>
    tpu.vector_store %arg12[%491, %c0_233], %457 {strides = array<i32>} : memref<8x16xbf16, #tpu.memory_space<vmem>>, vector<2x16xbf16>,
    %c3_i32_234 = arith.constant 3 : i32
    %493 = arith.subi %c3_i32_234, %c3_i32_184 : i32
    %c2_i32_235 = arith.constant 2 : i32
    %494 = arith.muli %493, %c2_i32_235 : i32
    %495 = arith.index_cast %494 : i32 to index
    %c0_236 = arith.constant 0 : index
    %496 = vector.load %arg13[%495, %c0_236] : memref<8x16xbf16, #tpu.memory_space<vmem>>, vector<2x16xbf16>
    tpu.vector_store %arg13[%495, %c0_236], %489 {strides = array<i32>} : memref<8x16xbf16, #tpu.memory_space<vmem>>, vector<2x16xbf16>,
    %c4_i32 = arith.constant 4 : i32
    %c8_i32_237 = arith.constant 8 : i32
    %497 = arith.muli %c0_i32, %c8_i32_237 : i32
    %c8_i32_238 = arith.constant 8 : i32
    %498 = arith.muli %24, %c8_i32_238 : i32
    %c0_239 = arith.constant 0 : index
    %c0_240 = arith.constant 0 : index
    %499 = vector.load %arg12[%c0_239, %c0_240] : memref<8x16xbf16, #tpu.memory_space<vmem>>, vector<8x16xbf16>
    %cst_241 = arith.constant dense<0.000000e+00> : vector<8x128xf32>
    %500 = tpu.matmul %499, %6, %cst_241 {dimension_numbers = #tpu.dot_dimension_numbers<[1], [0], [0], [1], [0, 0, 1, 1], [], []>} : vector<8x16xbf16>, vector<16x128xbf16>, vector<8x128xf32> -> vector<8x128xf32>
    %c0_242 = arith.constant 0 : index
    %501 = arith.index_cast %497 : i32 to index
    %c0_243 = arith.constant 0 : index
    %502 = vector.load %arg9[%c0_242, %501, %c0_243] : memref<1x16x128xf32, #tpu.memory_space<vmem>>, vector<1x8x128xf32>
    %503 = vector.shape_cast %502 : vector<1x8x128xf32> to vector<8x128xf32>
    %504 = vector.shape_cast %500 : vector<8x128xf32> to vector<1x8x128xf32>
    tpu.vector_store %arg9[%c0_242, %501, %c0_243], %504 {strides = array<i32>} : memref<1x16x128xf32, #tpu.memory_space<vmem>>, vector<1x8x128xf32>,
    %c0_244 = arith.constant 0 : index
    %c0_245 = arith.constant 0 : index
    %505 = vector.load %arg13[%c0_244, %c0_245] : memref<8x16xbf16, #tpu.memory_space<vmem>>, vector<8x16xbf16>
    %cst_246 = arith.constant dense<0.000000e+00> : vector<8x128xf32>
    %506 = tpu.matmul %505, %7, %cst_246 {dimension_numbers = #tpu.dot_dimension_numbers<[1], [0], [0], [1], [0, 0, 1, 1], [], []>} : vector<8x16xbf16>, vector<16x128xbf16>, vector<8x128xf32> -> vector<8x128xf32>
    %c0_247 = arith.constant 0 : index
    %507 = arith.index_cast %498 : i32 to index
    %c0_248 = arith.constant 0 : index
    %508 = vector.load %arg9[%c0_247, %507, %c0_248] : memref<1x16x128xf32, #tpu.memory_space<vmem>>, vector<1x8x128xf32>
    %509 = vector.shape_cast %508 : vector<1x8x128xf32> to vector<8x128xf32>
    %510 = vector.shape_cast %506 : vector<8x128xf32> to vector<1x8x128xf32>
    tpu.vector_store %arg9[%c0_247, %507, %c0_248], %510 {strides = array<i32>} : memref<1x16x128xf32, #tpu.memory_space<vmem>>, vector<1x8x128xf32>,
    %c1_i32_249 = arith.constant 1 : i32
    %c1_i32_250 = arith.constant 1 : i32
    %c0_i32_251 = arith.constant 0 : i32
    %511 = arith.addi %c1_i32_250, %c0_i32_251 : i32
    %c1_i32_252 = arith.constant 1 : i32
    %512:4 = scf.for %arg14 = %c1_i32_250 to %511 step %c1_i32_252 iter_args(%arg15 = %457, %arg16 = %489, %arg17 = %454, %arg18 = %486) -> (vector<2x16xbf16>, vector<2x16xbf16>, vector<2x16xf32>, vector<2x16xf32>)  : i32 {
      %c1_i32_405 = arith.constant 1 : i32
      %865 = arith.andi %arg14, %c1_i32_405 : i32
      %c1_i32_406 = arith.constant 1 : i32
      %866 = arith.subi %c1_i32_406, %865 : i32
      %c1_i32_407 = arith.constant 1 : i32
      %867 = arith.subi %c1_i32_407, %arg14 : i32
      %c0_i32_408 = arith.constant 0 : i32
      %cst_409 = arith.constant dense<0.000000e+00> : vector<2x64xf32>
      %868 = tpu.matmul %arg15, %4, %cst_409 {dimension_numbers = #tpu.dot_dimension_numbers<[1], [0], [0], [1], [0, 0, 1, 1], [], []>} : vector<2x16xbf16>, vector<16x64xbf16>, vector<2x64xf32> -> vector<2x64xf32>
      %cst_410 = arith.constant dense<0.000000e+00> : vector<2x64xf32>
      %869 = tpu.matmul %arg16, %5, %cst_410 {dimension_numbers = #tpu.dot_dimension_numbers<[1], [0], [0], [1], [0, 0, 1, 1], [], []>} : vector<2x16xbf16>, vector<16x64xbf16>, vector<2x64xf32> -> vector<2x64xf32>
      %c1_i32_411 = arith.constant 1 : i32
      %870 = arith.addi %arg14, %c1_i32_411 : i32
      %c8_i32_412 = arith.constant 8 : i32
      %871 = arith.muli %870, %c8_i32_412 : i32
      %c2_i32_413 = arith.constant 2 : i32
      %872 = arith.muli %c0_i32_408, %c2_i32_413 : i32
      %873 = arith.addi %871, %872 : i32
      %c0_414 = arith.constant 0 : index
      %874 = arith.index_cast %873 : i32 to index
      %c0_415 = arith.constant 0 : index
      %875 = vector.load %arg1[%c0_414, %874, %c0_415] : memref<1x16x32xbf16, #tpu.memory_space<vmem>>, vector<1x2x32xbf16>
      %876 = vector.shape_cast %875 : vector<1x2x32xbf16> to vector<2x32xbf16>
      %cst_416 = arith.constant dense<0.000000e+00> : vector<2x64xf32>
      %877 = tpu.matmul %876, %0, %cst_416 {dimension_numbers = #tpu.dot_dimension_numbers<[1], [0], [0], [1], [0, 0, 1, 1], [], []>} : vector<2x32xbf16>, vector<32x64xbf16>, vector<2x64xf32> -> vector<2x64xf32>
      %878 = vector.broadcast %2 : vector<1x64xf32> to vector<2x64xf32>
      %879 = arith.addf %877, %878 : vector<2x64xf32>
      %c8_i32_417 = arith.constant 8 : i32
      %880 = arith.muli %866, %c8_i32_417 : i32
      %c2_i32_418 = arith.constant 2 : i32
      %881 = arith.muli %c0_i32_408, %c2_i32_418 : i32
      %882 = arith.addi %880, %881 : i32
      %883 = arith.index_cast %882 : i32 to index
      %c0_419 = arith.constant 0 : index
      %884 = vector.load %arg10[%883, %c0_419] : memref<16x64xf32, #tpu.memory_space<vmem>>, vector<2x64xf32>
      tpu.vector_store %arg10[%883, %c0_419], %879 {strides = array<i32>} : memref<16x64xf32, #tpu.memory_space<vmem>>, vector<2x64xf32>,
      %c1_i32_420 = arith.constant 1 : i32
      %885 = arith.subi %867, %c1_i32_420 : i32
      %c8_i32_421 = arith.constant 8 : i32
      %886 = arith.muli %885, %c8_i32_421 : i32
      %c3_i32_422 = arith.constant 3 : i32
      %887 = arith.subi %c3_i32_422, %c0_i32_408 : i32
      %c2_i32_423 = arith.constant 2 : i32
      %888 = arith.muli %887, %c2_i32_423 : i32
      %889 = arith.addi %886, %888 : i32
      %c0_424 = arith.constant 0 : index
      %890 = arith.index_cast %889 : i32 to index
      %c0_425 = arith.constant 0 : index
      %891 = vector.load %arg1[%c0_424, %890, %c0_425] : memref<1x16x32xbf16, #tpu.memory_space<vmem>>, vector<1x2x32xbf16>
      %892 = vector.shape_cast %891 : vector<1x2x32xbf16> to vector<2x32xbf16>
      %cst_426 = arith.constant dense<0.000000e+00> : vector<2x64xf32>
      %893 = tpu.matmul %892, %1, %cst_426 {dimension_numbers = #tpu.dot_dimension_numbers<[1], [0], [0], [1], [0, 0, 1, 1], [], []>} : vector<2x32xbf16>, vector<32x64xbf16>, vector<2x64xf32> -> vector<2x64xf32>
      %894 = vector.broadcast %3 : vector<1x64xf32> to vector<2x64xf32>
      %895 = arith.addf %893, %894 : vector<2x64xf32>
      %c8_i32_427 = arith.constant 8 : i32
      %896 = arith.muli %866, %c8_i32_427 : i32
      %c3_i32_428 = arith.constant 3 : i32
      %897 = arith.subi %c3_i32_428, %c0_i32_408 : i32
      %c2_i32_429 = arith.constant 2 : i32
      %898 = arith.muli %897, %c2_i32_429 : i32
      %899 = arith.addi %896, %898 : i32
      %900 = arith.index_cast %899 : i32 to index
      %c0_430 = arith.constant 0 : index
      %901 = vector.load %arg11[%900, %c0_430] : memref<16x64xf32, #tpu.memory_space<vmem>>, vector<2x64xf32>
      tpu.vector_store %arg11[%900, %c0_430], %895 {strides = array<i32>} : memref<16x64xf32, #tpu.memory_space<vmem>>, vector<2x64xf32>,
      %c8_i32_431 = arith.constant 8 : i32
      %902 = arith.muli %865, %c8_i32_431 : i32
      %c2_i32_432 = arith.constant 2 : i32
      %903 = arith.muli %c0_i32_408, %c2_i32_432 : i32
      %904 = arith.addi %902, %903 : i32
      %905 = arith.index_cast %904 : i32 to index
      %c0_433 = arith.constant 0 : index
      %906 = vector.load %arg10[%905, %c0_433] : memref<16x64xf32, #tpu.memory_space<vmem>>, vector<2x64xf32>
      %907 = arith.addf %906, %868 : vector<2x64xf32>
      %c8_i32_434 = arith.constant 8 : i32
      %908 = arith.muli %865, %c8_i32_434 : i32
      %c3_i32_435 = arith.constant 3 : i32
      %909 = arith.subi %c3_i32_435, %c0_i32_408 : i32
      %c2_i32_436 = arith.constant 2 : i32
      %910 = arith.muli %909, %c2_i32_436 : i32
      %911 = arith.addi %908, %910 : i32
      %912 = arith.index_cast %911 : i32 to index
      %c0_437 = arith.constant 0 : index
      %913 = vector.load %arg11[%912, %c0_437] : memref<16x64xf32, #tpu.memory_space<vmem>>, vector<2x64xf32>
      %914 = arith.addf %913, %869 : vector<2x64xf32>
      %915 = vector.extract_strided_slice %907 {offsets = [0, 0], sizes = [2, 16], strides = [1, 1]} : vector<2x64xf32> to vector<2x16xf32>
      %cst_438 = arith.constant 5.000000e-01 : f32
      %916 = vector.broadcast %cst_438 : f32 to vector<2x16xf32>
      %917 = arith.mulf %916, %915 : vector<2x16xf32>
      %918 = math.tanh %917 : vector<2x16xf32>
      %cst_439 = arith.constant 5.000000e-01 : f32
      %919 = vector.broadcast %cst_439 : f32 to vector<2x16xf32>
      %920 = arith.mulf %919, %918 : vector<2x16xf32>
      %cst_440 = arith.constant 5.000000e-01 : f32
      %921 = vector.broadcast %cst_440 : f32 to vector<2x16xf32>
      %922 = arith.addf %920, %921 : vector<2x16xf32>
      %923 = vector.extract_strided_slice %907 {offsets = [0, 16], sizes = [2, 16], strides = [1, 1]} : vector<2x64xf32> to vector<2x16xf32>
      %cst_441 = arith.constant 5.000000e-01 : f32
      %924 = vector.broadcast %cst_441 : f32 to vector<2x16xf32>
      %925 = arith.mulf %924, %923 : vector<2x16xf32>
      %926 = math.tanh %925 : vector<2x16xf32>
      %cst_442 = arith.constant 5.000000e-01 : f32
      %927 = vector.broadcast %cst_442 : f32 to vector<2x16xf32>
      %928 = arith.mulf %927, %926 : vector<2x16xf32>
      %cst_443 = arith.constant 5.000000e-01 : f32
      %929 = vector.broadcast %cst_443 : f32 to vector<2x16xf32>
      %930 = arith.addf %928, %929 : vector<2x16xf32>
      %931 = vector.extract_strided_slice %907 {offsets = [0, 32], sizes = [2, 16], strides = [1, 1]} : vector<2x64xf32> to vector<2x16xf32>
      %932 = math.tanh %931 : vector<2x16xf32>
      %933 = vector.extract_strided_slice %907 {offsets = [0, 48], sizes = [2, 16], strides = [1, 1]} : vector<2x64xf32> to vector<2x16xf32>
      %cst_444 = arith.constant 5.000000e-01 : f32
      %934 = vector.broadcast %cst_444 : f32 to vector<2x16xf32>
      %935 = arith.mulf %934, %933 : vector<2x16xf32>
      %936 = math.tanh %935 : vector<2x16xf32>
      %cst_445 = arith.constant 5.000000e-01 : f32
      %937 = vector.broadcast %cst_445 : f32 to vector<2x16xf32>
      %938 = arith.mulf %937, %936 : vector<2x16xf32>
      %cst_446 = arith.constant 5.000000e-01 : f32
      %939 = vector.broadcast %cst_446 : f32 to vector<2x16xf32>
      %940 = arith.addf %938, %939 : vector<2x16xf32>
      %941 = arith.mulf %930, %arg17 : vector<2x16xf32>
      %942 = arith.mulf %922, %932 : vector<2x16xf32>
      %943 = arith.addf %941, %942 : vector<2x16xf32>
      %944 = math.tanh %943 : vector<2x16xf32>
      %945 = arith.mulf %940, %944 : vector<2x16xf32>
      %946 = arith.truncf %945 : vector<2x16xf32> to vector<2x16xbf16>
      %947 = vector.extract_strided_slice %914 {offsets = [0, 0], sizes = [2, 16], strides = [1, 1]} : vector<2x64xf32> to vector<2x16xf32>
      %cst_447 = arith.constant 5.000000e-01 : f32
      %948 = vector.broadcast %cst_447 : f32 to vector<2x16xf32>
      %949 = arith.mulf %948, %947 : vector<2x16xf32>
      %950 = math.tanh %949 : vector<2x16xf32>
      %cst_448 = arith.constant 5.000000e-01 : f32
      %951 = vector.broadcast %cst_448 : f32 to vector<2x16xf32>
      %952 = arith.mulf %951, %950 : vector<2x16xf32>
      %cst_449 = arith.constant 5.000000e-01 : f32
      %953 = vector.broadcast %cst_449 : f32 to vector<2x16xf32>
      %954 = arith.addf %952, %953 : vector<2x16xf32>
      %955 = vector.extract_strided_slice %914 {offsets = [0, 16], sizes = [2, 16], strides = [1, 1]} : vector<2x64xf32> to vector<2x16xf32>
      %cst_450 = arith.constant 5.000000e-01 : f32
      %956 = vector.broadcast %cst_450 : f32 to vector<2x16xf32>
      %957 = arith.mulf %956, %955 : vector<2x16xf32>
      %958 = math.tanh %957 : vector<2x16xf32>
      %cst_451 = arith.constant 5.000000e-01 : f32
      %959 = vector.broadcast %cst_451 : f32 to vector<2x16xf32>
      %960 = arith.mulf %959, %958 : vector<2x16xf32>
      %cst_452 = arith.constant 5.000000e-01 : f32
      %961 = vector.broadcast %cst_452 : f32 to vector<2x16xf32>
      %962 = arith.addf %960, %961 : vector<2x16xf32>
      %963 = vector.extract_strided_slice %914 {offsets = [0, 32], sizes = [2, 16], strides = [1, 1]} : vector<2x64xf32> to vector<2x16xf32>
      %964 = math.tanh %963 : vector<2x16xf32>
      %965 = vector.extract_strided_slice %914 {offsets = [0, 48], sizes = [2, 16], strides = [1, 1]} : vector<2x64xf32> to vector<2x16xf32>
      %cst_453 = arith.constant 5.000000e-01 : f32
      %966 = vector.broadcast %cst_453 : f32 to vector<2x16xf32>
      %967 = arith.mulf %966, %965 : vector<2x16xf32>
      %968 = math.tanh %967 : vector<2x16xf32>
      %cst_454 = arith.constant 5.000000e-01 : f32
      %969 = vector.broadcast %cst_454 : f32 to vector<2x16xf32>
      %970 = arith.mulf %969, %968 : vector<2x16xf32>
      %cst_455 = arith.constant 5.000000e-01 : f32
      %971 = vector.broadcast %cst_455 : f32 to vector<2x16xf32>
      %972 = arith.addf %970, %971 : vector<2x16xf32>
      %973 = arith.mulf %962, %arg18 : vector<2x16xf32>
      %974 = arith.mulf %954, %964 : vector<2x16xf32>
      %975 = arith.addf %973, %974 : vector<2x16xf32>
      %976 = math.tanh %975 : vector<2x16xf32>
      %977 = arith.mulf %972, %976 : vector<2x16xf32>
      %978 = arith.truncf %977 : vector<2x16xf32> to vector<2x16xbf16>
      %c2_i32_456 = arith.constant 2 : i32
      %979 = arith.muli %c0_i32_408, %c2_i32_456 : i32
      %980 = arith.index_cast %979 : i32 to index
      %c0_457 = arith.constant 0 : index
      %981 = vector.load %arg12[%980, %c0_457] : memref<8x16xbf16, #tpu.memory_space<vmem>>, vector<2x16xbf16>
      tpu.vector_store %arg12[%980, %c0_457], %946 {strides = array<i32>} : memref<8x16xbf16, #tpu.memory_space<vmem>>, vector<2x16xbf16>,
      %c3_i32_458 = arith.constant 3 : i32
      %982 = arith.subi %c3_i32_458, %c0_i32_408 : i32
      %c2_i32_459 = arith.constant 2 : i32
      %983 = arith.muli %982, %c2_i32_459 : i32
      %984 = arith.index_cast %983 : i32 to index
      %c0_460 = arith.constant 0 : index
      %985 = vector.load %arg13[%984, %c0_460] : memref<8x16xbf16, #tpu.memory_space<vmem>>, vector<2x16xbf16>
      tpu.vector_store %arg13[%984, %c0_460], %978 {strides = array<i32>} : memref<8x16xbf16, #tpu.memory_space<vmem>>, vector<2x16xbf16>,
      %c1_i32_461 = arith.constant 1 : i32
      %cst_462 = arith.constant dense<0.000000e+00> : vector<2x64xf32>
      %986 = tpu.matmul %946, %4, %cst_462 {dimension_numbers = #tpu.dot_dimension_numbers<[1], [0], [0], [1], [0, 0, 1, 1], [], []>} : vector<2x16xbf16>, vector<16x64xbf16>, vector<2x64xf32> -> vector<2x64xf32>
      %cst_463 = arith.constant dense<0.000000e+00> : vector<2x64xf32>
      %987 = tpu.matmul %978, %5, %cst_463 {dimension_numbers = #tpu.dot_dimension_numbers<[1], [0], [0], [1], [0, 0, 1, 1], [], []>} : vector<2x16xbf16>, vector<16x64xbf16>, vector<2x64xf32> -> vector<2x64xf32>
      %c1_i32_464 = arith.constant 1 : i32
      %988 = arith.addi %arg14, %c1_i32_464 : i32
      %c8_i32_465 = arith.constant 8 : i32
      %989 = arith.muli %988, %c8_i32_465 : i32
      %c2_i32_466 = arith.constant 2 : i32
      %990 = arith.muli %c1_i32_461, %c2_i32_466 : i32
      %991 = arith.addi %989, %990 : i32
      %c0_467 = arith.constant 0 : index
      %992 = arith.index_cast %991 : i32 to index
      %c0_468 = arith.constant 0 : index
      %993 = vector.load %arg1[%c0_467, %992, %c0_468] : memref<1x16x32xbf16, #tpu.memory_space<vmem>>, vector<1x2x32xbf16>
      %994 = vector.shape_cast %993 : vector<1x2x32xbf16> to vector<2x32xbf16>
      %cst_469 = arith.constant dense<0.000000e+00> : vector<2x64xf32>
      %995 = tpu.matmul %994, %0, %cst_469 {dimension_numbers = #tpu.dot_dimension_numbers<[1], [0], [0], [1], [0, 0, 1, 1], [], []>} : vector<2x32xbf16>, vector<32x64xbf16>, vector<2x64xf32> -> vector<2x64xf32>
      %996 = vector.broadcast %2 : vector<1x64xf32> to vector<2x64xf32>
      %997 = arith.addf %995, %996 : vector<2x64xf32>
      %c8_i32_470 = arith.constant 8 : i32
      %998 = arith.muli %866, %c8_i32_470 : i32
      %c2_i32_471 = arith.constant 2 : i32
      %999 = arith.muli %c1_i32_461, %c2_i32_471 : i32
      %1000 = arith.addi %998, %999 : i32
      %1001 = arith.index_cast %1000 : i32 to index
      %c0_472 = arith.constant 0 : index
      %1002 = vector.load %arg10[%1001, %c0_472] : memref<16x64xf32, #tpu.memory_space<vmem>>, vector<2x64xf32>
      tpu.vector_store %arg10[%1001, %c0_472], %997 {strides = array<i32>} : memref<16x64xf32, #tpu.memory_space<vmem>>, vector<2x64xf32>,
      %c1_i32_473 = arith.constant 1 : i32
      %1003 = arith.subi %867, %c1_i32_473 : i32
      %c8_i32_474 = arith.constant 8 : i32
      %1004 = arith.muli %1003, %c8_i32_474 : i32
      %c3_i32_475 = arith.constant 3 : i32
      %1005 = arith.subi %c3_i32_475, %c1_i32_461 : i32
      %c2_i32_476 = arith.constant 2 : i32
      %1006 = arith.muli %1005, %c2_i32_476 : i32
      %1007 = arith.addi %1004, %1006 : i32
      %c0_477 = arith.constant 0 : index
      %1008 = arith.index_cast %1007 : i32 to index
      %c0_478 = arith.constant 0 : index
      %1009 = vector.load %arg1[%c0_477, %1008, %c0_478] : memref<1x16x32xbf16, #tpu.memory_space<vmem>>, vector<1x2x32xbf16>
      %1010 = vector.shape_cast %1009 : vector<1x2x32xbf16> to vector<2x32xbf16>
      %cst_479 = arith.constant dense<0.000000e+00> : vector<2x64xf32>
      %1011 = tpu.matmul %1010, %1, %cst_479 {dimension_numbers = #tpu.dot_dimension_numbers<[1], [0], [0], [1], [0, 0, 1, 1], [], []>} : vector<2x32xbf16>, vector<32x64xbf16>, vector<2x64xf32> -> vector<2x64xf32>
      %1012 = vector.broadcast %3 : vector<1x64xf32> to vector<2x64xf32>
      %1013 = arith.addf %1011, %1012 : vector<2x64xf32>
      %c8_i32_480 = arith.constant 8 : i32
      %1014 = arith.muli %866, %c8_i32_480 : i32
      %c3_i32_481 = arith.constant 3 : i32
      %1015 = arith.subi %c3_i32_481, %c1_i32_461 : i32
      %c2_i32_482 = arith.constant 2 : i32
      %1016 = arith.muli %1015, %c2_i32_482 : i32
      %1017 = arith.addi %1014, %1016 : i32
      %1018 = arith.index_cast %1017 : i32 to index
      %c0_483 = arith.constant 0 : index
      %1019 = vector.load %arg11[%1018, %c0_483] : memref<16x64xf32, #tpu.memory_space<vmem>>, vector<2x64xf32>
      tpu.vector_store %arg11[%1018, %c0_483], %1013 {strides = array<i32>} : memref<16x64xf32, #tpu.memory_space<vmem>>, vector<2x64xf32>,
      %c8_i32_484 = arith.constant 8 : i32
      %1020 = arith.muli %865, %c8_i32_484 : i32
      %c2_i32_485 = arith.constant 2 : i32
      %1021 = arith.muli %c1_i32_461, %c2_i32_485 : i32
      %1022 = arith.addi %1020, %1021 : i32
      %1023 = arith.index_cast %1022 : i32 to index
      %c0_486 = arith.constant 0 : index
      %1024 = vector.load %arg10[%1023, %c0_486] : memref<16x64xf32, #tpu.memory_space<vmem>>, vector<2x64xf32>
      %1025 = arith.addf %1024, %986 : vector<2x64xf32>
      %c8_i32_487 = arith.constant 8 : i32
      %1026 = arith.muli %865, %c8_i32_487 : i32
      %c3_i32_488 = arith.constant 3 : i32
      %1027 = arith.subi %c3_i32_488, %c1_i32_461 : i32
      %c2_i32_489 = arith.constant 2 : i32
      %1028 = arith.muli %1027, %c2_i32_489 : i32
      %1029 = arith.addi %1026, %1028 : i32
      %1030 = arith.index_cast %1029 : i32 to index
      %c0_490 = arith.constant 0 : index
      %1031 = vector.load %arg11[%1030, %c0_490] : memref<16x64xf32, #tpu.memory_space<vmem>>, vector<2x64xf32>
      %1032 = arith.addf %1031, %987 : vector<2x64xf32>
      %1033 = vector.extract_strided_slice %1025 {offsets = [0, 0], sizes = [2, 16], strides = [1, 1]} : vector<2x64xf32> to vector<2x16xf32>
      %cst_491 = arith.constant 5.000000e-01 : f32
      %1034 = vector.broadcast %cst_491 : f32 to vector<2x16xf32>
      %1035 = arith.mulf %1034, %1033 : vector<2x16xf32>
      %1036 = math.tanh %1035 : vector<2x16xf32>
      %cst_492 = arith.constant 5.000000e-01 : f32
      %1037 = vector.broadcast %cst_492 : f32 to vector<2x16xf32>
      %1038 = arith.mulf %1037, %1036 : vector<2x16xf32>
      %cst_493 = arith.constant 5.000000e-01 : f32
      %1039 = vector.broadcast %cst_493 : f32 to vector<2x16xf32>
      %1040 = arith.addf %1038, %1039 : vector<2x16xf32>
      %1041 = vector.extract_strided_slice %1025 {offsets = [0, 16], sizes = [2, 16], strides = [1, 1]} : vector<2x64xf32> to vector<2x16xf32>
      %cst_494 = arith.constant 5.000000e-01 : f32
      %1042 = vector.broadcast %cst_494 : f32 to vector<2x16xf32>
      %1043 = arith.mulf %1042, %1041 : vector<2x16xf32>
      %1044 = math.tanh %1043 : vector<2x16xf32>
      %cst_495 = arith.constant 5.000000e-01 : f32
      %1045 = vector.broadcast %cst_495 : f32 to vector<2x16xf32>
      %1046 = arith.mulf %1045, %1044 : vector<2x16xf32>
      %cst_496 = arith.constant 5.000000e-01 : f32
      %1047 = vector.broadcast %cst_496 : f32 to vector<2x16xf32>
      %1048 = arith.addf %1046, %1047 : vector<2x16xf32>
      %1049 = vector.extract_strided_slice %1025 {offsets = [0, 32], sizes = [2, 16], strides = [1, 1]} : vector<2x64xf32> to vector<2x16xf32>
      %1050 = math.tanh %1049 : vector<2x16xf32>
      %1051 = vector.extract_strided_slice %1025 {offsets = [0, 48], sizes = [2, 16], strides = [1, 1]} : vector<2x64xf32> to vector<2x16xf32>
      %cst_497 = arith.constant 5.000000e-01 : f32
      %1052 = vector.broadcast %cst_497 : f32 to vector<2x16xf32>
      %1053 = arith.mulf %1052, %1051 : vector<2x16xf32>
      %1054 = math.tanh %1053 : vector<2x16xf32>
      %cst_498 = arith.constant 5.000000e-01 : f32
      %1055 = vector.broadcast %cst_498 : f32 to vector<2x16xf32>
      %1056 = arith.mulf %1055, %1054 : vector<2x16xf32>
      %cst_499 = arith.constant 5.000000e-01 : f32
      %1057 = vector.broadcast %cst_499 : f32 to vector<2x16xf32>
      %1058 = arith.addf %1056, %1057 : vector<2x16xf32>
      %1059 = arith.mulf %1048, %943 : vector<2x16xf32>
      %1060 = arith.mulf %1040, %1050 : vector<2x16xf32>
      %1061 = arith.addf %1059, %1060 : vector<2x16xf32>
      %1062 = math.tanh %1061 : vector<2x16xf32>
      %1063 = arith.mulf %1058, %1062 : vector<2x16xf32>
      %1064 = arith.truncf %1063 : vector<2x16xf32> to vector<2x16xbf16>
      %1065 = vector.extract_strided_slice %1032 {offsets = [0, 0], sizes = [2, 16], strides = [1, 1]} : vector<2x64xf32> to vector<2x16xf32>
      %cst_500 = arith.constant 5.000000e-01 : f32
      %1066 = vector.broadcast %cst_500 : f32 to vector<2x16xf32>
      %1067 = arith.mulf %1066, %1065 : vector<2x16xf32>
      %1068 = math.tanh %1067 : vector<2x16xf32>
      %cst_501 = arith.constant 5.000000e-01 : f32
      %1069 = vector.broadcast %cst_501 : f32 to vector<2x16xf32>
      %1070 = arith.mulf %1069, %1068 : vector<2x16xf32>
      %cst_502 = arith.constant 5.000000e-01 : f32
      %1071 = vector.broadcast %cst_502 : f32 to vector<2x16xf32>
      %1072 = arith.addf %1070, %1071 : vector<2x16xf32>
      %1073 = vector.extract_strided_slice %1032 {offsets = [0, 16], sizes = [2, 16], strides = [1, 1]} : vector<2x64xf32> to vector<2x16xf32>
      %cst_503 = arith.constant 5.000000e-01 : f32
      %1074 = vector.broadcast %cst_503 : f32 to vector<2x16xf32>
      %1075 = arith.mulf %1074, %1073 : vector<2x16xf32>
      %1076 = math.tanh %1075 : vector<2x16xf32>
      %cst_504 = arith.constant 5.000000e-01 : f32
      %1077 = vector.broadcast %cst_504 : f32 to vector<2x16xf32>
      %1078 = arith.mulf %1077, %1076 : vector<2x16xf32>
      %cst_505 = arith.constant 5.000000e-01 : f32
      %1079 = vector.broadcast %cst_505 : f32 to vector<2x16xf32>
      %1080 = arith.addf %1078, %1079 : vector<2x16xf32>
      %1081 = vector.extract_strided_slice %1032 {offsets = [0, 32], sizes = [2, 16], strides = [1, 1]} : vector<2x64xf32> to vector<2x16xf32>
      %1082 = math.tanh %1081 : vector<2x16xf32>
      %1083 = vector.extract_strided_slice %1032 {offsets = [0, 48], sizes = [2, 16], strides = [1, 1]} : vector<2x64xf32> to vector<2x16xf32>
      %cst_506 = arith.constant 5.000000e-01 : f32
      %1084 = vector.broadcast %cst_506 : f32 to vector<2x16xf32>
      %1085 = arith.mulf %1084, %1083 : vector<2x16xf32>
      %1086 = math.tanh %1085 : vector<2x16xf32>
      %cst_507 = arith.constant 5.000000e-01 : f32
      %1087 = vector.broadcast %cst_507 : f32 to vector<2x16xf32>
      %1088 = arith.mulf %1087, %1086 : vector<2x16xf32>
      %cst_508 = arith.constant 5.000000e-01 : f32
      %1089 = vector.broadcast %cst_508 : f32 to vector<2x16xf32>
      %1090 = arith.addf %1088, %1089 : vector<2x16xf32>
      %1091 = arith.mulf %1080, %975 : vector<2x16xf32>
      %1092 = arith.mulf %1072, %1082 : vector<2x16xf32>
      %1093 = arith.addf %1091, %1092 : vector<2x16xf32>
      %1094 = math.tanh %1093 : vector<2x16xf32>
      %1095 = arith.mulf %1090, %1094 : vector<2x16xf32>
      %1096 = arith.truncf %1095 : vector<2x16xf32> to vector<2x16xbf16>
      %c2_i32_509 = arith.constant 2 : i32
      %1097 = arith.muli %c1_i32_461, %c2_i32_509 : i32
      %1098 = arith.index_cast %1097 : i32 to index
      %c0_510 = arith.constant 0 : index
      %1099 = vector.load %arg12[%1098, %c0_510] : memref<8x16xbf16, #tpu.memory_space<vmem>>, vector<2x16xbf16>
      tpu.vector_store %arg12[%1098, %c0_510], %1064 {strides = array<i32>} : memref<8x16xbf16, #tpu.memory_space<vmem>>, vector<2x16xbf16>,
      %c3_i32_511 = arith.constant 3 : i32
      %1100 = arith.subi %c3_i32_511, %c1_i32_461 : i32
      %c2_i32_512 = arith.constant 2 : i32
      %1101 = arith.muli %1100, %c2_i32_512 : i32
      %1102 = arith.index_cast %1101 : i32 to index
      %c0_513 = arith.constant 0 : index
      %1103 = vector.load %arg13[%1102, %c0_513] : memref<8x16xbf16, #tpu.memory_space<vmem>>, vector<2x16xbf16>
      tpu.vector_store %arg13[%1102, %c0_513], %1096 {strides = array<i32>} : memref<8x16xbf16, #tpu.memory_space<vmem>>, vector<2x16xbf16>,
      %c2_i32_514 = arith.constant 2 : i32
      %cst_515 = arith.constant dense<0.000000e+00> : vector<2x64xf32>
      %1104 = tpu.matmul %1064, %4, %cst_515 {dimension_numbers = #tpu.dot_dimension_numbers<[1], [0], [0], [1], [0, 0, 1, 1], [], []>} : vector<2x16xbf16>, vector<16x64xbf16>, vector<2x64xf32> -> vector<2x64xf32>
      %cst_516 = arith.constant dense<0.000000e+00> : vector<2x64xf32>
      %1105 = tpu.matmul %1096, %5, %cst_516 {dimension_numbers = #tpu.dot_dimension_numbers<[1], [0], [0], [1], [0, 0, 1, 1], [], []>} : vector<2x16xbf16>, vector<16x64xbf16>, vector<2x64xf32> -> vector<2x64xf32>
      %c1_i32_517 = arith.constant 1 : i32
      %1106 = arith.addi %arg14, %c1_i32_517 : i32
      %c8_i32_518 = arith.constant 8 : i32
      %1107 = arith.muli %1106, %c8_i32_518 : i32
      %c2_i32_519 = arith.constant 2 : i32
      %1108 = arith.muli %c2_i32_514, %c2_i32_519 : i32
      %1109 = arith.addi %1107, %1108 : i32
      %c0_520 = arith.constant 0 : index
      %1110 = arith.index_cast %1109 : i32 to index
      %c0_521 = arith.constant 0 : index
      %1111 = vector.load %arg1[%c0_520, %1110, %c0_521] : memref<1x16x32xbf16, #tpu.memory_space<vmem>>, vector<1x2x32xbf16>
      %1112 = vector.shape_cast %1111 : vector<1x2x32xbf16> to vector<2x32xbf16>
      %cst_522 = arith.constant dense<0.000000e+00> : vector<2x64xf32>
      %1113 = tpu.matmul %1112, %0, %cst_522 {dimension_numbers = #tpu.dot_dimension_numbers<[1], [0], [0], [1], [0, 0, 1, 1], [], []>} : vector<2x32xbf16>, vector<32x64xbf16>, vector<2x64xf32> -> vector<2x64xf32>
      %1114 = vector.broadcast %2 : vector<1x64xf32> to vector<2x64xf32>
      %1115 = arith.addf %1113, %1114 : vector<2x64xf32>
      %c8_i32_523 = arith.constant 8 : i32
      %1116 = arith.muli %866, %c8_i32_523 : i32
      %c2_i32_524 = arith.constant 2 : i32
      %1117 = arith.muli %c2_i32_514, %c2_i32_524 : i32
      %1118 = arith.addi %1116, %1117 : i32
      %1119 = arith.index_cast %1118 : i32 to index
      %c0_525 = arith.constant 0 : index
      %1120 = vector.load %arg10[%1119, %c0_525] : memref<16x64xf32, #tpu.memory_space<vmem>>, vector<2x64xf32>
      tpu.vector_store %arg10[%1119, %c0_525], %1115 {strides = array<i32>} : memref<16x64xf32, #tpu.memory_space<vmem>>, vector<2x64xf32>,
      %c1_i32_526 = arith.constant 1 : i32
      %1121 = arith.subi %867, %c1_i32_526 : i32
      %c8_i32_527 = arith.constant 8 : i32
      %1122 = arith.muli %1121, %c8_i32_527 : i32
      %c3_i32_528 = arith.constant 3 : i32
      %1123 = arith.subi %c3_i32_528, %c2_i32_514 : i32
      %c2_i32_529 = arith.constant 2 : i32
      %1124 = arith.muli %1123, %c2_i32_529 : i32
      %1125 = arith.addi %1122, %1124 : i32
      %c0_530 = arith.constant 0 : index
      %1126 = arith.index_cast %1125 : i32 to index
      %c0_531 = arith.constant 0 : index
      %1127 = vector.load %arg1[%c0_530, %1126, %c0_531] : memref<1x16x32xbf16, #tpu.memory_space<vmem>>, vector<1x2x32xbf16>
      %1128 = vector.shape_cast %1127 : vector<1x2x32xbf16> to vector<2x32xbf16>
      %cst_532 = arith.constant dense<0.000000e+00> : vector<2x64xf32>
      %1129 = tpu.matmul %1128, %1, %cst_532 {dimension_numbers = #tpu.dot_dimension_numbers<[1], [0], [0], [1], [0, 0, 1, 1], [], []>} : vector<2x32xbf16>, vector<32x64xbf16>, vector<2x64xf32> -> vector<2x64xf32>
      %1130 = vector.broadcast %3 : vector<1x64xf32> to vector<2x64xf32>
      %1131 = arith.addf %1129, %1130 : vector<2x64xf32>
      %c8_i32_533 = arith.constant 8 : i32
      %1132 = arith.muli %866, %c8_i32_533 : i32
      %c3_i32_534 = arith.constant 3 : i32
      %1133 = arith.subi %c3_i32_534, %c2_i32_514 : i32
      %c2_i32_535 = arith.constant 2 : i32
      %1134 = arith.muli %1133, %c2_i32_535 : i32
      %1135 = arith.addi %1132, %1134 : i32
      %1136 = arith.index_cast %1135 : i32 to index
      %c0_536 = arith.constant 0 : index
      %1137 = vector.load %arg11[%1136, %c0_536] : memref<16x64xf32, #tpu.memory_space<vmem>>, vector<2x64xf32>
      tpu.vector_store %arg11[%1136, %c0_536], %1131 {strides = array<i32>} : memref<16x64xf32, #tpu.memory_space<vmem>>, vector<2x64xf32>,
      %c8_i32_537 = arith.constant 8 : i32
      %1138 = arith.muli %865, %c8_i32_537 : i32
      %c2_i32_538 = arith.constant 2 : i32
      %1139 = arith.muli %c2_i32_514, %c2_i32_538 : i32
      %1140 = arith.addi %1138, %1139 : i32
      %1141 = arith.index_cast %1140 : i32 to index
      %c0_539 = arith.constant 0 : index
      %1142 = vector.load %arg10[%1141, %c0_539] : memref<16x64xf32, #tpu.memory_space<vmem>>, vector<2x64xf32>
      %1143 = arith.addf %1142, %1104 : vector<2x64xf32>
      %c8_i32_540 = arith.constant 8 : i32
      %1144 = arith.muli %865, %c8_i32_540 : i32
      %c3_i32_541 = arith.constant 3 : i32
      %1145 = arith.subi %c3_i32_541, %c2_i32_514 : i32
      %c2_i32_542 = arith.constant 2 : i32
      %1146 = arith.muli %1145, %c2_i32_542 : i32
      %1147 = arith.addi %1144, %1146 : i32
      %1148 = arith.index_cast %1147 : i32 to index
      %c0_543 = arith.constant 0 : index
      %1149 = vector.load %arg11[%1148, %c0_543] : memref<16x64xf32, #tpu.memory_space<vmem>>, vector<2x64xf32>
      %1150 = arith.addf %1149, %1105 : vector<2x64xf32>
      %1151 = vector.extract_strided_slice %1143 {offsets = [0, 0], sizes = [2, 16], strides = [1, 1]} : vector<2x64xf32> to vector<2x16xf32>
      %cst_544 = arith.constant 5.000000e-01 : f32
      %1152 = vector.broadcast %cst_544 : f32 to vector<2x16xf32>
      %1153 = arith.mulf %1152, %1151 : vector<2x16xf32>
      %1154 = math.tanh %1153 : vector<2x16xf32>
      %cst_545 = arith.constant 5.000000e-01 : f32
      %1155 = vector.broadcast %cst_545 : f32 to vector<2x16xf32>
      %1156 = arith.mulf %1155, %1154 : vector<2x16xf32>
      %cst_546 = arith.constant 5.000000e-01 : f32
      %1157 = vector.broadcast %cst_546 : f32 to vector<2x16xf32>
      %1158 = arith.addf %1156, %1157 : vector<2x16xf32>
      %1159 = vector.extract_strided_slice %1143 {offsets = [0, 16], sizes = [2, 16], strides = [1, 1]} : vector<2x64xf32> to vector<2x16xf32>
      %cst_547 = arith.constant 5.000000e-01 : f32
      %1160 = vector.broadcast %cst_547 : f32 to vector<2x16xf32>
      %1161 = arith.mulf %1160, %1159 : vector<2x16xf32>
      %1162 = math.tanh %1161 : vector<2x16xf32>
      %cst_548 = arith.constant 5.000000e-01 : f32
      %1163 = vector.broadcast %cst_548 : f32 to vector<2x16xf32>
      %1164 = arith.mulf %1163, %1162 : vector<2x16xf32>
      %cst_549 = arith.constant 5.000000e-01 : f32
      %1165 = vector.broadcast %cst_549 : f32 to vector<2x16xf32>
      %1166 = arith.addf %1164, %1165 : vector<2x16xf32>
      %1167 = vector.extract_strided_slice %1143 {offsets = [0, 32], sizes = [2, 16], strides = [1, 1]} : vector<2x64xf32> to vector<2x16xf32>
      %1168 = math.tanh %1167 : vector<2x16xf32>
      %1169 = vector.extract_strided_slice %1143 {offsets = [0, 48], sizes = [2, 16], strides = [1, 1]} : vector<2x64xf32> to vector<2x16xf32>
      %cst_550 = arith.constant 5.000000e-01 : f32
      %1170 = vector.broadcast %cst_550 : f32 to vector<2x16xf32>
      %1171 = arith.mulf %1170, %1169 : vector<2x16xf32>
      %1172 = math.tanh %1171 : vector<2x16xf32>
      %cst_551 = arith.constant 5.000000e-01 : f32
      %1173 = vector.broadcast %cst_551 : f32 to vector<2x16xf32>
      %1174 = arith.mulf %1173, %1172 : vector<2x16xf32>
      %cst_552 = arith.constant 5.000000e-01 : f32
      %1175 = vector.broadcast %cst_552 : f32 to vector<2x16xf32>
      %1176 = arith.addf %1174, %1175 : vector<2x16xf32>
      %1177 = arith.mulf %1166, %1061 : vector<2x16xf32>
      %1178 = arith.mulf %1158, %1168 : vector<2x16xf32>
      %1179 = arith.addf %1177, %1178 : vector<2x16xf32>
      %1180 = math.tanh %1179 : vector<2x16xf32>
      %1181 = arith.mulf %1176, %1180 : vector<2x16xf32>
      %1182 = arith.truncf %1181 : vector<2x16xf32> to vector<2x16xbf16>
      %1183 = vector.extract_strided_slice %1150 {offsets = [0, 0], sizes = [2, 16], strides = [1, 1]} : vector<2x64xf32> to vector<2x16xf32>
      %cst_553 = arith.constant 5.000000e-01 : f32
      %1184 = vector.broadcast %cst_553 : f32 to vector<2x16xf32>
      %1185 = arith.mulf %1184, %1183 : vector<2x16xf32>
      %1186 = math.tanh %1185 : vector<2x16xf32>
      %cst_554 = arith.constant 5.000000e-01 : f32
      %1187 = vector.broadcast %cst_554 : f32 to vector<2x16xf32>
      %1188 = arith.mulf %1187, %1186 : vector<2x16xf32>
      %cst_555 = arith.constant 5.000000e-01 : f32
      %1189 = vector.broadcast %cst_555 : f32 to vector<2x16xf32>
      %1190 = arith.addf %1188, %1189 : vector<2x16xf32>
      %1191 = vector.extract_strided_slice %1150 {offsets = [0, 16], sizes = [2, 16], strides = [1, 1]} : vector<2x64xf32> to vector<2x16xf32>
      %cst_556 = arith.constant 5.000000e-01 : f32
      %1192 = vector.broadcast %cst_556 : f32 to vector<2x16xf32>
      %1193 = arith.mulf %1192, %1191 : vector<2x16xf32>
      %1194 = math.tanh %1193 : vector<2x16xf32>
      %cst_557 = arith.constant 5.000000e-01 : f32
      %1195 = vector.broadcast %cst_557 : f32 to vector<2x16xf32>
      %1196 = arith.mulf %1195, %1194 : vector<2x16xf32>
      %cst_558 = arith.constant 5.000000e-01 : f32
      %1197 = vector.broadcast %cst_558 : f32 to vector<2x16xf32>
      %1198 = arith.addf %1196, %1197 : vector<2x16xf32>
      %1199 = vector.extract_strided_slice %1150 {offsets = [0, 32], sizes = [2, 16], strides = [1, 1]} : vector<2x64xf32> to vector<2x16xf32>
      %1200 = math.tanh %1199 : vector<2x16xf32>
      %1201 = vector.extract_strided_slice %1150 {offsets = [0, 48], sizes = [2, 16], strides = [1, 1]} : vector<2x64xf32> to vector<2x16xf32>
      %cst_559 = arith.constant 5.000000e-01 : f32
      %1202 = vector.broadcast %cst_559 : f32 to vector<2x16xf32>
      %1203 = arith.mulf %1202, %1201 : vector<2x16xf32>
      %1204 = math.tanh %1203 : vector<2x16xf32>
      %cst_560 = arith.constant 5.000000e-01 : f32
      %1205 = vector.broadcast %cst_560 : f32 to vector<2x16xf32>
      %1206 = arith.mulf %1205, %1204 : vector<2x16xf32>
      %cst_561 = arith.constant 5.000000e-01 : f32
      %1207 = vector.broadcast %cst_561 : f32 to vector<2x16xf32>
      %1208 = arith.addf %1206, %1207 : vector<2x16xf32>
      %1209 = arith.mulf %1198, %1093 : vector<2x16xf32>
      %1210 = arith.mulf %1190, %1200 : vector<2x16xf32>
      %1211 = arith.addf %1209, %1210 : vector<2x16xf32>
      %1212 = math.tanh %1211 : vector<2x16xf32>
      %1213 = arith.mulf %1208, %1212 : vector<2x16xf32>
      %1214 = arith.truncf %1213 : vector<2x16xf32> to vector<2x16xbf16>
      %c2_i32_562 = arith.constant 2 : i32
      %1215 = arith.muli %c2_i32_514, %c2_i32_562 : i32
      %1216 = arith.index_cast %1215 : i32 to index
      %c0_563 = arith.constant 0 : index
      %1217 = vector.load %arg12[%1216, %c0_563] : memref<8x16xbf16, #tpu.memory_space<vmem>>, vector<2x16xbf16>
      tpu.vector_store %arg12[%1216, %c0_563], %1182 {strides = array<i32>} : memref<8x16xbf16, #tpu.memory_space<vmem>>, vector<2x16xbf16>,
      %c3_i32_564 = arith.constant 3 : i32
      %1218 = arith.subi %c3_i32_564, %c2_i32_514 : i32
      %c2_i32_565 = arith.constant 2 : i32
      %1219 = arith.muli %1218, %c2_i32_565 : i32
      %1220 = arith.index_cast %1219 : i32 to index
      %c0_566 = arith.constant 0 : index
      %1221 = vector.load %arg13[%1220, %c0_566] : memref<8x16xbf16, #tpu.memory_space<vmem>>, vector<2x16xbf16>
      tpu.vector_store %arg13[%1220, %c0_566], %1214 {strides = array<i32>} : memref<8x16xbf16, #tpu.memory_space<vmem>>, vector<2x16xbf16>,
      %c3_i32_567 = arith.constant 3 : i32
      %cst_568 = arith.constant dense<0.000000e+00> : vector<2x64xf32>
      %1222 = tpu.matmul %1182, %4, %cst_568 {dimension_numbers = #tpu.dot_dimension_numbers<[1], [0], [0], [1], [0, 0, 1, 1], [], []>} : vector<2x16xbf16>, vector<16x64xbf16>, vector<2x64xf32> -> vector<2x64xf32>
      %cst_569 = arith.constant dense<0.000000e+00> : vector<2x64xf32>
      %1223 = tpu.matmul %1214, %5, %cst_569 {dimension_numbers = #tpu.dot_dimension_numbers<[1], [0], [0], [1], [0, 0, 1, 1], [], []>} : vector<2x16xbf16>, vector<16x64xbf16>, vector<2x64xf32> -> vector<2x64xf32>
      %c1_i32_570 = arith.constant 1 : i32
      %1224 = arith.addi %arg14, %c1_i32_570 : i32
      %c8_i32_571 = arith.constant 8 : i32
      %1225 = arith.muli %1224, %c8_i32_571 : i32
      %c2_i32_572 = arith.constant 2 : i32
      %1226 = arith.muli %c3_i32_567, %c2_i32_572 : i32
      %1227 = arith.addi %1225, %1226 : i32
      %c0_573 = arith.constant 0 : index
      %1228 = arith.index_cast %1227 : i32 to index
      %c0_574 = arith.constant 0 : index
      %1229 = vector.load %arg1[%c0_573, %1228, %c0_574] : memref<1x16x32xbf16, #tpu.memory_space<vmem>>, vector<1x2x32xbf16>
      %1230 = vector.shape_cast %1229 : vector<1x2x32xbf16> to vector<2x32xbf16>
      %cst_575 = arith.constant dense<0.000000e+00> : vector<2x64xf32>
      %1231 = tpu.matmul %1230, %0, %cst_575 {dimension_numbers = #tpu.dot_dimension_numbers<[1], [0], [0], [1], [0, 0, 1, 1], [], []>} : vector<2x32xbf16>, vector<32x64xbf16>, vector<2x64xf32> -> vector<2x64xf32>
      %1232 = vector.broadcast %2 : vector<1x64xf32> to vector<2x64xf32>
      %1233 = arith.addf %1231, %1232 : vector<2x64xf32>
      %c8_i32_576 = arith.constant 8 : i32
      %1234 = arith.muli %866, %c8_i32_576 : i32
      %c2_i32_577 = arith.constant 2 : i32
      %1235 = arith.muli %c3_i32_567, %c2_i32_577 : i32
      %1236 = arith.addi %1234, %1235 : i32
      %1237 = arith.index_cast %1236 : i32 to index
      %c0_578 = arith.constant 0 : index
      %1238 = vector.load %arg10[%1237, %c0_578] : memref<16x64xf32, #tpu.memory_space<vmem>>, vector<2x64xf32>
      tpu.vector_store %arg10[%1237, %c0_578], %1233 {strides = array<i32>} : memref<16x64xf32, #tpu.memory_space<vmem>>, vector<2x64xf32>,
      %c1_i32_579 = arith.constant 1 : i32
      %1239 = arith.subi %867, %c1_i32_579 : i32
      %c8_i32_580 = arith.constant 8 : i32
      %1240 = arith.muli %1239, %c8_i32_580 : i32
      %c3_i32_581 = arith.constant 3 : i32
      %1241 = arith.subi %c3_i32_581, %c3_i32_567 : i32
      %c2_i32_582 = arith.constant 2 : i32
      %1242 = arith.muli %1241, %c2_i32_582 : i32
      %1243 = arith.addi %1240, %1242 : i32
      %c0_583 = arith.constant 0 : index
      %1244 = arith.index_cast %1243 : i32 to index
      %c0_584 = arith.constant 0 : index
      %1245 = vector.load %arg1[%c0_583, %1244, %c0_584] : memref<1x16x32xbf16, #tpu.memory_space<vmem>>, vector<1x2x32xbf16>
      %1246 = vector.shape_cast %1245 : vector<1x2x32xbf16> to vector<2x32xbf16>
      %cst_585 = arith.constant dense<0.000000e+00> : vector<2x64xf32>
      %1247 = tpu.matmul %1246, %1, %cst_585 {dimension_numbers = #tpu.dot_dimension_numbers<[1], [0], [0], [1], [0, 0, 1, 1], [], []>} : vector<2x32xbf16>, vector<32x64xbf16>, vector<2x64xf32> -> vector<2x64xf32>
      %1248 = vector.broadcast %3 : vector<1x64xf32> to vector<2x64xf32>
      %1249 = arith.addf %1247, %1248 : vector<2x64xf32>
      %c8_i32_586 = arith.constant 8 : i32
      %1250 = arith.muli %866, %c8_i32_586 : i32
      %c3_i32_587 = arith.constant 3 : i32
      %1251 = arith.subi %c3_i32_587, %c3_i32_567 : i32
      %c2_i32_588 = arith.constant 2 : i32
      %1252 = arith.muli %1251, %c2_i32_588 : i32
      %1253 = arith.addi %1250, %1252 : i32
      %1254 = arith.index_cast %1253 : i32 to index
      %c0_589 = arith.constant 0 : index
      %1255 = vector.load %arg11[%1254, %c0_589] : memref<16x64xf32, #tpu.memory_space<vmem>>, vector<2x64xf32>
      tpu.vector_store %arg11[%1254, %c0_589], %1249 {strides = array<i32>} : memref<16x64xf32, #tpu.memory_space<vmem>>, vector<2x64xf32>,
      %c8_i32_590 = arith.constant 8 : i32
      %1256 = arith.muli %865, %c8_i32_590 : i32
      %c2_i32_591 = arith.constant 2 : i32
      %1257 = arith.muli %c3_i32_567, %c2_i32_591 : i32
      %1258 = arith.addi %1256, %1257 : i32
      %1259 = arith.index_cast %1258 : i32 to index
      %c0_592 = arith.constant 0 : index
      %1260 = vector.load %arg10[%1259, %c0_592] : memref<16x64xf32, #tpu.memory_space<vmem>>, vector<2x64xf32>
      %1261 = arith.addf %1260, %1222 : vector<2x64xf32>
      %c8_i32_593 = arith.constant 8 : i32
      %1262 = arith.muli %865, %c8_i32_593 : i32
      %c3_i32_594 = arith.constant 3 : i32
      %1263 = arith.subi %c3_i32_594, %c3_i32_567 : i32
      %c2_i32_595 = arith.constant 2 : i32
      %1264 = arith.muli %1263, %c2_i32_595 : i32
      %1265 = arith.addi %1262, %1264 : i32
      %1266 = arith.index_cast %1265 : i32 to index
      %c0_596 = arith.constant 0 : index
      %1267 = vector.load %arg11[%1266, %c0_596] : memref<16x64xf32, #tpu.memory_space<vmem>>, vector<2x64xf32>
      %1268 = arith.addf %1267, %1223 : vector<2x64xf32>
      %1269 = vector.extract_strided_slice %1261 {offsets = [0, 0], sizes = [2, 16], strides = [1, 1]} : vector<2x64xf32> to vector<2x16xf32>
      %cst_597 = arith.constant 5.000000e-01 : f32
      %1270 = vector.broadcast %cst_597 : f32 to vector<2x16xf32>
      %1271 = arith.mulf %1270, %1269 : vector<2x16xf32>
      %1272 = math.tanh %1271 : vector<2x16xf32>
      %cst_598 = arith.constant 5.000000e-01 : f32
      %1273 = vector.broadcast %cst_598 : f32 to vector<2x16xf32>
      %1274 = arith.mulf %1273, %1272 : vector<2x16xf32>
      %cst_599 = arith.constant 5.000000e-01 : f32
      %1275 = vector.broadcast %cst_599 : f32 to vector<2x16xf32>
      %1276 = arith.addf %1274, %1275 : vector<2x16xf32>
      %1277 = vector.extract_strided_slice %1261 {offsets = [0, 16], sizes = [2, 16], strides = [1, 1]} : vector<2x64xf32> to vector<2x16xf32>
      %cst_600 = arith.constant 5.000000e-01 : f32
      %1278 = vector.broadcast %cst_600 : f32 to vector<2x16xf32>
      %1279 = arith.mulf %1278, %1277 : vector<2x16xf32>
      %1280 = math.tanh %1279 : vector<2x16xf32>
      %cst_601 = arith.constant 5.000000e-01 : f32
      %1281 = vector.broadcast %cst_601 : f32 to vector<2x16xf32>
      %1282 = arith.mulf %1281, %1280 : vector<2x16xf32>
      %cst_602 = arith.constant 5.000000e-01 : f32
      %1283 = vector.broadcast %cst_602 : f32 to vector<2x16xf32>
      %1284 = arith.addf %1282, %1283 : vector<2x16xf32>
      %1285 = vector.extract_strided_slice %1261 {offsets = [0, 32], sizes = [2, 16], strides = [1, 1]} : vector<2x64xf32> to vector<2x16xf32>
      %1286 = math.tanh %1285 : vector<2x16xf32>
      %1287 = vector.extract_strided_slice %1261 {offsets = [0, 48], sizes = [2, 16], strides = [1, 1]} : vector<2x64xf32> to vector<2x16xf32>
      %cst_603 = arith.constant 5.000000e-01 : f32
      %1288 = vector.broadcast %cst_603 : f32 to vector<2x16xf32>
      %1289 = arith.mulf %1288, %1287 : vector<2x16xf32>
      %1290 = math.tanh %1289 : vector<2x16xf32>
      %cst_604 = arith.constant 5.000000e-01 : f32
      %1291 = vector.broadcast %cst_604 : f32 to vector<2x16xf32>
      %1292 = arith.mulf %1291, %1290 : vector<2x16xf32>
      %cst_605 = arith.constant 5.000000e-01 : f32
      %1293 = vector.broadcast %cst_605 : f32 to vector<2x16xf32>
      %1294 = arith.addf %1292, %1293 : vector<2x16xf32>
      %1295 = arith.mulf %1284, %1179 : vector<2x16xf32>
      %1296 = arith.mulf %1276, %1286 : vector<2x16xf32>
      %1297 = arith.addf %1295, %1296 : vector<2x16xf32>
      %1298 = math.tanh %1297 : vector<2x16xf32>
      %1299 = arith.mulf %1294, %1298 : vector<2x16xf32>
      %1300 = arith.truncf %1299 : vector<2x16xf32> to vector<2x16xbf16>
      %1301 = vector.extract_strided_slice %1268 {offsets = [0, 0], sizes = [2, 16], strides = [1, 1]} : vector<2x64xf32> to vector<2x16xf32>
      %cst_606 = arith.constant 5.000000e-01 : f32
      %1302 = vector.broadcast %cst_606 : f32 to vector<2x16xf32>
      %1303 = arith.mulf %1302, %1301 : vector<2x16xf32>
      %1304 = math.tanh %1303 : vector<2x16xf32>
      %cst_607 = arith.constant 5.000000e-01 : f32
      %1305 = vector.broadcast %cst_607 : f32 to vector<2x16xf32>
      %1306 = arith.mulf %1305, %1304 : vector<2x16xf32>
      %cst_608 = arith.constant 5.000000e-01 : f32
      %1307 = vector.broadcast %cst_608 : f32 to vector<2x16xf32>
      %1308 = arith.addf %1306, %1307 : vector<2x16xf32>
      %1309 = vector.extract_strided_slice %1268 {offsets = [0, 16], sizes = [2, 16], strides = [1, 1]} : vector<2x64xf32> to vector<2x16xf32>
      %cst_609 = arith.constant 5.000000e-01 : f32
      %1310 = vector.broadcast %cst_609 : f32 to vector<2x16xf32>
      %1311 = arith.mulf %1310, %1309 : vector<2x16xf32>
      %1312 = math.tanh %1311 : vector<2x16xf32>
      %cst_610 = arith.constant 5.000000e-01 : f32
      %1313 = vector.broadcast %cst_610 : f32 to vector<2x16xf32>
      %1314 = arith.mulf %1313, %1312 : vector<2x16xf32>
      %cst_611 = arith.constant 5.000000e-01 : f32
      %1315 = vector.broadcast %cst_611 : f32 to vector<2x16xf32>
      %1316 = arith.addf %1314, %1315 : vector<2x16xf32>
      %1317 = vector.extract_strided_slice %1268 {offsets = [0, 32], sizes = [2, 16], strides = [1, 1]} : vector<2x64xf32> to vector<2x16xf32>
      %1318 = math.tanh %1317 : vector<2x16xf32>
      %1319 = vector.extract_strided_slice %1268 {offsets = [0, 48], sizes = [2, 16], strides = [1, 1]} : vector<2x64xf32> to vector<2x16xf32>
      %cst_612 = arith.constant 5.000000e-01 : f32
      %1320 = vector.broadcast %cst_612 : f32 to vector<2x16xf32>
      %1321 = arith.mulf %1320, %1319 : vector<2x16xf32>
      %1322 = math.tanh %1321 : vector<2x16xf32>
      %cst_613 = arith.constant 5.000000e-01 : f32
      %1323 = vector.broadcast %cst_613 : f32 to vector<2x16xf32>
      %1324 = arith.mulf %1323, %1322 : vector<2x16xf32>
      %cst_614 = arith.constant 5.000000e-01 : f32
      %1325 = vector.broadcast %cst_614 : f32 to vector<2x16xf32>
      %1326 = arith.addf %1324, %1325 : vector<2x16xf32>
      %1327 = arith.mulf %1316, %1211 : vector<2x16xf32>
      %1328 = arith.mulf %1308, %1318 : vector<2x16xf32>
      %1329 = arith.addf %1327, %1328 : vector<2x16xf32>
      %1330 = math.tanh %1329 : vector<2x16xf32>
      %1331 = arith.mulf %1326, %1330 : vector<2x16xf32>
      %1332 = arith.truncf %1331 : vector<2x16xf32> to vector<2x16xbf16>
      %c2_i32_615 = arith.constant 2 : i32
      %1333 = arith.muli %c3_i32_567, %c2_i32_615 : i32
      %1334 = arith.index_cast %1333 : i32 to index
      %c0_616 = arith.constant 0 : index
      %1335 = vector.load %arg12[%1334, %c0_616] : memref<8x16xbf16, #tpu.memory_space<vmem>>, vector<2x16xbf16>
      tpu.vector_store %arg12[%1334, %c0_616], %1300 {strides = array<i32>} : memref<8x16xbf16, #tpu.memory_space<vmem>>, vector<2x16xbf16>,
      %c3_i32_617 = arith.constant 3 : i32
      %1336 = arith.subi %c3_i32_617, %c3_i32_567 : i32
      %c2_i32_618 = arith.constant 2 : i32
      %1337 = arith.muli %1336, %c2_i32_618 : i32
      %1338 = arith.index_cast %1337 : i32 to index
      %c0_619 = arith.constant 0 : index
      %1339 = vector.load %arg13[%1338, %c0_619] : memref<8x16xbf16, #tpu.memory_space<vmem>>, vector<2x16xbf16>
      tpu.vector_store %arg13[%1338, %c0_619], %1332 {strides = array<i32>} : memref<8x16xbf16, #tpu.memory_space<vmem>>, vector<2x16xbf16>,
      %c4_i32_620 = arith.constant 4 : i32
      %c8_i32_621 = arith.constant 8 : i32
      %1340 = arith.muli %arg14, %c8_i32_621 : i32
      %c8_i32_622 = arith.constant 8 : i32
      %1341 = arith.muli %867, %c8_i32_622 : i32
      %c0_623 = arith.constant 0 : index
      %c0_624 = arith.constant 0 : index
      %1342 = vector.load %arg12[%c0_623, %c0_624] : memref<8x16xbf16, #tpu.memory_space<vmem>>, vector<8x16xbf16>
      %cst_625 = arith.constant dense<0.000000e+00> : vector<8x128xf32>
      %1343 = tpu.matmul %1342, %6, %cst_625 {dimension_numbers = #tpu.dot_dimension_numbers<[1], [0], [0], [1], [0, 0, 1, 1], [], []>} : vector<8x16xbf16>, vector<16x128xbf16>, vector<8x128xf32> -> vector<8x128xf32>
      %c0_626 = arith.constant 0 : index
      %1344 = arith.index_cast %1340 : i32 to index
      %c0_627 = arith.constant 0 : index
      %1345 = vector.load %arg9[%c0_626, %1344, %c0_627] : memref<1x16x128xf32, #tpu.memory_space<vmem>>, vector<1x8x128xf32>
      %1346 = vector.shape_cast %1345 : vector<1x8x128xf32> to vector<8x128xf32>
      %1347 = arith.addf %1346, %1343 : vector<8x128xf32>
      %c0_628 = arith.constant 0 : index
      %1348 = arith.index_cast %1340 : i32 to index
      %c0_629 = arith.constant 0 : index
      %1349 = vector.load %arg9[%c0_628, %1348, %c0_629] : memref<1x16x128xf32, #tpu.memory_space<vmem>>, vector<1x8x128xf32>
      %1350 = vector.shape_cast %1349 : vector<1x8x128xf32> to vector<8x128xf32>
      %1351 = vector.shape_cast %1347 : vector<8x128xf32> to vector<1x8x128xf32>
      tpu.vector_store %arg9[%c0_628, %1348, %c0_629], %1351 {strides = array<i32>} : memref<1x16x128xf32, #tpu.memory_space<vmem>>, vector<1x8x128xf32>,
      %c0_630 = arith.constant 0 : index
      %c0_631 = arith.constant 0 : index
      %1352 = vector.load %arg13[%c0_630, %c0_631] : memref<8x16xbf16, #tpu.memory_space<vmem>>, vector<8x16xbf16>
      %cst_632 = arith.constant dense<0.000000e+00> : vector<8x128xf32>
      %1353 = tpu.matmul %1352, %7, %cst_632 {dimension_numbers = #tpu.dot_dimension_numbers<[1], [0], [0], [1], [0, 0, 1, 1], [], []>} : vector<8x16xbf16>, vector<16x128xbf16>, vector<8x128xf32> -> vector<8x128xf32>
      %c0_633 = arith.constant 0 : index
      %1354 = arith.index_cast %1341 : i32 to index
      %c0_634 = arith.constant 0 : index
      %1355 = vector.load %arg9[%c0_633, %1354, %c0_634] : memref<1x16x128xf32, #tpu.memory_space<vmem>>, vector<1x8x128xf32>
      %1356 = vector.shape_cast %1355 : vector<1x8x128xf32> to vector<8x128xf32>
      %1357 = arith.addf %1356, %1353 : vector<8x128xf32>
      %c0_635 = arith.constant 0 : index
      %1358 = arith.index_cast %1341 : i32 to index
      %c0_636 = arith.constant 0 : index
      %1359 = vector.load %arg9[%c0_635, %1358, %c0_636] : memref<1x16x128xf32, #tpu.memory_space<vmem>>, vector<1x8x128xf32>
      %1360 = vector.shape_cast %1359 : vector<1x8x128xf32> to vector<8x128xf32>
      %1361 = vector.shape_cast %1357 : vector<8x128xf32> to vector<1x8x128xf32>
      tpu.vector_store %arg9[%c0_635, %1358, %c0_636], %1361 {strides = array<i32>} : memref<1x16x128xf32, #tpu.memory_space<vmem>>, vector<1x8x128xf32>,
      scf.yield %1300, %1332, %1297, %1329 : vector<2x16xbf16>, vector<2x16xbf16>, vector<2x16xf32>, vector<2x16xf32>
    }
    %c0_i32_253 = arith.constant 0 : i32
    %c0_i32_254 = arith.constant 0 : i32
    %cst_255 = arith.constant dense<0.000000e+00> : vector<2x64xf32>
    %513 = tpu.matmul %512#0, %4, %cst_255 {dimension_numbers = #tpu.dot_dimension_numbers<[1], [0], [0], [1], [0, 0, 1, 1], [], []>} : vector<2x16xbf16>, vector<16x64xbf16>, vector<2x64xf32> -> vector<2x64xf32>
    %cst_256 = arith.constant dense<0.000000e+00> : vector<2x64xf32>
    %514 = tpu.matmul %512#1, %5, %cst_256 {dimension_numbers = #tpu.dot_dimension_numbers<[1], [0], [0], [1], [0, 0, 1, 1], [], []>} : vector<2x16xbf16>, vector<16x64xbf16>, vector<2x64xf32> -> vector<2x64xf32>
    %c2_i32_257 = arith.constant 2 : i32
    %515 = arith.muli %c0_i32_254, %c2_i32_257 : i32
    %c8_i32_258 = arith.constant 8 : i32
    %516 = arith.addi %c8_i32_258, %515 : i32
    %517 = arith.index_cast %516 : i32 to index
    %c0_259 = arith.constant 0 : index
    %518 = vector.load %arg10[%517, %c0_259] : memref<16x64xf32, #tpu.memory_space<vmem>>, vector<2x64xf32>
    %519 = arith.addf %518, %513 : vector<2x64xf32>
    %c3_i32_260 = arith.constant 3 : i32
    %520 = arith.subi %c3_i32_260, %c0_i32_254 : i32
    %c2_i32_261 = arith.constant 2 : i32
    %521 = arith.muli %520, %c2_i32_261 : i32
    %c8_i32_262 = arith.constant 8 : i32
    %522 = arith.addi %c8_i32_262, %521 : i32
    %523 = arith.index_cast %522 : i32 to index
    %c0_263 = arith.constant 0 : index
    %524 = vector.load %arg11[%523, %c0_263] : memref<16x64xf32, #tpu.memory_space<vmem>>, vector<2x64xf32>
    %525 = arith.addf %524, %514 : vector<2x64xf32>
    %526 = vector.extract_strided_slice %519 {offsets = [0, 0], sizes = [2, 16], strides = [1, 1]} : vector<2x64xf32> to vector<2x16xf32>
    %cst_264 = arith.constant 5.000000e-01 : f32
    %527 = vector.broadcast %cst_264 : f32 to vector<2x16xf32>
    %528 = arith.mulf %527, %526 : vector<2x16xf32>
    %529 = math.tanh %528 : vector<2x16xf32>
    %cst_265 = arith.constant 5.000000e-01 : f32
    %530 = vector.broadcast %cst_265 : f32 to vector<2x16xf32>
    %531 = arith.mulf %530, %529 : vector<2x16xf32>
    %cst_266 = arith.constant 5.000000e-01 : f32
    %532 = vector.broadcast %cst_266 : f32 to vector<2x16xf32>
    %533 = arith.addf %531, %532 : vector<2x16xf32>
    %534 = vector.extract_strided_slice %519 {offsets = [0, 16], sizes = [2, 16], strides = [1, 1]} : vector<2x64xf32> to vector<2x16xf32>
    %cst_267 = arith.constant 5.000000e-01 : f32
    %535 = vector.broadcast %cst_267 : f32 to vector<2x16xf32>
    %536 = arith.mulf %535, %534 : vector<2x16xf32>
    %537 = math.tanh %536 : vector<2x16xf32>
    %cst_268 = arith.constant 5.000000e-01 : f32
    %538 = vector.broadcast %cst_268 : f32 to vector<2x16xf32>
    %539 = arith.mulf %538, %537 : vector<2x16xf32>
    %cst_269 = arith.constant 5.000000e-01 : f32
    %540 = vector.broadcast %cst_269 : f32 to vector<2x16xf32>
    %541 = arith.addf %539, %540 : vector<2x16xf32>
    %542 = vector.extract_strided_slice %519 {offsets = [0, 32], sizes = [2, 16], strides = [1, 1]} : vector<2x64xf32> to vector<2x16xf32>
    %543 = math.tanh %542 : vector<2x16xf32>
    %544 = vector.extract_strided_slice %519 {offsets = [0, 48], sizes = [2, 16], strides = [1, 1]} : vector<2x64xf32> to vector<2x16xf32>
    %cst_270 = arith.constant 5.000000e-01 : f32
    %545 = vector.broadcast %cst_270 : f32 to vector<2x16xf32>
    %546 = arith.mulf %545, %544 : vector<2x16xf32>
    %547 = math.tanh %546 : vector<2x16xf32>
    %cst_271 = arith.constant 5.000000e-01 : f32
    %548 = vector.broadcast %cst_271 : f32 to vector<2x16xf32>
    %549 = arith.mulf %548, %547 : vector<2x16xf32>
    %cst_272 = arith.constant 5.000000e-01 : f32
    %550 = vector.broadcast %cst_272 : f32 to vector<2x16xf32>
    %551 = arith.addf %549, %550 : vector<2x16xf32>
    %552 = arith.mulf %541, %512#2 : vector<2x16xf32>
    %553 = arith.mulf %533, %543 : vector<2x16xf32>
    %554 = arith.addf %552, %553 : vector<2x16xf32>
    %555 = math.tanh %554 : vector<2x16xf32>
    %556 = arith.mulf %551, %555 : vector<2x16xf32>
    %557 = arith.truncf %556 : vector<2x16xf32> to vector<2x16xbf16>
    %558 = vector.extract_strided_slice %525 {offsets = [0, 0], sizes = [2, 16], strides = [1, 1]} : vector<2x64xf32> to vector<2x16xf32>
    %cst_273 = arith.constant 5.000000e-01 : f32
    %559 = vector.broadcast %cst_273 : f32 to vector<2x16xf32>
    %560 = arith.mulf %559, %558 : vector<2x16xf32>
    %561 = math.tanh %560 : vector<2x16xf32>
    %cst_274 = arith.constant 5.000000e-01 : f32
    %562 = vector.broadcast %cst_274 : f32 to vector<2x16xf32>
    %563 = arith.mulf %562, %561 : vector<2x16xf32>
    %cst_275 = arith.constant 5.000000e-01 : f32
    %564 = vector.broadcast %cst_275 : f32 to vector<2x16xf32>
    %565 = arith.addf %563, %564 : vector<2x16xf32>
    %566 = vector.extract_strided_slice %525 {offsets = [0, 16], sizes = [2, 16], strides = [1, 1]} : vector<2x64xf32> to vector<2x16xf32>
    %cst_276 = arith.constant 5.000000e-01 : f32
    %567 = vector.broadcast %cst_276 : f32 to vector<2x16xf32>
    %568 = arith.mulf %567, %566 : vector<2x16xf32>
    %569 = math.tanh %568 : vector<2x16xf32>
    %cst_277 = arith.constant 5.000000e-01 : f32
    %570 = vector.broadcast %cst_277 : f32 to vector<2x16xf32>
    %571 = arith.mulf %570, %569 : vector<2x16xf32>
    %cst_278 = arith.constant 5.000000e-01 : f32
    %572 = vector.broadcast %cst_278 : f32 to vector<2x16xf32>
    %573 = arith.addf %571, %572 : vector<2x16xf32>
    %574 = vector.extract_strided_slice %525 {offsets = [0, 32], sizes = [2, 16], strides = [1, 1]} : vector<2x64xf32> to vector<2x16xf32>
    %575 = math.tanh %574 : vector<2x16xf32>
    %576 = vector.extract_strided_slice %525 {offsets = [0, 48], sizes = [2, 16], strides = [1, 1]} : vector<2x64xf32> to vector<2x16xf32>
    %cst_279 = arith.constant 5.000000e-01 : f32
    %577 = vector.broadcast %cst_279 : f32 to vector<2x16xf32>
    %578 = arith.mulf %577, %576 : vector<2x16xf32>
    %579 = math.tanh %578 : vector<2x16xf32>
    %cst_280 = arith.constant 5.000000e-01 : f32
    %580 = vector.broadcast %cst_280 : f32 to vector<2x16xf32>
    %581 = arith.mulf %580, %579 : vector<2x16xf32>
    %cst_281 = arith.constant 5.000000e-01 : f32
    %582 = vector.broadcast %cst_281 : f32 to vector<2x16xf32>
    %583 = arith.addf %581, %582 : vector<2x16xf32>
    %584 = arith.mulf %573, %512#3 : vector<2x16xf32>
    %585 = arith.mulf %565, %575 : vector<2x16xf32>
    %586 = arith.addf %584, %585 : vector<2x16xf32>
    %587 = math.tanh %586 : vector<2x16xf32>
    %588 = arith.mulf %583, %587 : vector<2x16xf32>
    %589 = arith.truncf %588 : vector<2x16xf32> to vector<2x16xbf16>
    %c2_i32_282 = arith.constant 2 : i32
    %590 = arith.muli %c0_i32_254, %c2_i32_282 : i32
    %591 = arith.index_cast %590 : i32 to index
    %c0_283 = arith.constant 0 : index
    %592 = vector.load %arg12[%591, %c0_283] : memref<8x16xbf16, #tpu.memory_space<vmem>>, vector<2x16xbf16>
    tpu.vector_store %arg12[%591, %c0_283], %557 {strides = array<i32>} : memref<8x16xbf16, #tpu.memory_space<vmem>>, vector<2x16xbf16>,
    %c3_i32_284 = arith.constant 3 : i32
    %593 = arith.subi %c3_i32_284, %c0_i32_254 : i32
    %c2_i32_285 = arith.constant 2 : i32
    %594 = arith.muli %593, %c2_i32_285 : i32
    %595 = arith.index_cast %594 : i32 to index
    %c0_286 = arith.constant 0 : index
    %596 = vector.load %arg13[%595, %c0_286] : memref<8x16xbf16, #tpu.memory_space<vmem>>, vector<2x16xbf16>
    tpu.vector_store %arg13[%595, %c0_286], %589 {strides = array<i32>} : memref<8x16xbf16, #tpu.memory_space<vmem>>, vector<2x16xbf16>,
    %c1_i32_287 = arith.constant 1 : i32
    %cst_288 = arith.constant dense<0.000000e+00> : vector<2x64xf32>
    %597 = tpu.matmul %557, %4, %cst_288 {dimension_numbers = #tpu.dot_dimension_numbers<[1], [0], [0], [1], [0, 0, 1, 1], [], []>} : vector<2x16xbf16>, vector<16x64xbf16>, vector<2x64xf32> -> vector<2x64xf32>
    %cst_289 = arith.constant dense<0.000000e+00> : vector<2x64xf32>
    %598 = tpu.matmul %589, %5, %cst_289 {dimension_numbers = #tpu.dot_dimension_numbers<[1], [0], [0], [1], [0, 0, 1, 1], [], []>} : vector<2x16xbf16>, vector<16x64xbf16>, vector<2x64xf32> -> vector<2x64xf32>
    %c2_i32_290 = arith.constant 2 : i32
    %599 = arith.muli %c1_i32_287, %c2_i32_290 : i32
    %c8_i32_291 = arith.constant 8 : i32
    %600 = arith.addi %c8_i32_291, %599 : i32
    %601 = arith.index_cast %600 : i32 to index
    %c0_292 = arith.constant 0 : index
    %602 = vector.load %arg10[%601, %c0_292] : memref<16x64xf32, #tpu.memory_space<vmem>>, vector<2x64xf32>
    %603 = arith.addf %602, %597 : vector<2x64xf32>
    %c3_i32_293 = arith.constant 3 : i32
    %604 = arith.subi %c3_i32_293, %c1_i32_287 : i32
    %c2_i32_294 = arith.constant 2 : i32
    %605 = arith.muli %604, %c2_i32_294 : i32
    %c8_i32_295 = arith.constant 8 : i32
    %606 = arith.addi %c8_i32_295, %605 : i32
    %607 = arith.index_cast %606 : i32 to index
    %c0_296 = arith.constant 0 : index
    %608 = vector.load %arg11[%607, %c0_296] : memref<16x64xf32, #tpu.memory_space<vmem>>, vector<2x64xf32>
    %609 = arith.addf %608, %598 : vector<2x64xf32>
    %610 = vector.extract_strided_slice %603 {offsets = [0, 0], sizes = [2, 16], strides = [1, 1]} : vector<2x64xf32> to vector<2x16xf32>
    %cst_297 = arith.constant 5.000000e-01 : f32
    %611 = vector.broadcast %cst_297 : f32 to vector<2x16xf32>
    %612 = arith.mulf %611, %610 : vector<2x16xf32>
    %613 = math.tanh %612 : vector<2x16xf32>
    %cst_298 = arith.constant 5.000000e-01 : f32
    %614 = vector.broadcast %cst_298 : f32 to vector<2x16xf32>
    %615 = arith.mulf %614, %613 : vector<2x16xf32>
    %cst_299 = arith.constant 5.000000e-01 : f32
    %616 = vector.broadcast %cst_299 : f32 to vector<2x16xf32>
    %617 = arith.addf %615, %616 : vector<2x16xf32>
    %618 = vector.extract_strided_slice %603 {offsets = [0, 16], sizes = [2, 16], strides = [1, 1]} : vector<2x64xf32> to vector<2x16xf32>
    %cst_300 = arith.constant 5.000000e-01 : f32
    %619 = vector.broadcast %cst_300 : f32 to vector<2x16xf32>
    %620 = arith.mulf %619, %618 : vector<2x16xf32>
    %621 = math.tanh %620 : vector<2x16xf32>
    %cst_301 = arith.constant 5.000000e-01 : f32
    %622 = vector.broadcast %cst_301 : f32 to vector<2x16xf32>
    %623 = arith.mulf %622, %621 : vector<2x16xf32>
    %cst_302 = arith.constant 5.000000e-01 : f32
    %624 = vector.broadcast %cst_302 : f32 to vector<2x16xf32>
    %625 = arith.addf %623, %624 : vector<2x16xf32>
    %626 = vector.extract_strided_slice %603 {offsets = [0, 32], sizes = [2, 16], strides = [1, 1]} : vector<2x64xf32> to vector<2x16xf32>
    %627 = math.tanh %626 : vector<2x16xf32>
    %628 = vector.extract_strided_slice %603 {offsets = [0, 48], sizes = [2, 16], strides = [1, 1]} : vector<2x64xf32> to vector<2x16xf32>
    %cst_303 = arith.constant 5.000000e-01 : f32
    %629 = vector.broadcast %cst_303 : f32 to vector<2x16xf32>
    %630 = arith.mulf %629, %628 : vector<2x16xf32>
    %631 = math.tanh %630 : vector<2x16xf32>
    %cst_304 = arith.constant 5.000000e-01 : f32
    %632 = vector.broadcast %cst_304 : f32 to vector<2x16xf32>
    %633 = arith.mulf %632, %631 : vector<2x16xf32>
    %cst_305 = arith.constant 5.000000e-01 : f32
    %634 = vector.broadcast %cst_305 : f32 to vector<2x16xf32>
    %635 = arith.addf %633, %634 : vector<2x16xf32>
    %636 = arith.mulf %625, %554 : vector<2x16xf32>
    %637 = arith.mulf %617, %627 : vector<2x16xf32>
    %638 = arith.addf %636, %637 : vector<2x16xf32>
    %639 = math.tanh %638 : vector<2x16xf32>
    %640 = arith.mulf %635, %639 : vector<2x16xf32>
    %641 = arith.truncf %640 : vector<2x16xf32> to vector<2x16xbf16>
    %642 = vector.extract_strided_slice %609 {offsets = [0, 0], sizes = [2, 16], strides = [1, 1]} : vector<2x64xf32> to vector<2x16xf32>
    %cst_306 = arith.constant 5.000000e-01 : f32
    %643 = vector.broadcast %cst_306 : f32 to vector<2x16xf32>
    %644 = arith.mulf %643, %642 : vector<2x16xf32>
    %645 = math.tanh %644 : vector<2x16xf32>
    %cst_307 = arith.constant 5.000000e-01 : f32
    %646 = vector.broadcast %cst_307 : f32 to vector<2x16xf32>
    %647 = arith.mulf %646, %645 : vector<2x16xf32>
    %cst_308 = arith.constant 5.000000e-01 : f32
    %648 = vector.broadcast %cst_308 : f32 to vector<2x16xf32>
    %649 = arith.addf %647, %648 : vector<2x16xf32>
    %650 = vector.extract_strided_slice %609 {offsets = [0, 16], sizes = [2, 16], strides = [1, 1]} : vector<2x64xf32> to vector<2x16xf32>
    %cst_309 = arith.constant 5.000000e-01 : f32
    %651 = vector.broadcast %cst_309 : f32 to vector<2x16xf32>
    %652 = arith.mulf %651, %650 : vector<2x16xf32>
    %653 = math.tanh %652 : vector<2x16xf32>
    %cst_310 = arith.constant 5.000000e-01 : f32
    %654 = vector.broadcast %cst_310 : f32 to vector<2x16xf32>
    %655 = arith.mulf %654, %653 : vector<2x16xf32>
    %cst_311 = arith.constant 5.000000e-01 : f32
    %656 = vector.broadcast %cst_311 : f32 to vector<2x16xf32>
    %657 = arith.addf %655, %656 : vector<2x16xf32>
    %658 = vector.extract_strided_slice %609 {offsets = [0, 32], sizes = [2, 16], strides = [1, 1]} : vector<2x64xf32> to vector<2x16xf32>
    %659 = math.tanh %658 : vector<2x16xf32>
    %660 = vector.extract_strided_slice %609 {offsets = [0, 48], sizes = [2, 16], strides = [1, 1]} : vector<2x64xf32> to vector<2x16xf32>
    %cst_312 = arith.constant 5.000000e-01 : f32
    %661 = vector.broadcast %cst_312 : f32 to vector<2x16xf32>
    %662 = arith.mulf %661, %660 : vector<2x16xf32>
    %663 = math.tanh %662 : vector<2x16xf32>
    %cst_313 = arith.constant 5.000000e-01 : f32
    %664 = vector.broadcast %cst_313 : f32 to vector<2x16xf32>
    %665 = arith.mulf %664, %663 : vector<2x16xf32>
    %cst_314 = arith.constant 5.000000e-01 : f32
    %666 = vector.broadcast %cst_314 : f32 to vector<2x16xf32>
    %667 = arith.addf %665, %666 : vector<2x16xf32>
    %668 = arith.mulf %657, %586 : vector<2x16xf32>
    %669 = arith.mulf %649, %659 : vector<2x16xf32>
    %670 = arith.addf %668, %669 : vector<2x16xf32>
    %671 = math.tanh %670 : vector<2x16xf32>
    %672 = arith.mulf %667, %671 : vector<2x16xf32>
    %673 = arith.truncf %672 : vector<2x16xf32> to vector<2x16xbf16>
    %c2_i32_315 = arith.constant 2 : i32
    %674 = arith.muli %c1_i32_287, %c2_i32_315 : i32
    %675 = arith.index_cast %674 : i32 to index
    %c0_316 = arith.constant 0 : index
    %676 = vector.load %arg12[%675, %c0_316] : memref<8x16xbf16, #tpu.memory_space<vmem>>, vector<2x16xbf16>
    tpu.vector_store %arg12[%675, %c0_316], %641 {strides = array<i32>} : memref<8x16xbf16, #tpu.memory_space<vmem>>, vector<2x16xbf16>,
    %c3_i32_317 = arith.constant 3 : i32
    %677 = arith.subi %c3_i32_317, %c1_i32_287 : i32
    %c2_i32_318 = arith.constant 2 : i32
    %678 = arith.muli %677, %c2_i32_318 : i32
    %679 = arith.index_cast %678 : i32 to index
    %c0_319 = arith.constant 0 : index
    %680 = vector.load %arg13[%679, %c0_319] : memref<8x16xbf16, #tpu.memory_space<vmem>>, vector<2x16xbf16>
    tpu.vector_store %arg13[%679, %c0_319], %673 {strides = array<i32>} : memref<8x16xbf16, #tpu.memory_space<vmem>>, vector<2x16xbf16>,
    %c2_i32_320 = arith.constant 2 : i32
    %cst_321 = arith.constant dense<0.000000e+00> : vector<2x64xf32>
    %681 = tpu.matmul %641, %4, %cst_321 {dimension_numbers = #tpu.dot_dimension_numbers<[1], [0], [0], [1], [0, 0, 1, 1], [], []>} : vector<2x16xbf16>, vector<16x64xbf16>, vector<2x64xf32> -> vector<2x64xf32>
    %cst_322 = arith.constant dense<0.000000e+00> : vector<2x64xf32>
    %682 = tpu.matmul %673, %5, %cst_322 {dimension_numbers = #tpu.dot_dimension_numbers<[1], [0], [0], [1], [0, 0, 1, 1], [], []>} : vector<2x16xbf16>, vector<16x64xbf16>, vector<2x64xf32> -> vector<2x64xf32>
    %c2_i32_323 = arith.constant 2 : i32
    %683 = arith.muli %c2_i32_320, %c2_i32_323 : i32
    %c8_i32_324 = arith.constant 8 : i32
    %684 = arith.addi %c8_i32_324, %683 : i32
    %685 = arith.index_cast %684 : i32 to index
    %c0_325 = arith.constant 0 : index
    %686 = vector.load %arg10[%685, %c0_325] : memref<16x64xf32, #tpu.memory_space<vmem>>, vector<2x64xf32>
    %687 = arith.addf %686, %681 : vector<2x64xf32>
    %c3_i32_326 = arith.constant 3 : i32
    %688 = arith.subi %c3_i32_326, %c2_i32_320 : i32
    %c2_i32_327 = arith.constant 2 : i32
    %689 = arith.muli %688, %c2_i32_327 : i32
    %c8_i32_328 = arith.constant 8 : i32
    %690 = arith.addi %c8_i32_328, %689 : i32
    %691 = arith.index_cast %690 : i32 to index
    %c0_329 = arith.constant 0 : index
    %692 = vector.load %arg11[%691, %c0_329] : memref<16x64xf32, #tpu.memory_space<vmem>>, vector<2x64xf32>
    %693 = arith.addf %692, %682 : vector<2x64xf32>
    %694 = vector.extract_strided_slice %687 {offsets = [0, 0], sizes = [2, 16], strides = [1, 1]} : vector<2x64xf32> to vector<2x16xf32>
    %cst_330 = arith.constant 5.000000e-01 : f32
    %695 = vector.broadcast %cst_330 : f32 to vector<2x16xf32>
    %696 = arith.mulf %695, %694 : vector<2x16xf32>
    %697 = math.tanh %696 : vector<2x16xf32>
    %cst_331 = arith.constant 5.000000e-01 : f32
    %698 = vector.broadcast %cst_331 : f32 to vector<2x16xf32>
    %699 = arith.mulf %698, %697 : vector<2x16xf32>
    %cst_332 = arith.constant 5.000000e-01 : f32
    %700 = vector.broadcast %cst_332 : f32 to vector<2x16xf32>
    %701 = arith.addf %699, %700 : vector<2x16xf32>
    %702 = vector.extract_strided_slice %687 {offsets = [0, 16], sizes = [2, 16], strides = [1, 1]} : vector<2x64xf32> to vector<2x16xf32>
    %cst_333 = arith.constant 5.000000e-01 : f32
    %703 = vector.broadcast %cst_333 : f32 to vector<2x16xf32>
    %704 = arith.mulf %703, %702 : vector<2x16xf32>
    %705 = math.tanh %704 : vector<2x16xf32>
    %cst_334 = arith.constant 5.000000e-01 : f32
    %706 = vector.broadcast %cst_334 : f32 to vector<2x16xf32>
    %707 = arith.mulf %706, %705 : vector<2x16xf32>
    %cst_335 = arith.constant 5.000000e-01 : f32
    %708 = vector.broadcast %cst_335 : f32 to vector<2x16xf32>
    %709 = arith.addf %707, %708 : vector<2x16xf32>
    %710 = vector.extract_strided_slice %687 {offsets = [0, 32], sizes = [2, 16], strides = [1, 1]} : vector<2x64xf32> to vector<2x16xf32>
    %711 = math.tanh %710 : vector<2x16xf32>
    %712 = vector.extract_strided_slice %687 {offsets = [0, 48], sizes = [2, 16], strides = [1, 1]} : vector<2x64xf32> to vector<2x16xf32>
    %cst_336 = arith.constant 5.000000e-01 : f32
    %713 = vector.broadcast %cst_336 : f32 to vector<2x16xf32>
    %714 = arith.mulf %713, %712 : vector<2x16xf32>
    %715 = math.tanh %714 : vector<2x16xf32>
    %cst_337 = arith.constant 5.000000e-01 : f32
    %716 = vector.broadcast %cst_337 : f32 to vector<2x16xf32>
    %717 = arith.mulf %716, %715 : vector<2x16xf32>
    %cst_338 = arith.constant 5.000000e-01 : f32
    %718 = vector.broadcast %cst_338 : f32 to vector<2x16xf32>
    %719 = arith.addf %717, %718 : vector<2x16xf32>
    %720 = arith.mulf %709, %638 : vector<2x16xf32>
    %721 = arith.mulf %701, %711 : vector<2x16xf32>
    %722 = arith.addf %720, %721 : vector<2x16xf32>
    %723 = math.tanh %722 : vector<2x16xf32>
    %724 = arith.mulf %719, %723 : vector<2x16xf32>
    %725 = arith.truncf %724 : vector<2x16xf32> to vector<2x16xbf16>
    %726 = vector.extract_strided_slice %693 {offsets = [0, 0], sizes = [2, 16], strides = [1, 1]} : vector<2x64xf32> to vector<2x16xf32>
    %cst_339 = arith.constant 5.000000e-01 : f32
    %727 = vector.broadcast %cst_339 : f32 to vector<2x16xf32>
    %728 = arith.mulf %727, %726 : vector<2x16xf32>
    %729 = math.tanh %728 : vector<2x16xf32>
    %cst_340 = arith.constant 5.000000e-01 : f32
    %730 = vector.broadcast %cst_340 : f32 to vector<2x16xf32>
    %731 = arith.mulf %730, %729 : vector<2x16xf32>
    %cst_341 = arith.constant 5.000000e-01 : f32
    %732 = vector.broadcast %cst_341 : f32 to vector<2x16xf32>
    %733 = arith.addf %731, %732 : vector<2x16xf32>
    %734 = vector.extract_strided_slice %693 {offsets = [0, 16], sizes = [2, 16], strides = [1, 1]} : vector<2x64xf32> to vector<2x16xf32>
    %cst_342 = arith.constant 5.000000e-01 : f32
    %735 = vector.broadcast %cst_342 : f32 to vector<2x16xf32>
    %736 = arith.mulf %735, %734 : vector<2x16xf32>
    %737 = math.tanh %736 : vector<2x16xf32>
    %cst_343 = arith.constant 5.000000e-01 : f32
    %738 = vector.broadcast %cst_343 : f32 to vector<2x16xf32>
    %739 = arith.mulf %738, %737 : vector<2x16xf32>
    %cst_344 = arith.constant 5.000000e-01 : f32
    %740 = vector.broadcast %cst_344 : f32 to vector<2x16xf32>
    %741 = arith.addf %739, %740 : vector<2x16xf32>
    %742 = vector.extract_strided_slice %693 {offsets = [0, 32], sizes = [2, 16], strides = [1, 1]} : vector<2x64xf32> to vector<2x16xf32>
    %743 = math.tanh %742 : vector<2x16xf32>
    %744 = vector.extract_strided_slice %693 {offsets = [0, 48], sizes = [2, 16], strides = [1, 1]} : vector<2x64xf32> to vector<2x16xf32>
    %cst_345 = arith.constant 5.000000e-01 : f32
    %745 = vector.broadcast %cst_345 : f32 to vector<2x16xf32>
    %746 = arith.mulf %745, %744 : vector<2x16xf32>
    %747 = math.tanh %746 : vector<2x16xf32>
    %cst_346 = arith.constant 5.000000e-01 : f32
    %748 = vector.broadcast %cst_346 : f32 to vector<2x16xf32>
    %749 = arith.mulf %748, %747 : vector<2x16xf32>
    %cst_347 = arith.constant 5.000000e-01 : f32
    %750 = vector.broadcast %cst_347 : f32 to vector<2x16xf32>
    %751 = arith.addf %749, %750 : vector<2x16xf32>
    %752 = arith.mulf %741, %670 : vector<2x16xf32>
    %753 = arith.mulf %733, %743 : vector<2x16xf32>
    %754 = arith.addf %752, %753 : vector<2x16xf32>
    %755 = math.tanh %754 : vector<2x16xf32>
    %756 = arith.mulf %751, %755 : vector<2x16xf32>
    %757 = arith.truncf %756 : vector<2x16xf32> to vector<2x16xbf16>
    %c2_i32_348 = arith.constant 2 : i32
    %758 = arith.muli %c2_i32_320, %c2_i32_348 : i32
    %759 = arith.index_cast %758 : i32 to index
    %c0_349 = arith.constant 0 : index
    %760 = vector.load %arg12[%759, %c0_349] : memref<8x16xbf16, #tpu.memory_space<vmem>>, vector<2x16xbf16>
    tpu.vector_store %arg12[%759, %c0_349], %725 {strides = array<i32>} : memref<8x16xbf16, #tpu.memory_space<vmem>>, vector<2x16xbf16>,
    %c3_i32_350 = arith.constant 3 : i32
    %761 = arith.subi %c3_i32_350, %c2_i32_320 : i32
    %c2_i32_351 = arith.constant 2 : i32
    %762 = arith.muli %761, %c2_i32_351 : i32
    %763 = arith.index_cast %762 : i32 to index
    %c0_352 = arith.constant 0 : index
    %764 = vector.load %arg13[%763, %c0_352] : memref<8x16xbf16, #tpu.memory_space<vmem>>, vector<2x16xbf16>
    tpu.vector_store %arg13[%763, %c0_352], %757 {strides = array<i32>} : memref<8x16xbf16, #tpu.memory_space<vmem>>, vector<2x16xbf16>,
    %c3_i32_353 = arith.constant 3 : i32
    %cst_354 = arith.constant dense<0.000000e+00> : vector<2x64xf32>
    %765 = tpu.matmul %725, %4, %cst_354 {dimension_numbers = #tpu.dot_dimension_numbers<[1], [0], [0], [1], [0, 0, 1, 1], [], []>} : vector<2x16xbf16>, vector<16x64xbf16>, vector<2x64xf32> -> vector<2x64xf32>
    %cst_355 = arith.constant dense<0.000000e+00> : vector<2x64xf32>
    %766 = tpu.matmul %757, %5, %cst_355 {dimension_numbers = #tpu.dot_dimension_numbers<[1], [0], [0], [1], [0, 0, 1, 1], [], []>} : vector<2x16xbf16>, vector<16x64xbf16>, vector<2x64xf32> -> vector<2x64xf32>
    %c2_i32_356 = arith.constant 2 : i32
    %767 = arith.muli %c3_i32_353, %c2_i32_356 : i32
    %c8_i32_357 = arith.constant 8 : i32
    %768 = arith.addi %c8_i32_357, %767 : i32
    %769 = arith.index_cast %768 : i32 to index
    %c0_358 = arith.constant 0 : index
    %770 = vector.load %arg10[%769, %c0_358] : memref<16x64xf32, #tpu.memory_space<vmem>>, vector<2x64xf32>
    %771 = arith.addf %770, %765 : vector<2x64xf32>
    %c3_i32_359 = arith.constant 3 : i32
    %772 = arith.subi %c3_i32_359, %c3_i32_353 : i32
    %c2_i32_360 = arith.constant 2 : i32
    %773 = arith.muli %772, %c2_i32_360 : i32
    %c8_i32_361 = arith.constant 8 : i32
    %774 = arith.addi %c8_i32_361, %773 : i32
    %775 = arith.index_cast %774 : i32 to index
    %c0_362 = arith.constant 0 : index
    %776 = vector.load %arg11[%775, %c0_362] : memref<16x64xf32, #tpu.memory_space<vmem>>, vector<2x64xf32>
    %777 = arith.addf %776, %766 : vector<2x64xf32>
    %778 = vector.extract_strided_slice %771 {offsets = [0, 0], sizes = [2, 16], strides = [1, 1]} : vector<2x64xf32> to vector<2x16xf32>
    %cst_363 = arith.constant 5.000000e-01 : f32
    %779 = vector.broadcast %cst_363 : f32 to vector<2x16xf32>
    %780 = arith.mulf %779, %778 : vector<2x16xf32>
    %781 = math.tanh %780 : vector<2x16xf32>
    %cst_364 = arith.constant 5.000000e-01 : f32
    %782 = vector.broadcast %cst_364 : f32 to vector<2x16xf32>
    %783 = arith.mulf %782, %781 : vector<2x16xf32>
    %cst_365 = arith.constant 5.000000e-01 : f32
    %784 = vector.broadcast %cst_365 : f32 to vector<2x16xf32>
    %785 = arith.addf %783, %784 : vector<2x16xf32>
    %786 = vector.extract_strided_slice %771 {offsets = [0, 16], sizes = [2, 16], strides = [1, 1]} : vector<2x64xf32> to vector<2x16xf32>
    %cst_366 = arith.constant 5.000000e-01 : f32
    %787 = vector.broadcast %cst_366 : f32 to vector<2x16xf32>
    %788 = arith.mulf %787, %786 : vector<2x16xf32>
    %789 = math.tanh %788 : vector<2x16xf32>
    %cst_367 = arith.constant 5.000000e-01 : f32
    %790 = vector.broadcast %cst_367 : f32 to vector<2x16xf32>
    %791 = arith.mulf %790, %789 : vector<2x16xf32>
    %cst_368 = arith.constant 5.000000e-01 : f32
    %792 = vector.broadcast %cst_368 : f32 to vector<2x16xf32>
    %793 = arith.addf %791, %792 : vector<2x16xf32>
    %794 = vector.extract_strided_slice %771 {offsets = [0, 32], sizes = [2, 16], strides = [1, 1]} : vector<2x64xf32> to vector<2x16xf32>
    %795 = math.tanh %794 : vector<2x16xf32>
    %796 = vector.extract_strided_slice %771 {offsets = [0, 48], sizes = [2, 16], strides = [1, 1]} : vector<2x64xf32> to vector<2x16xf32>
    %cst_369 = arith.constant 5.000000e-01 : f32
    %797 = vector.broadcast %cst_369 : f32 to vector<2x16xf32>
    %798 = arith.mulf %797, %796 : vector<2x16xf32>
    %799 = math.tanh %798 : vector<2x16xf32>
    %cst_370 = arith.constant 5.000000e-01 : f32
    %800 = vector.broadcast %cst_370 : f32 to vector<2x16xf32>
    %801 = arith.mulf %800, %799 : vector<2x16xf32>
    %cst_371 = arith.constant 5.000000e-01 : f32
    %802 = vector.broadcast %cst_371 : f32 to vector<2x16xf32>
    %803 = arith.addf %801, %802 : vector<2x16xf32>
    %804 = arith.mulf %793, %722 : vector<2x16xf32>
    %805 = arith.mulf %785, %795 : vector<2x16xf32>
    %806 = arith.addf %804, %805 : vector<2x16xf32>
    %807 = math.tanh %806 : vector<2x16xf32>
    %808 = arith.mulf %803, %807 : vector<2x16xf32>
    %809 = arith.truncf %808 : vector<2x16xf32> to vector<2x16xbf16>
    %810 = vector.extract_strided_slice %777 {offsets = [0, 0], sizes = [2, 16], strides = [1, 1]} : vector<2x64xf32> to vector<2x16xf32>
    %cst_372 = arith.constant 5.000000e-01 : f32
    %811 = vector.broadcast %cst_372 : f32 to vector<2x16xf32>
    %812 = arith.mulf %811, %810 : vector<2x16xf32>
    %813 = math.tanh %812 : vector<2x16xf32>
    %cst_373 = arith.constant 5.000000e-01 : f32
    %814 = vector.broadcast %cst_373 : f32 to vector<2x16xf32>
    %815 = arith.mulf %814, %813 : vector<2x16xf32>
    %cst_374 = arith.constant 5.000000e-01 : f32
    %816 = vector.broadcast %cst_374 : f32 to vector<2x16xf32>
    %817 = arith.addf %815, %816 : vector<2x16xf32>
    %818 = vector.extract_strided_slice %777 {offsets = [0, 16], sizes = [2, 16], strides = [1, 1]} : vector<2x64xf32> to vector<2x16xf32>
    %cst_375 = arith.constant 5.000000e-01 : f32
    %819 = vector.broadcast %cst_375 : f32 to vector<2x16xf32>
    %820 = arith.mulf %819, %818 : vector<2x16xf32>
    %821 = math.tanh %820 : vector<2x16xf32>
    %cst_376 = arith.constant 5.000000e-01 : f32
    %822 = vector.broadcast %cst_376 : f32 to vector<2x16xf32>
    %823 = arith.mulf %822, %821 : vector<2x16xf32>
    %cst_377 = arith.constant 5.000000e-01 : f32
    %824 = vector.broadcast %cst_377 : f32 to vector<2x16xf32>
    %825 = arith.addf %823, %824 : vector<2x16xf32>
    %826 = vector.extract_strided_slice %777 {offsets = [0, 32], sizes = [2, 16], strides = [1, 1]} : vector<2x64xf32> to vector<2x16xf32>
    %827 = math.tanh %826 : vector<2x16xf32>
    %828 = vector.extract_strided_slice %777 {offsets = [0, 48], sizes = [2, 16], strides = [1, 1]} : vector<2x64xf32> to vector<2x16xf32>
    %cst_378 = arith.constant 5.000000e-01 : f32
    %829 = vector.broadcast %cst_378 : f32 to vector<2x16xf32>
    %830 = arith.mulf %829, %828 : vector<2x16xf32>
    %831 = math.tanh %830 : vector<2x16xf32>
    %cst_379 = arith.constant 5.000000e-01 : f32
    %832 = vector.broadcast %cst_379 : f32 to vector<2x16xf32>
    %833 = arith.mulf %832, %831 : vector<2x16xf32>
    %cst_380 = arith.constant 5.000000e-01 : f32
    %834 = vector.broadcast %cst_380 : f32 to vector<2x16xf32>
    %835 = arith.addf %833, %834 : vector<2x16xf32>
    %836 = arith.mulf %825, %754 : vector<2x16xf32>
    %837 = arith.mulf %817, %827 : vector<2x16xf32>
    %838 = arith.addf %836, %837 : vector<2x16xf32>
    %839 = math.tanh %838 : vector<2x16xf32>
    %840 = arith.mulf %835, %839 : vector<2x16xf32>
    %841 = arith.truncf %840 : vector<2x16xf32> to vector<2x16xbf16>
    %c2_i32_381 = arith.constant 2 : i32
    %842 = arith.muli %c3_i32_353, %c2_i32_381 : i32
    %843 = arith.index_cast %842 : i32 to index
    %c0_382 = arith.constant 0 : index
    %844 = vector.load %arg12[%843, %c0_382] : memref<8x16xbf16, #tpu.memory_space<vmem>>, vector<2x16xbf16>
    tpu.vector_store %arg12[%843, %c0_382], %809 {strides = array<i32>} : memref<8x16xbf16, #tpu.memory_space<vmem>>, vector<2x16xbf16>,
    %c3_i32_383 = arith.constant 3 : i32
    %845 = arith.subi %c3_i32_383, %c3_i32_353 : i32
    %c2_i32_384 = arith.constant 2 : i32
    %846 = arith.muli %845, %c2_i32_384 : i32
    %847 = arith.index_cast %846 : i32 to index
    %c0_385 = arith.constant 0 : index
    %848 = vector.load %arg13[%847, %c0_385] : memref<8x16xbf16, #tpu.memory_space<vmem>>, vector<2x16xbf16>
    tpu.vector_store %arg13[%847, %c0_385], %841 {strides = array<i32>} : memref<8x16xbf16, #tpu.memory_space<vmem>>, vector<2x16xbf16>,
    %c4_i32_386 = arith.constant 4 : i32
    %c0_387 = arith.constant 0 : index
    %c0_388 = arith.constant 0 : index
    %849 = vector.load %arg12[%c0_387, %c0_388] : memref<8x16xbf16, #tpu.memory_space<vmem>>, vector<8x16xbf16>
    %cst_389 = arith.constant dense<0.000000e+00> : vector<8x128xf32>
    %850 = tpu.matmul %849, %6, %cst_389 {dimension_numbers = #tpu.dot_dimension_numbers<[1], [0], [0], [1], [0, 0, 1, 1], [], []>} : vector<8x16xbf16>, vector<16x128xbf16>, vector<8x128xf32> -> vector<8x128xf32>
    %c0_390 = arith.constant 0 : index
    %c8_391 = arith.constant 8 : index
    %c0_392 = arith.constant 0 : index
    %851 = vector.load %arg9[%c0_390, %c8_391, %c0_392] : memref<1x16x128xf32, #tpu.memory_space<vmem>>, vector<1x8x128xf32>
    %852 = vector.shape_cast %851 : vector<1x8x128xf32> to vector<8x128xf32>
    %853 = arith.addf %852, %850 : vector<8x128xf32>
    %c0_393 = arith.constant 0 : index
    %c8_394 = arith.constant 8 : index
    %c0_395 = arith.constant 0 : index
    %854 = vector.load %arg9[%c0_393, %c8_394, %c0_395] : memref<1x16x128xf32, #tpu.memory_space<vmem>>, vector<1x8x128xf32>
    %855 = vector.shape_cast %854 : vector<1x8x128xf32> to vector<8x128xf32>
    %856 = vector.shape_cast %853 : vector<8x128xf32> to vector<1x8x128xf32>
    tpu.vector_store %arg9[%c0_393, %c8_394, %c0_395], %856 {strides = array<i32>} : memref<1x16x128xf32, #tpu.memory_space<vmem>>, vector<1x8x128xf32>,
    %c0_396 = arith.constant 0 : index
    %c0_397 = arith.constant 0 : index
    %857 = vector.load %arg13[%c0_396, %c0_397] : memref<8x16xbf16, #tpu.memory_space<vmem>>, vector<8x16xbf16>
    %cst_398 = arith.constant dense<0.000000e+00> : vector<8x128xf32>
    %858 = tpu.matmul %857, %7, %cst_398 {dimension_numbers = #tpu.dot_dimension_numbers<[1], [0], [0], [1], [0, 0, 1, 1], [], []>} : vector<8x16xbf16>, vector<16x128xbf16>, vector<8x128xf32> -> vector<8x128xf32>
    %c0_399 = arith.constant 0 : index
    %c0_400 = arith.constant 0 : index
    %c0_401 = arith.constant 0 : index
    %859 = vector.load %arg9[%c0_399, %c0_400, %c0_401] : memref<1x16x128xf32, #tpu.memory_space<vmem>>, vector<1x8x128xf32>
    %860 = vector.shape_cast %859 : vector<1x8x128xf32> to vector<8x128xf32>
    %861 = arith.addf %860, %858 : vector<8x128xf32>
    %c0_402 = arith.constant 0 : index
    %c0_403 = arith.constant 0 : index
    %c0_404 = arith.constant 0 : index
    %862 = vector.load %arg9[%c0_402, %c0_403, %c0_404] : memref<1x16x128xf32, #tpu.memory_space<vmem>>, vector<1x8x128xf32>
    %863 = vector.shape_cast %862 : vector<1x8x128xf32> to vector<8x128xf32>
    %864 = vector.shape_cast %861 : vector<8x128xf32> to vector<1x8x128xf32>
    tpu.vector_store %arg9[%c0_402, %c0_403, %c0_404], %864 {strides = array<i32>} : memref<1x16x128xf32, #tpu.memory_space<vmem>>, vector<1x8x128xf32>,
    return
  }
  func.func @transform_0(%arg0: i32) -> (i32, i32, i32) {
    %c0_i32 = arith.constant 0 : i32
    %c0_i32_0 = arith.constant 0 : i32
    %c0_i32_1 = arith.constant 0 : i32
    return %arg0, %c0_i32, %c0_i32_0 : i32, i32, i32
  }
  func.func @transform_1(%arg0: i32) -> (i32, i32) {
    %c0_i32 = arith.constant 0 : i32
    %c0_i32_0 = arith.constant 0 : i32
    %c0_i32_1 = arith.constant 0 : i32
    return %c0_i32, %c0_i32_0 : i32, i32
  }
  func.func @transform_2(%arg0: i32) -> (i32, i32) {
    %c0_i32 = arith.constant 0 : i32
    %c0_i32_0 = arith.constant 0 : i32
    %c0_i32_1 = arith.constant 0 : i32
    return %c0_i32, %c0_i32_0 : i32, i32
  }
  func.func @transform_3(%arg0: i32) -> (i32, i32) {
    %c0_i32 = arith.constant 0 : i32
    %c0_i32_0 = arith.constant 0 : i32
    %c0_i32_1 = arith.constant 0 : i32
    return %c0_i32, %c0_i32_0 : i32, i32
  }
  func.func @transform_4(%arg0: i32) -> (i32, i32) {
    %c0_i32 = arith.constant 0 : i32
    %c0_i32_0 = arith.constant 0 : i32
    %c0_i32_1 = arith.constant 0 : i32
    return %c0_i32, %c0_i32_0 : i32, i32
  }
  func.func @transform_5(%arg0: i32) -> (i32, i32) {
    %c0_i32 = arith.constant 0 : i32
    %c0_i32_0 = arith.constant 0 : i32
    %c0_i32_1 = arith.constant 0 : i32
    return %c0_i32, %c0_i32_0 : i32, i32
  }
  func.func @transform_6(%arg0: i32) -> (i32, i32) {
    %c0_i32 = arith.constant 0 : i32
    %c0_i32_0 = arith.constant 0 : i32
    %c0_i32_1 = arith.constant 0 : i32
    return %c0_i32, %c0_i32_0 : i32, i32
  }
  func.func @transform_7(%arg0: i32) -> (i32, i32) {
    %c0_i32 = arith.constant 0 : i32
    %c0_i32_0 = arith.constant 0 : i32
    %c0_i32_1 = arith.constant 0 : i32
    return %c0_i32, %c0_i32_0 : i32, i32
  }
  func.func @transform_8(%arg0: i32) -> (i32, i32, i32) {
    %c0_i32 = arith.constant 0 : i32
    %c0_i32_0 = arith.constant 0 : i32
    %c0_i32_1 = arith.constant 0 : i32
    return %arg0, %c0_i32, %c0_i32_0 : i32, i32, i32
  }
}

</mosaic_0001>

<bundles_post_ra>
// kernel: tpu_custom_call.1
= control target key start
LH: loop header
LB: loop body
LE: loop exit
PB: predicated region body
PF: predicated region fallthrough
CT: control target
= control target key end

     0   :  { %13 = vsyncpa [#allocation7], 0  ;;  %s2044_s0 = inlined_call_operand.hbm [shape: bf16[1,16,32], index: 0, kind: input, shape index: {}]   ;;  %s2045_s1 = inlined_call_operand.hbm [shape: bf16[32,64], index: 1, kind: input, shape index: {}]   ;;  %s2046_s2 = inlined_call_operand.hbm [shape: bf16[32,64], index: 2, kind: input, shape index: {}]   ;;  %s2047_s3 = inlined_call_operand.vmem [shape: f32[1,64], index: 3, kind: input, shape index: {}]   ;;  %s2048_s4 = inlined_call_operand.vmem [shape: f32[1,64], index: 4, kind: input, shape index: {}]   ;;  %s2049_s5 = inlined_call_operand.hbm [shape: bf16[16,64], index: 5, kind: input, shape index: {}]   ;;  %s2050_s6 = inlined_call_operand.hbm [shape: bf16[16,64], index: 6, kind: input, shape index: {}]   ;;  %s2051_s7 = inlined_call_operand.hbm [shape: bf16[32,128], index: 7, kind: input, shape index: {}]   ;;  %s2052_s8 = inlined_call_operand.hbm [shape: f32[1,16,128], index: 8, kind: output, shape index: {}]  }
   0x1   :  { %14 = vsyncpa [#allocation10], 0 }
   0x2   :  { %15 = vsyncpa [#allocation13], 0 }
   0x3   :  { %16 = vsyncpa [#allocation16], 0 }
   0x4   :  { %17 = vsyncpa [#allocation8], 0  ;;  %s35_s29 = sshll.u32 %s2045_s1, 4  ;;  %s1668_s30 = smov [#allocation9]   ;;  %s36_s29 = int_to_ptr.hbm [resolvable:$true] %s35_s29 }
   0x5   :  { %s37_s9 = sshll.u32 %s1668_s30, 4  ;;  %s65_s12 = sshll.u32 %s2049_s5, 4  ;;  %s38_s9 = int_to_ptr.vmem [resolvable:$true] %s37_s9  ;;  %s66_s12 = int_to_ptr.hbm [resolvable:$true] %s65_s12 }
   0x6   :  { %s1669_s13 = smov 64   ;;  %s1670_s14 = smov 4  }
   0x7   :  { %43 = dma.hbm_to_vmem [thread:$0]  %s36_s29, 256, %s38_s9, [#allocation10], %s1669_s13, %s1669_s13, %s1670_s14  }
   0x8   :  { %s1671_s15 = smov [#allocation12]   ;;  %s22_s1 = sshll.u32 %s2044_s0, 4  ;;  %s23_s1 = int_to_ptr.hbm [resolvable:$true] %s22_s1 }
   0x9   :  { %s67_s16 = sshll.u32 %s1671_s15, 4  ;;  %s48_s20 = sshll.u32 %s2046_s2, 4  ;;  %s68_s16 = int_to_ptr.vmem [resolvable:$true] %s67_s16  ;;  %s49_s20 = int_to_ptr.hbm [resolvable:$true] %s48_s20 }
   0xa   :  { %73 = dma.hbm_to_vmem [thread:$0]  %s66_s12, 128, %s68_s16, [#allocation13], %s1669_s13, %s1669_s13, %s1670_s14  }
   0xb   :  { %s1672_s21 = smov [#allocation6]   ;;  %s1673_s23 = smov [#allocation11]  }
   0xc   :  { %s24_s22 = sshll.u32 %s1672_s21, 4  ;;  %s50_s0 = sshll.u32 %s1673_s23, 4  ;;  %s25_s22 = int_to_ptr.vmem [resolvable:$true] %s24_s22  ;;  %s51_s0 = int_to_ptr.vmem [resolvable:$true] %s50_s0 }
   0xd   :  { %30 = dma.hbm_to_vmem [thread:$0]  %s23_s1, 128, %s25_s22, [#allocation7], %s1669_s13, %s1669_s13, %s1670_s14  }
   0xe   :  { %s78_s26 = sshll.u32 %s2050_s6, 4  ;;  %s91_s28 = sshll.u32 %s2051_s7, 4  ;;  %s79_s26 = int_to_ptr.hbm [resolvable:$true] %s78_s26  ;;  %s92_s28 = int_to_ptr.hbm [resolvable:$true] %s91_s28 }
   0xf   :  { %56 = dma.hbm_to_vmem [thread:$0]  %s49_s20, 256, %s51_s0, [#allocation10], %s1669_s13, %s1669_s13, %s1670_s14  }
  0x10   :  { %s1674_s29 = smov [#allocation14]   ;;  %s1675_s9 = smov [#allocation15]  }
  0x11   :  { %s80_s30 = sshll.u32 %s1674_s29, 4  ;;  %s93_s6 = sshll.u32 %s1675_s9, 4  ;;  %s81_s30 = int_to_ptr.vmem [resolvable:$true] %s80_s30  ;;  %s94_s6 = int_to_ptr.vmem [resolvable:$true] %s93_s6 }
  0x12   :  { %86 = dma.hbm_to_vmem [thread:$0]  %s79_s26, 128, %s81_s30, [#allocation13], %s1669_s13, %s1669_s13, %s1670_s14  }
  0x13   :  { %99 = dma.hbm_to_vmem [thread:$0]  %s92_s28, 256, %s94_s6, [#allocation16], %s1669_s13, %s1669_s13, %s1670_s14  }
  0x14   :  { %1658 = dma.done.wait [#allocation7], 128  }
  0x15   :  { %1659 = vsyncadd [#allocation7], 4294967168 }
  0x16   :  { %1660 = dma.done.wait [#allocation10], 512  }
  0x17   :  { %1661 = vsyncadd [#allocation10], 4294966784 }
  0x18   :  { %1662 = dma.done.wait [#allocation13], 256  }
  0x19   :  { %1663 = vsyncadd [#allocation13], 4294967040 }
  0x1a   :  { %1664 = dma.done.wait [#allocation16], 256  }
  0x1b   :  { %1665 = vsyncadd [#allocation16], 4294967040  ;;  %v1765_v0 = vld [vmem:[#allocation9 + $0x8] sm:$0xff]  ;;  %v1767_v1 = vld [vmem:[#allocation12] sm:$0xff]  ;;  %v1676_v6 = vmov 0   ;;  %vm159_vm0 = vcmask 261120  }
  0x1c   :  { %v1769_v2 = vld [vmem:[#allocation11 + $0x8] sm:$0xff]  ;;  %169 = vmatpush.bf16.msra.mxu0 %v1765_v0  ;;  %228 = vmatpush.bf16.msra.mxu2 %v1767_v1  ;;  %v1773_v3 = vld [vmem:[#allocation9] sm:$0xff]  ;;  %v1775_v4 = vld [vmem:[#allocation14] sm:$0xff]  ;;  %vm176_vm1 = vcmask 523264   ;;  %s1679_s13 = smov 32   ;;  %s1680_s14 = smov 80  }
  0x1d   :  { %203 = vmatpush.bf16.msra.mxu1 %v1769_v2  ;;  %v1778_v5 = vld [vmem:[#allocation11] sm:$0xff]  ;;  %247 = vmatpush.bf16.msra.mxu3 %v1775_v4  ;;  %v143_v7 = vld [vmem:[#allocation6] sm:$0xf]  ;;  %v178_v8 = vld [vmem:[#allocation6 + $0x4] sm:$0xf]  ;;  %vm217_vm2 = vcmask 130048  }
  0x1e   :  { %v1800_v9 = vld [vmem:[%s2047_s3] ss:$0 sm:$0xff]  ;;  %s1677_s3 = smov 96   ;;  %vm270_vm3 = vcmask 517120   ;;  %vm348_vm4 = vcmask 122880   ;;  %vm355_vm5 = vcmask 125955  }
  0x1f   :  { %229 = vmatmul.bf16.vlgmr.msra.gmra.mxu2 %v1676_v6  ;;  %v1805_v10 = vld [vmem:[%s2048_s4] ss:$0 sm:$0xff]  ;;  %s1678_s4 = smov 16   ;;  %vm496_vm6 = vcmask 123905   ;;  %vm503_vm7 = vcmask 124930   ;;  %s1681_s15 = smov [#allocation17]  }
  0x20   :  { %263 = vmatpush.bf16.msrb.mxu2 %v1765_v0  ;;  %170 = vmatpush.bf16.msra.mxu0 %v1773_v3  ;;  %s1290_s16 = sshll.u32 %s1681_s15, 4  ;;  %s1292_s1 = sshll.u32 %s2052_s8, 4  ;;  %s1291_s16 = int_to_ptr.vmem [resolvable:$true] %s1290_s16  ;;  %s1293_s1 = int_to_ptr.hbm [resolvable:$true] %s1292_s1 }
  0x21   :  { %286 = vmatpush.bf16.msrb.mxu3 %v1769_v2  ;;  %204 = vmatpush.bf16.msra.mxu1 %v1778_v5  ;;  %s1682_s5 = smov 128   ;;  %s1683_s19 = smov 8  }
  0x22   :  { %248 = vmatmul.bf16.vlgmr.msra.gmra.mxu3 %v1676_v6 }
  0x23   :  { %1316 = vmatmul.msk.bf16.vlgmr.msra.gmra.mxu0 %vm159_vm0, %v143_v7 }
  0x24   :  { %371 = vmatpush.bf16.msrb.mxu0 %v1767_v1  ;;  %264 = vmatpush.bf16.msrb.mxu2 %v1773_v3 }
  0x25   :  { %391 = vmatpush.bf16.msrb.mxu1 %v1775_v4  ;;  %287 = vmatpush.bf16.msrb.mxu3 %v1778_v5 }
  0x26   :  { %1325 = vmatmul.msk.bf16.vlgmr.msra.gmra.mxu1 %vm159_vm0, %v178_v8 }
  0x28   :  { %519 = vmatpush.bf16.msra.mxu0 %v1767_v1  ;;  %411 = vmatpush.bf16.msra.mxu2 %v1765_v0 }
  0x29   :  { %539 = vmatpush.bf16.msra.mxu1 %v1775_v4  ;;  %433 = vmatpush.bf16.msra.mxu3 %v1769_v2 }
  0x2c   :  { %412 = vmatpush.bf16.msra.mxu2 %v1773_v3 }
  0x2d   :  { %434 = vmatpush.bf16.msra.mxu3 %v1778_v5 }
  0xa0   :  { %v172_v11 = vpop.f32.mrf.mxu0 }
  0xa1   :  { %v173_v12 = vadd.f32 %v1800_v9, %v172_v11 }
  0xa2   :  { %v230_v14 = vpop.f32.mrf.mxu2 }
  0xa3   :  { %v206_v13 = vpop.f32.mrf.mxu1  ;;  %177 = vst.msk [vmem:[#allocation2] sm:$0xff] %vm176_vm1, %v173_v12 }
  0xa4   :  { %v207_v15 = vadd.f32 %v1805_v10, %v206_v13 }
  0xa5   :  { %v249_v16 = vpop.f32.mrf.mxu3 }
  0xa6   :  { %210 = vst.msk [vmem:[#allocation3] sm:$0xff] %vm176_vm1, %v207_v15 }
  0xa8   :  { %v174_v17 = vpop.f32.mrf.mxu0 }
  0xaa   :  { %v294_v19 = vld [vmem:[#allocation2] sm:$0x3]  ;;  %v232_v20 = vpop.f32.mrf.mxu2  ;;  %v441_v60 = vld [vmem:[#allocation2 + $0x2] sm:$0x3] }
  0xab   :  { %v208_v18 = vpop.f32.mrf.mxu1  ;;  %v295_v21 = vadd.f32 %v294_v19, %v230_v14 }
  0xad   :  { %v296_v22 = vld [vmem:[#allocation3 + $0x6] sm:$0x3]  ;;  %v251_v23 = vpop.f32.mrf.mxu3  ;;  %1394 = vtanh.f32 %v295_v21  ;;  %v298_v27 = vmul.f32 0.5, %v295_v21  ;;  %v443_v6 = vld [vmem:[#allocation3 + $0x4] sm:$0x3] }
  0xae   :  { %v297_v24 = vadd.f32 %v296_v22, %v249_v16 }
  0xb0   :  { %1396 = vtanh.f32 %v297_v24  ;;  %v321_v28 = vmul.f32 0.5, %v297_v24 }
  0xb1   :  { %1398 = vtanh.f32 %v298_v27 }
  0xb2   :  { %1400 = vtanh.f32 %v321_v28 }
  0xb3   :  { %v1395_v25 = vpop.eup %1394 }
  0xb4   :  { %305 = vrot.lane.b32.xlu0 %v1395_v25, %s1677_s3 }
  0xb6   :  { %v1397_v26 = vpop.eup %1396 }
  0xb7   :  { %v1399_v29 = vpop.eup %1398 }
  0xb8   :  { %v300_v30 = vmul.f32 0.5, %v1399_v29  ;;  %v1401_v32 = vpop.eup %1400 }
  0xb9   :  { %v323_v35 = vmul.f32 0.5, %v1401_v32 }
  0xba   :  { %v301_v31 = vadd.f32 0.5, %v300_v30 }
  0xbb   :  { %v324_v36 = vadd.f32 0.5, %v323_v35 }
  0xbc   :  { %328 = vrot.lane.b32.xlu0 %v1397_v26, %s1677_s3  ;;  %v303_v39 = vmul.f32 0.0, %v301_v31 }
  0xbd   :  { %v326_v42 = vmul.f32 0.0, %v324_v36 }
 0x126   :  { %v306_v33 = vpop.permute.xlu0 %305 }
 0x127   :  { %v308_v34 = vmul.f32 %v306_v33, %v301_v31 }
 0x129   :  { %310 = vrot.lane.b32.xlu1 %v308_v34, %s1678_s4 }
 0x12e   :  { %v329_v37 = vpop.permute.xlu0 %328 }
 0x12f   :  { %v331_v38 = vmul.f32 %v329_v37, %v324_v36 }
 0x131   :  { %333 = vrot.lane.b32.xlu1 %v331_v38, %s1678_s4 }
 0x19b   :  { %v311_v40 = vpop.permute.xlu1 %310 }
 0x19c   :  { %v313_v41 = vadd.f32 %v311_v40, %v303_v39 }
 0x19e   :  { %1402 = vtanh.f32 %v313_v41 }
 0x1a3   :  { %v334_v43 = vpop.permute.xlu1 %333 }
 0x1a4   :  { %v1403_v44 = vpop.eup %1402  ;;  %v336_v45 = vadd.f32 %v334_v43, %v326_v42 }
 0x1a5   :  { %316 = vrot.lane.b32.xlu2 %v1403_v44, %s1679_s13 }
 0x1a6   :  { %1404 = vtanh.f32 %v336_v45 }
 0x1ac   :  { %v1405_v46 = vpop.eup %1404 }
 0x1ad   :  { %339 = vrot.lane.b32.xlu2 %v1405_v46, %s1679_s13  ;;  %v589_v46 = vld [vmem:[#allocation2 + $0x4] sm:$0x3] }
 0x1ff   :  { %v317_v47 = vpop.permute.xlu2 %316 }
 0x200   :  { %v319_v48 = vmul.f32 %v317_v47, %v301_v31 }
 0x202   :  { %v1815_v49 = vpack.c.bf16 %v319_v48, %v319_v48 }
 0x204   :  { %v357_v50 = vunpack.c.l.b16 %v1815_v49 }
 0x206   :  { %v358_v51 = vpack.c.b16 %v357_v50, %v357_v50 }
 0x207   :  { %v340_v52 = vpop.permute.xlu2 %339 }
 0x208   :  { %v342_v53 = vmul.f32 %v340_v52, %v324_v36  ;;  %359 = vrot.lane.b32.xlu0 %v358_v51, %s1680_s14  ;;  %v591_v52 = vld [vmem:[#allocation3 + $0x2] sm:$0x3] }
 0x20a   :  { %v1819_v54 = vpack.c.bf16 %v342_v53, %v342_v53 }
 0x20c   :  { %v377_v55 = vunpack.c.l.b16 %v1819_v54 }
 0x20e   :  { %v378_v56 = vpack.c.b16 %v377_v55, %v377_v55 }
 0x210   :  { %379 = vrot.lane.b32.xlu1 %v378_v56, %s1680_s14 }
 0x27a   :  { %v360_v57 = vpop.permute.xlu0 %359 }
 0x27b   :  { %1336 = vmatmul.msk.bf16.vlgmr.msrb.gmra.mxu0 %vm217_vm2, %v360_v57 }
 0x27c   :  { %665 = vmatpush.bf16.msrb.mxu0 %v1767_v1 }
 0x282   :  { %v380_v58 = vpop.permute.xlu1 %379 }
 0x283   :  { %1337 = vmatmul.msk.bf16.vlgmr.msrb.gmra.mxu1 %vm217_vm2, %v380_v58 }
 0x284   :  { %685 = vmatpush.bf16.msrb.mxu1 %v1775_v4 }
 0x2f8   :  { %v373_v59 = vpop.f32.mrf.mxu0 }
 0x2f9   :  { %v442_v61 = vadd.f32 %v441_v60, %v373_v59 }
 0x2fb   :  { %1406 = vtanh.f32 %v442_v61  ;;  %v445_v13 = vmul.f32 0.5, %v442_v61 }
 0x300   :  { %v375_v62 = vpop.f32.mrf.mxu0  ;;  %v393_v63 = vpop.f32.mrf.mxu1 }
 0x301   :  { %v1407_v7 = vpop.eup %1406  ;;  %v444_v8 = vadd.f32 %v443_v6, %v393_v63 }
 0x302   :  { %452 = vrot.lane.b32.xlu2 %v1407_v7, %s1677_s3 }
 0x303   :  { %1408 = vtanh.f32 %v444_v8  ;;  %v468_v19 = vmul.f32 0.5, %v444_v8 }
 0x304   :  { %1410 = vtanh.f32 %v445_v13 }
 0x305   :  { %1412 = vtanh.f32 %v468_v19 }
 0x308   :  { %v395_v11 = vpop.f32.mrf.mxu1 }
 0x309   :  { %v1409_v12 = vpop.eup %1408 }
 0x30a   :  { %475 = vrot.lane.b32.xlu0 %v1409_v12, %s1677_s3  ;;  %v1411_v14 = vpop.eup %1410 }
 0x30b   :  { %v447_v15 = vmul.f32 0.5, %v1411_v14  ;;  %v1413_v20 = vpop.eup %1412 }
 0x30c   :  { %v470_v21 = vmul.f32 0.5, %v1413_v20 }
 0x30d   :  { %v448_v16 = vadd.f32 0.5, %v447_v15 }
 0x30e   :  { %v471_v22 = vadd.f32 0.5, %v470_v21 }
 0x30f   :  { %v450_v25 = vmul.f32 %v448_v16, %v313_v41 }
 0x310   :  { %v473_v28 = vmul.f32 %v471_v22, %v336_v45 }
 0x35c   :  { %v453_v17 = vpop.permute.xlu2 %452 }
 0x35d   :  { %v455_v18 = vmul.f32 %v453_v17, %v448_v16 }
 0x35f   :  { %457 = vrot.lane.b32.xlu1 %v455_v18, %s1678_s4 }
 0x37c   :  { %v476_v23 = vpop.permute.xlu0 %475 }
 0x37d   :  { %v478_v24 = vmul.f32 %v476_v23, %v471_v22 }
 0x37f   :  { %480 = vrot.lane.b32.xlu2 %v478_v24, %s1678_s4 }
 0x3d1   :  { %v458_v26 = vpop.permute.xlu1 %457 }
 0x3d2   :  { %v460_v27 = vadd.f32 %v458_v26, %v450_v25 }
 0x3d4   :  { %1414 = vtanh.f32 %v460_v27 }
 0x3d9   :  { %v481_v29 = vpop.permute.xlu2 %480 }
 0x3da   :  { %v1415_v30 = vpop.eup %1414  ;;  %v483_v31 = vadd.f32 %v481_v29, %v473_v28 }
 0x3db   :  { %463 = vrot.lane.b32.xlu0 %v1415_v30, %s1679_s13 }
 0x3dc   :  { %1416 = vtanh.f32 %v483_v31 }
 0x3e2   :  { %v1417_v32 = vpop.eup %1416 }
 0x3e3   :  { %486 = vrot.lane.b32.xlu1 %v1417_v32, %s1679_s13 }
 0x44d   :  { %v464_v33 = vpop.permute.xlu0 %463 }
 0x44e   :  { %v466_v34 = vmul.f32 %v464_v33, %v448_v16 }
 0x450   :  { %v1833_v35 = vpack.c.bf16 %v466_v34, %v466_v34  ;;  %v731_v34 = vld [vmem:[#allocation2 + $0x6] sm:$0x3] }
 0x452   :  { %v505_v36 = vunpack.c.l.b16 %v1833_v35 }
 0x454   :  { %v506_v37 = vpack.c.b16 %v505_v36, %v505_v36 }
 0x455   :  { %v487_v38 = vpop.permute.xlu1 %486 }
 0x456   :  { %v489_v39 = vmul.f32 %v487_v38, %v471_v22  ;;  %507 = vrot.lane.b32.xlu2 %v506_v37, %s1680_s14 }
 0x458   :  { %v1837_v40 = vpack.c.bf16 %v489_v39, %v489_v39  ;;  %v733_v39 = vld [vmem:[#allocation3] sm:$0x3] }
 0x45a   :  { %v525_v41 = vunpack.c.l.b16 %v1837_v40 }
 0x45c   :  { %v526_v42 = vpack.c.b16 %v525_v41, %v525_v41 }
 0x45e   :  { %527 = vrot.lane.b32.xlu0 %v526_v42, %s1680_s14 }
 0x4b0   :  { %v508_v43 = vpop.permute.xlu2 %507 }
 0x4b1   :  { %1340 = vmatmul.msk.bf16.vlgmr.msra.gmra.mxu0 %vm217_vm2, %v508_v43 }
 0x4d0   :  { %v528_v44 = vpop.permute.xlu0 %527 }
 0x4d1   :  { %1341 = vmatmul.msk.bf16.vlgmr.msra.gmra.mxu1 %vm217_vm2, %v528_v44 }
 0x52e   :  { %v521_v45 = vpop.f32.mrf.mxu0 }
 0x52f   :  { %v590_v47 = vadd.f32 %v589_v46, %v521_v45 }
 0x531   :  { %1418 = vtanh.f32 %v590_v47  ;;  %v593_v57 = vmul.f32 0.5, %v590_v47 }
 0x536   :  { %v523_v48 = vpop.f32.mrf.mxu0 }
 0x537   :  { %v1419_v50 = vpop.eup %1418 }
 0x538   :  { %600 = vrot.lane.b32.xlu1 %v1419_v50, %s1677_s3 }
 0x54e   :  { %v541_v51 = vpop.f32.mrf.mxu1 }
 0x54f   :  { %v592_v53 = vadd.f32 %v591_v52, %v541_v51 }
 0x551   :  { %1420 = vtanh.f32 %v592_v53  ;;  %v616_v58 = vmul.f32 0.5, %v592_v53 }
 0x552   :  { %1422 = vtanh.f32 %v593_v57 }
 0x553   :  { %1424 = vtanh.f32 %v616_v58 }
 0x556   :  { %v543_v55 = vpop.f32.mrf.mxu1 }
 0x557   :  { %v1421_v56 = vpop.eup %1420 }
 0x558   :  { %623 = vrot.lane.b32.xlu2 %v1421_v56, %s1677_s3  ;;  %v1423_v59 = vpop.eup %1422 }
 0x559   :  { %v595_v60 = vmul.f32 0.5, %v1423_v59  ;;  %v1425_v62 = vpop.eup %1424 }
 0x55a   :  { %v618_v7 = vmul.f32 0.5, %v1425_v62 }
 0x55b   :  { %v596_v61 = vadd.f32 0.5, %v595_v60 }
 0x55c   :  { %v619_v8 = vadd.f32 0.5, %v618_v7 }
 0x55d   :  { %v598_v13 = vmul.f32 %v596_v61, %v460_v27 }
 0x55e   :  { %v621_v16 = vmul.f32 %v619_v8, %v483_v31 }
 0x5aa   :  { %v601_v63 = vpop.permute.xlu1 %600 }
 0x5ab   :  { %v603_v6 = vmul.f32 %v601_v63, %v596_v61 }
 0x5ad   :  { %605 = vrot.lane.b32.xlu0 %v603_v6, %s1678_s4 }
 0x5b2   :  { %v624_v11 = vpop.permute.xlu2 %623 }
 0x5b3   :  { %v626_v12 = vmul.f32 %v624_v11, %v619_v8  ;;  %v253_v11 = vld [vmem:[#allocation6 + $0x4] sm:$0x1] }
 0x5b4   :  { %1334 = vmatmul.msk.bf16.vlgmr.msrb.gmra.mxu2 %vm159_vm0, %v253_v11 }
 0x5b5   :  { %628 = vrot.lane.b32.xlu1 %v626_v12, %s1678_s4  ;;  %v272_v12 = vld [vmem:[#allocation6] sm:$0x8]  ;;  %559 = vmatpush.bf16.msrb.mxu2 %v1765_v0 }
 0x5b9   :  { %560 = vmatpush.bf16.msrb.mxu2 %v1773_v3 }
 0x61f   :  { %v606_v14 = vpop.permute.xlu0 %605 }
 0x620   :  { %v608_v15 = vadd.f32 %v606_v14, %v598_v13  ;;  %v274_v13 = vunpack.c.l.b16 %v272_v12  ;;  %v397_v14 = vld [vmem:[#allocation6 + $0x4] sm:$0x2] }
 0x622   :  { %1426 = vtanh.f32 %v608_v15 }
 0x627   :  { %v629_v17 = vpop.permute.xlu1 %628 }
 0x628   :  { %v1427_v18 = vpop.eup %1426  ;;  %v631_v19 = vadd.f32 %v629_v17, %v621_v16  ;;  %v399_v17 = vunpack.c.l.b16 %v397_v14 }
 0x629   :  { %611 = vrot.lane.b32.xlu2 %v1427_v18, %s1679_s13  ;;  %v419_v18 = vld [vmem:[#allocation6] sm:$0x4] }
 0x62a   :  { %1428 = vtanh.f32 %v631_v19 }
 0x630   :  { %v1429_v20 = vpop.eup %1428 }
 0x631   :  { %634 = vrot.lane.b32.xlu0 %v1429_v20, %s1679_s13  ;;  %v421_v20 = vunpack.c.l.b16 %v419_v18 }
 0x683   :  { %v612_v21 = vpop.permute.xlu2 %611 }
 0x684   :  { %v614_v22 = vmul.f32 %v612_v21, %v596_v61 }
 0x686   :  { %v1849_v23 = vpack.c.bf16 %v614_v22, %v614_v22 }
 0x688   :  { %v651_v24 = vunpack.c.l.b16 %v1849_v23 }
 0x68a   :  { %v652_v25 = vpack.c.b16 %v651_v24, %v651_v24  ;;  %v422_v24 = vpack.c.b16 %v421_v20, %v421_v20 }
 0x68c   :  { %653 = vrot.lane.b32.xlu1 %v652_v25, %s1680_s14 }
 0x6a3   :  { %v635_v26 = vpop.permute.xlu0 %634 }
 0x6a4   :  { %v637_v27 = vmul.f32 %v635_v26, %v619_v8 }
 0x6a6   :  { %v1853_v28 = vpack.c.bf16 %v637_v27, %v637_v27  ;;  %v545_v27 = vld [vmem:[#allocation6 + $0x4] sm:$0x4] }
 0x6a8   :  { %v671_v29 = vunpack.c.l.b16 %v1853_v28 }
 0x6aa   :  { %v672_v30 = vpack.c.b16 %v671_v29, %v671_v29  ;;  %v423_v29 = vrot.slane %v422_v24, 2 }
 0x6ac   :  { %673 = vrot.lane.b32.xlu2 %v672_v30, %s1680_s14 }
 0x6fe   :  { %v654_v31 = vpop.permute.xlu1 %653 }
 0x6ff   :  { %1344 = vmatmul.msk.bf16.vlgmr.msrb.gmra.mxu0 %vm217_vm2, %v654_v31  ;;  %v547_v31 = vunpack.c.l.b16 %v545_v27 }
 0x706   :  { %v674_v32 = vpop.permute.xlu2 %673 }
 0x707   :  { %1345 = vmatmul.msk.bf16.vlgmr.msrb.gmra.mxu1 %vm217_vm2, %v674_v32 }
 0x77c   :  { %v667_v33 = vpop.f32.mrf.mxu0 }
 0x77d   :  { %v732_v36 = vadd.f32 %v731_v34, %v667_v33 }
 0x77f   :  { %1430 = vtanh.f32 %v732_v36  ;;  %v735_v45 = vmul.f32 0.5, %v732_v36  ;;  %v567_v36 = vld [vmem:[#allocation6] sm:$0x2] }
 0x784   :  { %v669_v37 = vpop.f32.mrf.mxu0  ;;  %v687_v38 = vpop.f32.mrf.mxu1 }
 0x785   :  { %v1431_v41 = vpop.eup %1430  ;;  %v734_v42 = vadd.f32 %v733_v39, %v687_v38  ;;  %v548_v37 = vpack.c.b16 %v547_v31, %v547_v31 }
 0x786   :  { %742 = vrot.lane.b32.xlu0 %v1431_v41, %s1677_s3 }
 0x787   :  { %1432 = vtanh.f32 %v734_v42  ;;  %v758_v46 = vmul.f32 0.5, %v734_v42  ;;  %v549_v41 = vrot.slane %v548_v37, 2 }
 0x788   :  { %1434 = vtanh.f32 %v735_v45 }
 0x789   :  { %1436 = vtanh.f32 %v758_v46 }
 0x78c   :  { %v689_v43 = vpop.f32.mrf.mxu1 }
 0x78d   :  { %v1433_v44 = vpop.eup %1432  ;;  %v691_v43 = vld [vmem:[#allocation6 + $0x4] sm:$0x8] }
 0x78e   :  { %765 = vrot.lane.b32.xlu1 %v1433_v44, %s1677_s3  ;;  %v1435_v47 = vpop.eup %1434 }
 0x78f   :  { %v737_v48 = vmul.f32 0.5, %v1435_v47  ;;  %v1437_v51 = vpop.eup %1436  ;;  %v266_v47 = vpop.f32.mrf.mxu2 }
 0x790   :  { %v760_v55 = vmul.f32 0.5, %v1437_v51 }
 0x791   :  { %v738_v50 = vadd.f32 0.5, %v737_v48  ;;  %v267_v48 = vadd.f32 %v1800_v9, %v266_v47 }
 0x792   :  { %v761_v56 = vadd.f32 0.5, %v760_v55 }
 0x793   :  { %v740_v59 = vmul.f32 %v738_v50, %v608_v15  ;;  %v275_v15 = vpack.c.b16 %v274_v13, %v274_v13  ;;  %271 = vst.msk [vmem:[#allocation2 + $0x8] sm:$0x3] %vm270_vm3, %v267_v48 }
 0x794   :  { %v763_v63 = vmul.f32 %v761_v56, %v631_v19  ;;  %v400_v19 = vpack.c.b16 %v399_v17, %v399_v17 }
 0x795   :  { %v276_v16 = vrot.slane %v275_v15, 3 }
 0x796   :  { %v401_v21 = vrot.slane %v400_v19, 1 }
 0x797   :  { %1335 = vmatmul.msk.bf16.vlgmr.msrb.gmra.mxu3 %vm159_vm0, %v276_v16 }
 0x798   :  { %581 = vmatpush.bf16.msrb.mxu3 %v1769_v2  ;;  %1338 = vmatmul.msk.bf16.vlgmr.msra.gmra.mxu2 %vm159_vm0, %v401_v21 }
 0x799   :  { %705 = vmatpush.bf16.msra.mxu2 %v1765_v0  ;;  %v569_v0 = vunpack.c.l.b16 %v567_v36 }
 0x79c   :  { %582 = vmatpush.bf16.msrb.mxu3 %v1778_v5 }
 0x79d   :  { %706 = vmatpush.bf16.msra.mxu2 %v1773_v3  ;;  %v570_v3 = vpack.c.b16 %v569_v0, %v569_v0 }
 0x79f   :  { %v571_v44 = vrot.slane %v570_v3, 1 }
 0x7a7   :  { %1339 = vmatmul.msk.bf16.vlgmr.msra.gmra.mxu3 %vm159_vm0, %v423_v29 }
 0x7a8   :  { %723 = vmatpush.bf16.msra.mxu3 %v1769_v2  ;;  %1342 = vmatmul.msk.bf16.vlgmr.msrb.gmra.mxu2 %vm159_vm0, %v549_v41  ;;  %v693_v2 = vunpack.c.l.b16 %v691_v43 }
 0x7a9   :  { %854 = vmatpush.bf16.msrb.mxu2 %v1767_v1 }
 0x7aa   :  { %v694_v45 = vpack.c.b16 %v693_v2, %v693_v2 }
 0x7ac   :  { %724 = vmatpush.bf16.msra.mxu3 %v1778_v5  ;;  %v695_v46 = vrot.slane %v694_v45, 3  ;;  %v713_v5 = vld [vmem:[#allocation6] sm:$0x1]  ;;  %v646_v45 = vrot.slane %v1853_v28, 7  ;;  %v492_v28 = vrot.slane %v1833_v35, 7  ;;  %v499_v35 = vrot.slane %v1837_v40, 6 }
 0x7b7   :  { %1343 = vmatmul.msk.bf16.vlgmr.msrb.gmra.mxu3 %vm159_vm0, %v571_v44 }
 0x7b8   :  { %874 = vmatpush.bf16.msrb.mxu3 %v1775_v4  ;;  %1346 = vmatmul.msk.bf16.vlgmr.msra.gmra.mxu2 %vm159_vm0, %v695_v46 }
 0x7b9   :  { %1057 = vmatpush.bf16.msra.mxu2 %v1767_v1 }
 0x7c7   :  { %1347 = vmatmul.msk.bf16.vlgmr.msra.gmra.mxu3 %vm159_vm0, %v713_v5 }
 0x7c8   :  { %1077 = vmatpush.bf16.msra.mxu3 %v1775_v4 }
 0x7f8   :  { %v743_v52 = vpop.permute.xlu0 %742 }
 0x7f9   :  { %v745_v53 = vmul.f32 %v743_v52, %v738_v50 }
 0x7fb   :  { %747 = vrot.lane.b32.xlu2 %v745_v53, %s1678_s4  ;;  %v268_v53 = vpop.f32.mrf.mxu2 }
 0x800   :  { %v766_v57 = vpop.permute.xlu1 %765 }
 0x801   :  { %v768_v58 = vmul.f32 %v766_v57, %v761_v56 }
 0x803   :  { %770 = vrot.lane.b32.xlu0 %v768_v58, %s1678_s4 }
 0x81a   :  { %v289_v51 = vpop.f32.mrf.mxu3 }
 0x81b   :  { %v290_v52 = vadd.f32 %v1805_v10, %v289_v51  ;;  %v414_v57 = vpop.f32.mrf.mxu2 }
 0x81c   :  { %v415_v58 = vadd.f32 %v1800_v9, %v414_v57 }
 0x81d   :  { %293 = vst.msk [vmem:[#allocation3 + $0xe] sm:$0x3] %vm270_vm3, %v290_v52  ;;  %v640_v52 = vrot.slane %v1849_v23, 6  ;;  %v1375_v23 = vld [vmem:[#allocation15 + $0x8] sm:$0xff] }
 0x81e   :  { %418 = vst.msk [vmem:[#allocation2 + $0xa] sm:$0x3] %vm270_vm3, %v415_v58  ;;  %833 = vmatpush.bf16.msra.mxu1 %v1375_v23 }
 0x822   :  { %975 = vmatpush.bf16.msrb.mxu1 %v1775_v4 }
 0x824   :  { %v882_v29 = vld [vmem:[#allocation3 + $0xe] sm:$0x3] }
 0x855   :  { %v748_v60 = vpop.permute.xlu2 %747 }
 0x856   :  { %v1863_v61 = vadd.f32 %v748_v60, %v740_v59 }
 0x858   :  { %1438 = vtanh.f32 %v1863_v61 }
 0x85e   :  { %v1439_v62 = vpop.eup %1438 }
 0x85f   :  { %753 = vrot.lane.b32.xlu1 %v1439_v62, %s1679_s13  ;;  %v416_v62 = vpop.f32.mrf.mxu2 }
 0x875   :  { %v771_v6 = vpop.permute.xlu0 %770 }
 0x876   :  { %v1867_v7 = vadd.f32 %v771_v6, %v763_v63  ;;  %v562_v6 = vpop.f32.mrf.mxu2 }
 0x878   :  { %1440 = vtanh.f32 %v1867_v7 }
 0x87e   :  { %v1441_v8 = vpop.eup %1440  ;;  %v564_v13 = vpop.f32.mrf.mxu2 }
 0x87f   :  { %776 = vrot.lane.b32.xlu2 %v1441_v8, %s1679_s13  ;;  %v563_v8 = vadd.f32 %v1800_v9, %v562_v6 }
 0x881   :  { %566 = vst.msk [vmem:[#allocation2 + $0xc] sm:$0x3] %vm270_vm3, %v563_v8 }
 0x886   :  { %v708_v15 = vpop.f32.mrf.mxu2 }
 0x887   :  { %v709_v16 = vadd.f32 %v1800_v9, %v708_v15 }
 0x889   :  { %712 = vst.msk [vmem:[#allocation2 + $0xe] sm:$0x3] %vm270_vm3, %v709_v16 }
 0x88e   :  { %v710_v19 = vpop.f32.mrf.mxu2 }
 0x8d1   :  { %v754_v22 = vpop.permute.xlu1 %753 }
 0x8d2   :  { %v756_v25 = vmul.f32 %v754_v22, %v738_v50  ;;  %v880_v22 = vld [vmem:[#allocation2 + $0x8] sm:$0x3] }
 0x8d4   :  { %v1878_v26 = vpack.c.bf16 %v756_v25, %v756_v25 }
 0x8d6   :  { %v840_v30 = vunpack.c.l.b16 %v1878_v26  ;;  %v782_v2 = vrot.slane %v1878_v26, 5 }
 0x8d8   :  { %v841_v32 = vpack.c.b16 %v840_v30, %v840_v30 }
 0x8d9   :  { %v777_v33 = vpop.permute.xlu2 %776 }
 0x8da   :  { %v779_v34 = vmul.f32 %v777_v33, %v761_v56  ;;  %842 = vrot.lane.b32.xlu0 %v841_v32, %s1680_s14  ;;  %v291_v56 = vpop.f32.mrf.mxu3 }
 0x8dc   :  { %v1886_v38 = vpack.c.bf16 %v779_v34, %v779_v34 }
 0x8de   :  { %v860_v39 = vunpack.c.l.b16 %v1886_v38 }
 0x8e0   :  { %v861_v42 = vpack.c.b16 %v860_v39, %v860_v39 }
 0x8e2   :  { %862 = vrot.lane.b32.xlu1 %v861_v42, %s1680_s14  ;;  %v436_v59 = vpop.f32.mrf.mxu3 }
 0x8e3   :  { %v437_v60 = vadd.f32 %v1805_v10, %v436_v59 }
 0x8e5   :  { %440 = vst.msk [vmem:[#allocation3 + $0xc] sm:$0x3] %vm270_vm3, %v437_v60 }
 0x8ea   :  { %v438_v63 = vpop.f32.mrf.mxu3 }
 0x8f2   :  { %v584_v11 = vpop.f32.mrf.mxu3 }
 0x8f3   :  { %v585_v12 = vadd.f32 %v1805_v10, %v584_v11 }
 0x8f5   :  { %588 = vst.msk [vmem:[#allocation3 + $0xa] sm:$0x3] %vm270_vm3, %v585_v12 }
 0x8fa   :  { %v586_v14 = vpop.f32.mrf.mxu3 }
 0x902   :  { %v726_v17 = vpop.f32.mrf.mxu3 }
 0x903   :  { %v727_v18 = vadd.f32 %v1805_v10, %v726_v17 }
 0x905   :  { %730 = vst.msk [vmem:[#allocation3 + $0x8] sm:$0x3] %vm270_vm3, %v727_v18 }
 0x90a   :  { %v728_v20 = vpop.f32.mrf.mxu3 }
 0x94c   :  { %v843_v50 = vpop.permute.xlu0 %842 }
 0x94d   :  { %1358 = vmatmul.msk.bf16.vlgmr.msrb.gmra.mxu2 %vm217_vm2, %v843_v50 }
 0x954   :  { %v863_v55 = vpop.permute.xlu1 %862 }
 0x955   :  { %1359 = vmatmul.msk.bf16.vlgmr.msrb.gmra.mxu3 %vm217_vm2, %v863_v55 }
 0x956   :  { %1277 = vmatpush.bf16.msrb.mxu3 %v1375_v23 }
 0x9d0   :  { %v856_v21 = vpop.f32.mrf.mxu2 }
 0x9d1   :  { %v881_v24 = vadd.f32 %v880_v22, %v856_v21 }
 0x9d3   :  { %1442 = vtanh.f32 %v881_v24  ;;  %v884_v10 = vmul.f32 0.5, %v881_v24 }
 0x9d8   :  { %v858_v25 = vpop.f32.mrf.mxu2  ;;  %v876_v27 = vpop.f32.mrf.mxu3 }
 0x9d9   :  { %v1443_v30 = vpop.eup %1442  ;;  %v883_v31 = vadd.f32 %v882_v29, %v876_v27  ;;  %v983_v25 = vld [vmem:[#allocation3 + $0xc] sm:$0x3] }
 0x9da   :  { %891 = vrot.lane.b32.xlu2 %v1443_v30, %s1677_s3  ;;  %v981_v30 = vld [vmem:[#allocation2 + $0xa] sm:$0x3] }
 0x9db   :  { %1444 = vtanh.f32 %v883_v31  ;;  %v907_v39 = vmul.f32 0.5, %v883_v31 }
 0x9dc   :  { %1446 = vtanh.f32 %v884_v10 }
 0x9dd   :  { %1448 = vtanh.f32 %v907_v39 }
 0x9e0   :  { %v878_v9 = vpop.f32.mrf.mxu3 }
 0x9e1   :  { %v1445_v32 = vpop.eup %1444 }
 0x9e2   :  { %914 = vrot.lane.b32.xlu0 %v1445_v32, %s1677_s3  ;;  %v1447_v33 = vpop.eup %1446 }
 0x9e3   :  { %v886_v34 = vmul.f32 0.5, %v1447_v33  ;;  %v1449_v41 = vpop.eup %1448 }
 0x9e4   :  { %v909_v42 = vmul.f32 0.5, %v1449_v41 }
 0x9e5   :  { %v887_v36 = vadd.f32 0.5, %v886_v34 }
 0x9e6   :  { %v910_v3 = vadd.f32 0.5, %v909_v42 }
 0x9e7   :  { %v889_v46 = vmul.f32 %v887_v36, %v1863_v61 }
 0x9e8   :  { %v912_v48 = vmul.f32 %v910_v3, %v1867_v7  ;;  %v351_v7 = vrot.slane %v1819_v54, 5  ;;  %v1374_v54 = vld [vmem:[#allocation15] sm:$0xff] }
 0x9e9   :  { %809 = vmatpush.bf16.msra.mxu0 %v1374_v54  ;;  %1257 = vmatpush.bf16.msrb.mxu2 %v1374_v54 }
 0x9ed   :  { %955 = vmatpush.bf16.msrb.mxu0 %v1767_v1 }
 0xa34   :  { %v892_v37 = vpop.permute.xlu2 %891 }
 0xa35   :  { %v894_v0 = vmul.f32 %v892_v37, %v887_v36 }
 0xa37   :  { %896 = vrot.lane.b32.xlu1 %v894_v0, %s1678_s4 }
 0xa54   :  { %v915_v43 = vpop.permute.xlu0 %914 }
 0xa55   :  { %v917_v44 = vmul.f32 %v915_v43, %v910_v3 }
 0xa57   :  { %919 = vrot.lane.b32.xlu2 %v917_v44, %s1678_s4 }
 0xa5f   :  { %345 = vrot.lane.b32.xlu2 %v1815_v49, %s1680_s14 }
 0xa67   :  { %783 = vrot.lane.b32.xlu2 %v782_v2, %s1680_s14 }
 0xa6f   :  { %647 = vrot.lane.b32.xlu2 %v646_v45, %s1680_s14 }
 0xaa9   :  { %v897_v5 = vpop.permute.xlu1 %896 }
 0xaaa   :  { %v1928_v47 = vadd.f32 %v897_v5, %v889_v46 }
 0xaac   :  { %1450 = vtanh.f32 %v1928_v47 }
 0xab1   :  { %v920_v50 = vpop.permute.xlu2 %919 }
 0xab2   :  { %v1451_v51 = vpop.eup %1450  ;;  %v1932_v49 = vadd.f32 %v920_v50, %v912_v48 }
 0xab3   :  { %902 = vrot.lane.b32.xlu0 %v1451_v51, %s1679_s13 }
 0xab4   :  { %1452 = vtanh.f32 %v1932_v49 }
 0xab9   :  { %v346_v26 = vpop.permute.xlu2 %345 }
 0xaba   :  { %v1453_v61 = vpop.eup %1452  ;;  %349 = vst.msk [vmem:[#allocation4] sm:$0x1] %vm348_vm4, %v346_v26 }
 0xabb   :  { %493 = vrot.lane.b32.xlu0 %v492_v28, %s1680_s14  ;;  %925 = vrot.lane.b32.xlu1 %v1453_v61, %s1679_s13 }
 0xac1   :  { %v784_v53 = vpop.permute.xlu2 %783 }
 0xac2   :  { %786 = vst.msk [vmem:[#allocation4] sm:$0x8] %vm355_vm5, %v784_v53 }
 0xac3   :  { %352 = vrot.lane.b32.xlu0 %v351_v7, %s1680_s14  ;;  %641 = vrot.lane.b32.xlu1 %v640_v52, %s1680_s14 }
 0xac9   :  { %v648_v55 = vpop.permute.xlu2 %647 }
 0xaca   :  { %650 = vst.msk [vmem:[#allocation5] sm:$0x2] %vm496_vm6, %v648_v55 }
 0xacb   :  { %788 = vrot.lane.b32.xlu0 %v1886_v38, %s1680_s14  ;;  %500 = vrot.lane.b32.xlu1 %v499_v35, %s1680_s14 }
 0xb25   :  { %v903_v56 = vpop.permute.xlu0 %902 }
 0xb26   :  { %v905_v40 = vmul.f32 %v903_v56, %v887_v36 }
 0xb28   :  { %v1952_v57 = vpack.c.bf16 %v905_v40, %v905_v40 }
 0xb2a   :  { %v941_v58 = vunpack.c.l.b16 %v1952_v57 }
 0xb2c   :  { %v942_v59 = vpack.c.b16 %v941_v58, %v941_v58  ;;  %v1085_v58 = vld [vmem:[#allocation3 + $0xa] sm:$0x3] }
 0xb2d   :  { %v494_v38 = vpop.permute.xlu0 %493  ;;  %v926_v60 = vpop.permute.xlu1 %925 }
 0xb2e   :  { %497 = vst.msk [vmem:[#allocation4] sm:$0x2] %vm496_vm6, %v494_v38  ;;  %v928_v62 = vmul.f32 %v926_v60, %v910_v3  ;;  %943 = vrot.lane.b32.xlu1 %v942_v59, %s1680_s14 }
 0xb30   :  { %v1957_v63 = vpack.c.bf16 %v928_v62, %v928_v62 }
 0xb32   :  { %v961_v6 = vunpack.c.l.b16 %v1957_v63 }
 0xb34   :  { %v962_v8 = vpack.c.b16 %v961_v6, %v961_v6  ;;  %v1083_v6 = vld [vmem:[#allocation2 + $0xc] sm:$0x3] }
 0xb35   :  { %v353_v11 = vpop.permute.xlu0 %352  ;;  %v642_v12 = vpop.permute.xlu1 %641 }
 0xb36   :  { %356 = vst.msk [vmem:[#allocation5] sm:$0x8] %vm355_vm5, %v353_v11  ;;  %963 = vrot.lane.b32.xlu2 %v962_v8, %s1680_s14 }
 0xb37   :  { %644 = vst.msk [vmem:[#allocation4] sm:$0x4] %vm503_vm7, %v642_v12 }
 0xb3d   :  { %v789_v13 = vpop.permute.xlu0 %788  ;;  %v501_v14 = vpop.permute.xlu1 %500 }
 0xb3e   :  { %791 = vst.msk [vmem:[#allocation5] sm:$0x1] %vm348_vm4, %v789_v13  ;;  %v792_v15 = vld [vmem:[#allocation4] sm:$0xf] }
 0xb3f   :  { %504 = vst.msk [vmem:[#allocation5] sm:$0x4] %vm503_vm7, %v501_v14  ;;  %1352 = vmatmul.msk.bf16.vlgmr.msra.gmra.mxu0 %vm217_vm2, %v792_v15 }
 0xb40   :  { %1159 = vmatpush.bf16.msra.mxu0 %v1767_v1 }
 0xb46   :  { %v816_v16 = vld [vmem:[#allocation5] sm:$0xf] }
 0xb47   :  { %1357 = vmatmul.msk.bf16.vlgmr.msra.gmra.mxu1 %vm217_vm2, %v816_v16 }
 0xb48   :  { %1179 = vmatpush.bf16.msra.mxu1 %v1775_v4 }
 0xb90   :  { %v964_v17 = vpop.permute.xlu2 %963 }
 0xb91   :  { %1361 = vmatmul.msk.bf16.vlgmr.msrb.gmra.mxu1 %vm217_vm2, %v964_v17 }
 0xba0   :  { %v944_v18 = vpop.permute.xlu1 %943 }
 0xba1   :  { %1360 = vmatmul.msk.bf16.vlgmr.msrb.gmra.mxu0 %vm217_vm2, %v944_v18 }
 0xbbc   :  { %v1971_v19 = vpop.f32.mrf.mxu0 }
 0xbc4   :  { %v813_v20 = vpop.f32.mrf.mxu0  ;;  %v1973_v21 = vpop.f32.mrf.mxu1 }
 0xbcc   :  { %v837_v22 = vpop.f32.mrf.mxu1 }
 0xc0e   :  { %v977_v24 = vpop.f32.mrf.mxu1 }
 0xc0f   :  { %v984_v1 = vadd.f32 %v983_v25, %v977_v24 }
 0xc11   :  { %1454 = vtanh.f32 %v984_v1  ;;  %v1008_v10 = vmul.f32 0.5, %v984_v1 }
 0xc16   :  { %v979_v27 = vpop.f32.mrf.mxu1 }
 0xc17   :  { %v1455_v29 = vpop.eup %1454 }
 0xc18   :  { %1015 = vrot.lane.b32.xlu1 %v1455_v29, %s1677_s3 }
 0xc1e   :  { %v957_v4 = vpop.f32.mrf.mxu0 }
 0xc1f   :  { %v982_v31 = vadd.f32 %v981_v30, %v957_v4 }
 0xc21   :  { %1456 = vtanh.f32 %v982_v31  ;;  %v985_v36 = vmul.f32 0.5, %v982_v31 }
 0xc22   :  { %1458 = vtanh.f32 %v1008_v10 }
 0xc23   :  { %1460 = vtanh.f32 %v985_v36 }
 0xc26   :  { %v959_v9 = vpop.f32.mrf.mxu0 }
 0xc27   :  { %v1457_v32 = vpop.eup %1456 }
 0xc28   :  { %992 = vrot.lane.b32.xlu0 %v1457_v32, %s1677_s3  ;;  %v1459_v33 = vpop.eup %1458 }
 0xc29   :  { %v1010_v34 = vmul.f32 0.5, %v1459_v33  ;;  %v1461_v41 = vpop.eup %1460 }
 0xc2a   :  { %v987_v42 = vmul.f32 0.5, %v1461_v41 }
 0xc2b   :  { %v1011_v37 = vadd.f32 0.5, %v1010_v34 }
 0xc2c   :  { %v988_v3 = vadd.f32 0.5, %v987_v42 }
 0xc2d   :  { %v1013_v5 = vmul.f32 %v1011_v37, %v1932_v49 }
 0xc2e   :  { %v990_v2 = vmul.f32 %v988_v3, %v1928_v47 }
 0xc8a   :  { %v1016_v0 = vpop.permute.xlu1 %1015 }
 0xc8b   :  { %v1018_v39 = vmul.f32 %v1016_v0, %v1011_v37 }
 0xc8d   :  { %1020 = vrot.lane.b32.xlu0 %v1018_v39, %s1678_s4 }
 0xc9a   :  { %v993_v43 = vpop.permute.xlu0 %992 }
 0xc9b   :  { %v995_v44 = vmul.f32 %v993_v43, %v988_v3 }
 0xc9d   :  { %997 = vrot.lane.b32.xlu2 %v995_v44, %s1678_s4 }
 0xcf7   :  { %v998_v45 = vpop.permute.xlu2 %997 }
 0xcf8   :  { %v1000_v46 = vadd.f32 %v998_v45, %v990_v2 }
 0xcfa   :  { %1462 = vtanh.f32 %v1000_v46 }
 0xcff   :  { %v1021_v48 = vpop.permute.xlu0 %1020 }
 0xd00   :  { %v1463_v50 = vpop.eup %1462  ;;  %v1023_v51 = vadd.f32 %v1021_v48, %v1013_v5  ;;  %v1185_v5 = vld [vmem:[#allocation2 + $0xe] sm:$0x3] }
 0xd01   :  { %1003 = vrot.lane.b32.xlu1 %v1463_v50, %s1679_s13 }
 0xd02   :  { %1464 = vtanh.f32 %v1023_v51 }
 0xd08   :  { %v1465_v28 = vpop.eup %1464 }
 0xd09   :  { %1026 = vrot.lane.b32.xlu2 %v1465_v28, %s1679_s13  ;;  %v1187_v28 = vld [vmem:[#allocation3 + $0x8] sm:$0x3] }
 0xd63   :  { %v1027_v26 = vpop.permute.xlu2 %1026 }
 0xd64   :  { %v1029_v61 = vmul.f32 %v1027_v26, %v1011_v37 }
 0xd66   :  { %v1983_v7 = vpack.c.bf16 %v1029_v61, %v1029_v61 }
 0xd68   :  { %v1063_v47 = vunpack.c.l.b16 %v1983_v7 }
 0xd6a   :  { %v1064_v52 = vpack.c.b16 %v1063_v47, %v1063_v47 }
 0xd6c   :  { %1065 = vrot.lane.b32.xlu1 %v1064_v52, %s1680_s14 }
 0xd73   :  { %v1004_v53 = vpop.permute.xlu1 %1003 }
 0xd74   :  { %v1006_v49 = vmul.f32 %v1004_v53, %v988_v3 }
 0xd76   :  { %v1987_v35 = vpack.c.bf16 %v1006_v49, %v1006_v49 }
 0xd78   :  { %v1043_v55 = vunpack.c.l.b16 %v1987_v35 }
 0xd7a   :  { %v1044_v54 = vpack.c.b16 %v1043_v55, %v1043_v55 }
 0xd7c   :  { %1045 = vrot.lane.b32.xlu0 %v1044_v54, %s1680_s14 }
 0xdde   :  { %v1066_v23 = vpop.permute.xlu1 %1065 }
 0xddf   :  { %1363 = vmatmul.msk.bf16.vlgmr.msra.gmra.mxu3 %vm217_vm2, %v1066_v23 }
 0xdee   :  { %v1046_v56 = vpop.permute.xlu0 %1045 }
 0xdef   :  { %1362 = vmatmul.msk.bf16.vlgmr.msra.gmra.mxu2 %vm217_vm2, %v1046_v56 }
 0xe62   :  { %v1079_v40 = vpop.f32.mrf.mxu3 }
 0xe63   :  { %v1086_v59 = vadd.f32 %v1085_v58, %v1079_v40 }
 0xe65   :  { %1466 = vtanh.f32 %v1086_v59  ;;  %v1110_v14 = vmul.f32 0.5, %v1086_v59 }
 0xe6a   :  { %v1081_v38 = vpop.f32.mrf.mxu3 }
 0xe6b   :  { %v1467_v60 = vpop.eup %1466 }
 0xe6c   :  { %1117 = vrot.lane.b32.xlu0 %v1467_v60, %s1677_s3 }
 0xe72   :  { %v1059_v62 = vpop.f32.mrf.mxu2 }
 0xe73   :  { %v1084_v8 = vadd.f32 %v1083_v6, %v1059_v62  ;;  %v1038_v62 = vrot.slane %v1983_v7, 6 }
 0xe75   :  { %1468 = vtanh.f32 %v1084_v8  ;;  %v1087_v13 = vmul.f32 0.5, %v1084_v8 }
 0xe77   :  { %1470 = vtanh.f32 %v1087_v13 }
 0xe78   :  { %1472 = vtanh.f32 %v1110_v14 }
 0xe7a   :  { %v1061_v11 = vpop.f32.mrf.mxu2 }
 0xe7b   :  { %v1469_v12 = vpop.eup %1468 }
 0xe7c   :  { %1094 = vrot.lane.b32.xlu2 %v1469_v12, %s1677_s3 }
 0xe7d   :  { %v1471_v15 = vpop.eup %1470 }
 0xe7e   :  { %v1089_v16 = vmul.f32 0.5, %v1471_v15  ;;  %v1473_v18 = vpop.eup %1472  ;;  %v1032_v15 = vrot.slane %v1987_v35, 7 }
 0xe7f   :  { %v1112_v24 = vmul.f32 0.5, %v1473_v18 }
 0xe80   :  { %v1090_v17 = vadd.f32 0.5, %v1089_v16 }
 0xe81   :  { %v1113_v25 = vadd.f32 0.5, %v1112_v24 }
 0xe82   :  { %v1092_v9 = vmul.f32 %v1090_v17, %v1000_v46 }
 0xe83   :  { %v1115_v29 = vmul.f32 %v1113_v25, %v1023_v51 }
 0xed6   :  { %v1095_v20 = vpop.permute.xlu2 %1094 }
 0xed7   :  { %v1097_v22 = vmul.f32 %v1095_v20, %v1090_v17 }
 0xed9   :  { %1099 = vrot.lane.b32.xlu1 %v1097_v22, %s1678_s4  ;;  %v936_v22 = vrot.slane %v1957_v63, 5 }
 0xede   :  { %v1118_v1 = vpop.permute.xlu0 %1117 }
 0xedf   :  { %v1120_v27 = vmul.f32 %v1118_v1, %v1113_v25 }
 0xee1   :  { %1122 = vrot.lane.b32.xlu2 %v1120_v27, %s1678_s4 }
 0xf3b   :  { %v1123_v4 = vpop.permute.xlu2 %1122 }
 0xf3c   :  { %v1125_v30 = vadd.f32 %v1123_v4, %v1115_v29 }
 0xf3e   :  { %1474 = vtanh.f32 %v1125_v30 }
 0xf44   :  { %v1475_v31 = vpop.eup %1474 }
 0xf45   :  { %1128 = vrot.lane.b32.xlu1 %v1475_v31, %s1679_s13 }
 0xf4b   :  { %v1100_v32 = vpop.permute.xlu1 %1099 }
 0xf4c   :  { %v1102_v10 = vadd.f32 %v1100_v32, %v1092_v9 }
 0xf4e   :  { %1476 = vtanh.f32 %v1102_v10 }
 0xf54   :  { %v1477_v33 = vpop.eup %1476 }
 0xf55   :  { %1105 = vrot.lane.b32.xlu0 %v1477_v33, %s1679_s13 }
 0xfb7   :  { %v1129_v34 = vpop.permute.xlu1 %1128 }
 0xfb8   :  { %v1131_v36 = vmul.f32 %v1129_v34, %v1113_v25 }
 0xfba   :  { %v1999_v37 = vpack.c.bf16 %v1131_v36, %v1131_v36 }
 0xfbc   :  { %v1165_v0 = vunpack.c.l.b16 %v1999_v37  ;;  %v1140_v18 = vrot.slane %v1999_v37, 7 }
 0xfbe   :  { %v1166_v39 = vpack.c.b16 %v1165_v0, %v1165_v0 }
 0xfc0   :  { %1167 = vrot.lane.b32.xlu0 %v1166_v39, %s1680_s14 }
 0xfc7   :  { %v1106_v41 = vpop.permute.xlu0 %1105 }
 0xfc8   :  { %v1108_v42 = vmul.f32 %v1106_v41, %v1090_v17 }
 0xfca   :  { %v2003_v3 = vpack.c.bf16 %v1108_v42, %v1108_v42 }
 0xfcc   :  { %v1145_v43 = vunpack.c.l.b16 %v2003_v3  ;;  %v1134_v35 = vrot.slane %v2003_v3, 6 }
 0xfce   :  { %v1146_v44 = vpack.c.b16 %v1145_v43, %v1145_v43 }
 0xfd0   :  { %1147 = vrot.lane.b32.xlu2 %v1146_v44, %s1680_s14 }
0x102a   :  { %v1148_v2 = vpop.permute.xlu2 %1147 }
0x102b   :  { %1364 = vmatmul.msk.bf16.vlgmr.msra.gmra.mxu0 %vm217_vm2, %v1148_v2 }
0x1032   :  { %v1168_v45 = vpop.permute.xlu0 %1167 }
0x1033   :  { %1365 = vmatmul.msk.bf16.vlgmr.msra.gmra.mxu1 %vm217_vm2, %v1168_v45 }
0x10a8   :  { %v1161_v46 = vpop.f32.mrf.mxu0 }
0x10a9   :  { %v1186_v48 = vadd.f32 %v1185_v5, %v1161_v46 }
0x10ab   :  { %1478 = vtanh.f32 %v1186_v48  ;;  %v1189_v54 = vmul.f32 0.5, %v1186_v48 }
0x10b0   :  { %v1163_v50 = vpop.f32.mrf.mxu0  ;;  %v1181_v51 = vpop.f32.mrf.mxu1 }
0x10b1   :  { %v1479_v26 = vpop.eup %1478  ;;  %v1188_v61 = vadd.f32 %v1187_v28, %v1181_v51 }
0x10b2   :  { %1196 = vrot.lane.b32.xlu1 %v1479_v26, %s1677_s3 }
0x10b3   :  { %1480 = vtanh.f32 %v1188_v61  ;;  %v1212_v53 = vmul.f32 0.5, %v1188_v61 }
0x10b5   :  { %1482 = vtanh.f32 %v1212_v53 }
0x10b6   :  { %1484 = vtanh.f32 %v1189_v54 }
0x10b8   :  { %v1183_v47 = vpop.f32.mrf.mxu1 }
0x10b9   :  { %v1481_v52 = vpop.eup %1480 }
0x10ba   :  { %1219 = vrot.lane.b32.xlu2 %v1481_v52, %s1677_s3 }
0x10bb   :  { %v1483_v49 = vpop.eup %1482 }
0x10bc   :  { %v1214_v55 = vmul.f32 0.5, %v1483_v49  ;;  %v1485_v58 = vpop.eup %1484 }
0x10bd   :  { %v1191_v59 = vmul.f32 0.5, %v1485_v58 }
0x10be   :  { %v1215_v23 = vadd.f32 0.5, %v1214_v55 }
0x10bf   :  { %v1192_v38 = vadd.f32 0.5, %v1191_v59 }
0x10c0   :  { %v1217_v8 = vmul.f32 %v1215_v23, %v1125_v30 }
0x1114   :  { %v1220_v56 = vpop.permute.xlu2 %1219 }
0x1115   :  { %v1222_v40 = vmul.f32 %v1220_v56, %v1215_v23 }
0x1117   :  { %1224 = vrot.lane.b32.xlu1 %v1222_v40, %s1678_s4 }
0x111f   :  { %931 = vrot.lane.b32.xlu1 %v1952_v57, %s1680_s14  ;;  %v1194_v57 = vmul.f32 %v1192_v38, %v1102_v10 }
0x1124   :  { %v1197_v60 = vpop.permute.xlu1 %1196 }
0x1125   :  { %v1199_v6 = vmul.f32 %v1197_v60, %v1192_v38 }
0x1127   :  { %1201 = vrot.lane.b32.xlu0 %v1199_v6, %s1678_s4  ;;  %1039 = vrot.lane.b32.xlu1 %v1038_v62, %s1680_s14 }
0x1189   :  { %v1225_v11 = vpop.permute.xlu1 %1224 }
0x118a   :  { %v1227_v12 = vadd.f32 %v1225_v11, %v1217_v8 }
0x118c   :  { %1486 = vtanh.f32 %v1227_v12 }
0x1191   :  { %v932_v13 = vpop.permute.xlu1 %931 }
0x1192   :  { %v1487_v14 = vpop.eup %1486  ;;  %934 = vst.msk [vmem:[#allocation4] sm:$0x1] %vm348_vm4, %v932_v13 }
0x1193   :  { %1230 = vrot.lane.b32.xlu0 %v1487_v14, %s1679_s13 }
0x1199   :  { %v1202_v16 = vpop.permute.xlu0 %1201  ;;  %v1040_v7 = vpop.permute.xlu1 %1039 }
0x119a   :  { %v1204_v17 = vadd.f32 %v1202_v16, %v1194_v57  ;;  %1042 = vst.msk [vmem:[#allocation5] sm:$0x4] %vm503_vm7, %v1040_v7 }
0x119b   :  { %1033 = vrot.lane.b32.xlu0 %v1032_v15, %s1680_s14 }
0x119c   :  { %1488 = vtanh.f32 %v1204_v17 }
0x11a2   :  { %v1489_v20 = vpop.eup %1488 }
0x11a3   :  { %1207 = vrot.lane.b32.xlu2 %v1489_v20, %s1679_s13  ;;  %1141 = vrot.lane.b32.xlu0 %v1140_v18, %s1680_s14 }
0x11ab   :  { %937 = vrot.lane.b32.xlu2 %v936_v22, %s1680_s14 }
0x11b3   :  { %1135 = vrot.lane.b32.xlu2 %v1134_v35, %s1680_s14 }
0x11fd   :  { %v1208_v24 = vpop.permute.xlu2 %1207 }
0x11fe   :  { %v1210_v25 = vmul.f32 %v1208_v24, %v1192_v38 }
0x1200   :  { %v1211_v1 = vpack.c.bf16 %v1210_v25, %v1210_v25 }
0x1202   :  { %v1236_v27 = vrot.slane %v1211_v1, 5 }
0x1204   :  { %1237 = vrot.lane.b32.xlu1 %v1236_v27, %s1680_s14 }
0x1205   :  { %v1231_v29 = vpop.permute.xlu0 %1230  ;;  %v938_v4 = vpop.permute.xlu2 %937 }
0x1206   :  { %v1233_v30 = vmul.f32 %v1231_v29, %v1215_v23  ;;  %940 = vst.msk [vmem:[#allocation5] sm:$0x8] %vm355_vm5, %v938_v4 }
0x1208   :  { %v1234_v31 = vpack.c.bf16 %v1233_v30, %v1233_v30 }
0x120a   :  { %1242 = vrot.lane.b32.xlu2 %v1234_v31, %s1680_s14 }
0x120d   :  { %v1034_v63 = vpop.permute.xlu0 %1033  ;;  %v1136_v9 = vpop.permute.xlu2 %1135 }
0x120e   :  { %1036 = vst.msk [vmem:[#allocation4] sm:$0x2] %vm496_vm6, %v1034_v63 }
0x120f   :  { %1138 = vst.msk [vmem:[#allocation4] sm:$0x4] %vm503_vm7, %v1136_v9 }
0x1215   :  { %v1142_v32 = vpop.permute.xlu0 %1141 }
0x1216   :  { %1144 = vst.msk [vmem:[#allocation5] sm:$0x2] %vm496_vm6, %v1142_v32 }
0x1264   :  { %v1243_v10 = vpop.permute.xlu2 %1242 }
0x1265   :  { %1245 = vst.msk [vmem:[#allocation5] sm:$0x1] %vm348_vm4, %v1243_v10 }
0x126c   :  { %v1266_v33 = vld [vmem:[#allocation5] sm:$0xf] }
0x126d   :  { %1367 = vmatmul.msk.bf16.vlgmr.msrb.gmra.mxu3 %vm217_vm2, %v1266_v33 }
0x1276   :  { %v1238_v34 = vpop.permute.xlu1 %1237 }
0x1277   :  { %1240 = vst.msk [vmem:[#allocation4] sm:$0x8] %vm355_vm5, %v1238_v34 }
0x127e   :  { %v1246_v36 = vld [vmem:[#allocation4] sm:$0xf] }
0x127f   :  { %1366 = vmatmul.msk.bf16.vlgmr.msrb.gmra.mxu2 %vm217_vm2, %v1246_v36 }
0x12f0   :  { %v1279_v37 = vpop.f32.mrf.mxu3 }
0x12f1   :  { %v1284_v0 = vadd.f32 %v1279_v37, %v1971_v19 }
0x12f3   :  { %1285 = vst [vmem:[#allocation17] sm:$0xff] %v1284_v0 }
0x12f8   :  { %v1281_v39 = vpop.f32.mrf.mxu3 }
0x1302   :  { %v1259_v41 = vpop.f32.mrf.mxu2 }
0x1303   :  { %v1264_v42 = vadd.f32 %v1259_v41, %v1973_v21 }
0x1305   :  { %1265 = vst [vmem:[#allocation17 + $0x8] sm:$0xff] %v1264_v42 }
0x1306   :  { %1298 = dma.vmem_to_hbm [thread:$0]  %s1291_s16, 256, %s1293_s1, [#allocation8], %s1682_s5, %s1682_s5, %s1683_s19  }
0x130a   :  { %v1261_v3 = vpop.f32.mrf.mxu2 }
0x130b   :  { %1666 = dma.done.wait [#allocation8], 256  }
0x130c   :  { %1667 = vsyncadd [#allocation8], 4294967040 }
0x130d   :  { %1303 = vsyncpa [#allocation7], 1 }
0x130e   :  { %1304 = vsyncpa [#allocation10], 1 }
0x130f   :  { %1305 = vsyncpa [#allocation13], 1 }
0x1310   :  { %1306 = vsyncpa [#allocation16], 1 }
0x1311   :  { %1307 = vsyncpa [#allocation8], 1 }

</bundles_post_ra>
